<compile_context>
chip_gen: v6e
topology: v6e:2x2x1
jax: 0.10.0
libtpu: 0.0.40
codegen_flags: <defaults>
</compile_context>

<pallas_src>
import functools

import jax
import jax.numpy as jnp
from jax.experimental import pallas as pl
from jax.experimental.pallas import tpu as pltpu

# ---------------- configuration (small shapes consistent with the module) ----------------
VOCAB = 50
EMBED_DIM = 32
HIDDEN = 128          # module hardcodes hidden_size = 128
NUM_CAPS = 10
DIM_CAPS = 16
ROUTINGS = 5
NUM_CLASSES = 4
EPS = 1e-7

BATCH = 2
SEQ = 8

_VMEM = functools.partial(pl.BlockSpec, memory_space=pltpu.MemorySpace.VMEM)


# ---------------------------------------------------------------------------
# Single fused kernel: ids -> (folded embed+input-proj) -> biGRU -> routing -> logits
# ---------------------------------------------------------------------------
def _capsule_fused_kernel(ids_ref, emb_wih_ref, whh_ref, caps_w_ref,
                          cls_w_ref, cls_b_ref, o_ref, *, t_steps, n_batch):
    H = HIDDEN
    rows = t_steps * n_batch                       # = B * S  (flat, b-major)

    def fdot(a, b):
        return jnp.dot(a, b, preferred_element_type=jnp.float32)

    # ---- embedding + GRU input projection folded into one one-hot matmul ----
    ids = ids_ref[...]                                              # (B*S, 1) int32
    vocab_iota = jax.lax.broadcasted_iota(jnp.int32, (rows, VOCAB), 1)
    onehot = (ids == vocab_iota).astype(jnp.bfloat16)               # exact in bf16
    gi_all = fdot(onehot, emb_wih_ref[...])                         # (B*S, 6H) = [fwd 3H | bwd 3H]

    # ---- GRU recurrence.  nn.GRU(batch_first=False) scans dim 0 of the (B,S,E)
    # input => time axis == B (quirk kept), recurrence "batch" == S.  Fwd/bwd
    # chains are independent -> merged into one MXU push per step via a
    # block-diagonal h against the vertically-stacked recurrent weight.
    whh = whh_ref[...]                                              # (2H, 3H) bf16, loaded once
    zeros_h = jnp.zeros((n_batch, H), jnp.float32)

    def gate(gi, gh, h):
        r = jax.nn.sigmoid(gi[:, 0:H] + gh[:, 0:H])
        z = jax.nn.sigmoid(gi[:, H:2 * H] + gh[:, H:2 * H])
        n = jnp.tanh(gi[:, 2 * H:3 * H] + r * gh[:, 2 * H:3 * H])
        return (1.0 - z) * n + z * h

    h_f = zeros_h
    h_b = zeros_h
    outs_f = [None] * t_steps
    outs_b = [None] * t_steps
    for t in range(t_steps):
        tb = t_steps - 1 - t
        gi_f = gi_all[t * n_batch:(t + 1) * n_batch, 0:3 * H]
        gi_b = gi_all[tb * n_batch:(tb + 1) * n_batch, 3 * H:6 * H]
        # [[h_f, 0], [0, h_b]] : (2*Nb, 2H)  @  [whh_f; whh_b] : (2H, 3H)
        h_stack = jnp.concatenate(
            [jnp.concatenate([h_f, zeros_h], axis=1),
             jnp.concatenate([zeros_h, h_b], axis=1)], axis=0).astype(jnp.bfloat16)
        gh = jnp.dot(h_stack, whh, preferred_element_type=jnp.float32)   # (2*Nb, 3H)
        h_f = gate(gi_f, gh[0:n_batch, :], h_f)
        h_b = gate(gi_b, gh[n_batch:2 * n_batch, :], h_b)
        outs_f[t] = h_f
        outs_b[tb] = h_b
    hf_all = jnp.concatenate(outs_f, axis=0)                        # (B*S, H)
    hb_all = jnp.concatenate(outs_b, axis=0)                        # (B*S, H)

    # ---- CapsuleLayer projection: split over fwd/bwd halves of W (avoids lane concat) ----
    caps_w = caps_w_ref[...]                                        # (2H, NUM_CAPS*DIM_CAPS) bf16
    u_hat = (jnp.dot(hf_all.astype(jnp.bfloat16), caps_w[0:H, :],
                     preferred_element_type=jnp.float32) +
             jnp.dot(hb_all.astype(jnp.bfloat16), caps_w[H:2 * H, :],
                     preferred_element_type=jnp.float32))           # (B*S, 160)

    # ---- Constant 0/1 selectors built in-kernel (compile-time constants, no DMA).
    # cap_sel[i, j]   = (j // DIM_CAPS == i)   : broadcast per-capsule scalar across its DIM lanes
    # cap_sel_t[j, i] = cap_sel[i, j]          : reduce DIM lanes per capsule
    # bat_sel[b, r]   = (r // n_batch == b)    : sum input capsules within a batch element
    # bat_sel_t[r, b] = bat_sel[b, r]          : broadcast per-batch rows back to input capsules
    ci = jax.lax.broadcasted_iota(jnp.int32, (NUM_CAPS, NUM_CAPS * DIM_CAPS), 0)
    cj = jax.lax.broadcasted_iota(jnp.int32, (NUM_CAPS, NUM_CAPS * DIM_CAPS), 1)
    cap_sel = ((cj >= ci * DIM_CAPS) & (cj < (ci + 1) * DIM_CAPS)).astype(jnp.float32)
    cti = jax.lax.broadcasted_iota(jnp.int32, (NUM_CAPS * DIM_CAPS, NUM_CAPS), 0)
    ctj = jax.lax.broadcasted_iota(jnp.int32, (NUM_CAPS * DIM_CAPS, NUM_CAPS), 1)
    cap_sel_t = ((cti >= ctj * DIM_CAPS) & (cti < (ctj + 1) * DIM_CAPS)).astype(jnp.float32)
    bi = jax.lax.broadcasted_iota(jnp.int32, (t_steps, rows), 0)
    bj = jax.lax.broadcasted_iota(jnp.int32, (t_steps, rows), 1)
    bat_sel = ((bj >= bi * n_batch) & (bj < (bi + 1) * n_batch)).astype(jnp.float32)
    bti = jax.lax.broadcasted_iota(jnp.int32, (rows, t_steps), 0)
    btj = jax.lax.broadcasted_iota(jnp.int32, (rows, t_steps), 1)
    bat_sel_t = ((bti >= btj * n_batch) & (bti < (btj + 1) * n_batch)).astype(jnp.float32)

    # ---- dynamic routing (all matmuls f32: tiny / latency-bound, keeps parity) ----
    bT = jnp.zeros((rows, NUM_CAPS), jnp.float32)                   # routing logits (transposed)
    out_flat = jnp.zeros((t_steps, NUM_CAPS * DIM_CAPS), jnp.float32)
    for r in range(ROUTINGS):
        # softmax over the output-capsule axis (matches b.permute / softmax(dim=2) / permute back)
        m = jnp.max(bT, axis=1, keepdims=True)
        e = jnp.exp(bT - m)
        c = e / jnp.sum(e, axis=1, keepdims=True)                   # (B*S, 10), exact
        # s[b,i,:] = sum_j c[b,i,j] * u_hat[b,i,j,:]
        c_wide = fdot(c, cap_sel)                                   # (B*S, 160)
        s_flat = fdot(bat_sel, c_wide * u_hat)                      # (B, 160)
        # squash (module definition): s / sqrt(|s|^2 + eps), per output capsule
        sumsq = fdot(s_flat * s_flat, cap_sel_t)                    # (B, 10)
        out_flat = s_flat * fdot(jax.lax.rsqrt(sumsq + EPS), cap_sel)   # (B, 160)
        if r < ROUTINGS - 1:
            # b[b,i,j] = sum_k out[b,i,k] * u_hat[b,i,j,k]  (overwrite, as in the module)
            out_rows = fdot(bat_sel_t, out_flat)                    # (B*S, 160)
            bT = fdot(u_hat * out_rows, cap_sel_t)                  # (B*S, 10)

    # ---- classifier (Dropout(p=0.25) is identity at inference) ----
    o_ref[...] = fdot(out_flat, cls_w_ref[...].astype(jnp.float32)) + cls_b_ref[...]


@jax.jit
def capsule_forward(input_ids, params):
    B, S = input_ids.shape
    ids2d = input_ids.reshape(B * S, 1).astype(jnp.int32)
    kernel = functools.partial(_capsule_fused_kernel, t_steps=B, n_batch=S)
    return pl.pallas_call(
        kernel,
        out_shape=jax.ShapeDtypeStruct((B, NUM_CLASSES), jnp.float32),
        in_specs=[_VMEM() for _ in range(6)],
        out_specs=_VMEM(),
    )(ids2d, params["emb_wih"], params["gru_whh"],
      params["caps_w"], params["cls_w"], params["cls_b"])


# ---------------------------------------------------------------------------
# Parameter init (deterministic, synthetic). Weights stored bf16 (halved DMA);
# the fold and all init math is done in f32.
# ---------------------------------------------------------------------------
def init_params(key):
    ks = jax.random.split(key, 8)

    def xavier(k, shape):
        fan_in, fan_out = shape[-2], shape[-1]
        std = (2.0 / (fan_in + fan_out)) ** 0.5
        return std * jax.random.normal(k, shape, jnp.float32)

    p = {}
    emb = 0.1 * jax.random.normal(ks[0], (VOCAB, EMBED_DIM), jnp.float32)

    # GRU weights pre-transposed to (in, 3H), gate order [r | z | n]; biases are 0 per
    # GRULayer.init_weights.  Forward/backward input projections concatenated, then the
    # embedding table is folded into them: gi_all = onehot @ (emb @ wih).
    # TODO(synk): orthogonal init of weight_hh approximated by xavier-normal (synthetic weights).
    wih_f = xavier(ks[1], (EMBED_DIM, 3 * HIDDEN))
    wih_b = xavier(ks[3], (EMBED_DIM, 3 * HIDDEN))
    wih = jnp.concatenate([wih_f, wih_b], axis=1)                   # (E, 6H)
    p["emb_wih"] = (emb @ wih).astype(jnp.bfloat16)                 # (VOCAB, 6H)

    whh_f = xavier(ks[2], (HIDDEN, 3 * HIDDEN))
    whh_b = xavier(ks[4], (HIDDEN, 3 * HIDDEN))
    p["gru_whh"] = jnp.concatenate([whh_f, whh_b], axis=0).astype(jnp.bfloat16)  # (2H, 3H)

    # Capsule W: PyTorch shape (1, D_in, NUM_CAPS*DIM_CAPS); used flat as (D_in, 160).
    p["caps_w"] = xavier(ks[5], (1, 2 * HIDDEN, NUM_CAPS * DIM_CAPS))[0].astype(jnp.bfloat16)

    p["cls_w"] = xavier(ks[6], (NUM_CAPS * DIM_CAPS, NUM_CLASSES)).astype(jnp.bfloat16)
    p["cls_b"] = jnp.zeros((1, NUM_CLASSES), jnp.float32)
    return p


if __name__ == "__main__":
    key = jax.random.PRNGKey(0)
    k_ids, k_params = jax.random.split(key)
    input_ids = jax.random.randint(k_ids, (BATCH, SEQ), 0, VOCAB, dtype=jnp.int32)
    params = init_params(k_params)

    logits = capsule_forward(input_ids, params)
    jax.block_until_ready(logits)
    assert logits.shape == (BATCH, NUM_CLASSES)
    assert bool(jnp.all(jnp.isfinite(logits)))
    print("KERNEL_OK")
</pallas_src>

<mosaic_0001>
module attributes {stable_mosaic.version = 11 : i64} {
  func.func @_capsule_fused_kernel(%arg0: memref<16x1xi32, #tpu.memory_space<vmem>>, %arg1: memref<50x768xbf16, #tpu.memory_space<vmem>>, %arg2: memref<256x384xbf16, #tpu.memory_space<vmem>>, %arg3: memref<256x160xbf16, #tpu.memory_space<vmem>>, %arg4: memref<160x4xbf16, #tpu.memory_space<vmem>>, %arg5: memref<1x4xf32, #tpu.memory_space<vmem>>, %arg6: memref<2x4xf32, #tpu.memory_space<vmem>>) attributes {dimension_semantics = [], scalar_prefetch = 0 : i64, scratch_operands = 0 : i64, tpu.core_type = #tpu.core_type<tc>} {
    %c0 = arith.constant 0 : index
    %c0_0 = arith.constant 0 : index
    %0 = vector.load %arg0[%c0, %c0_0] : memref<16x1xi32, #tpu.memory_space<vmem>>, vector<16x1xi32>
    %1 = tpu.iota {dimensions = array<i32: 1>} : vector<16x50xi32>
    %2 = vector.broadcast %0 : vector<16x1xi32> to vector<16x50xi32>
    %3 = arith.cmpi eq, %2, %1 : vector<16x50xi32>
    %4 = arith.extui %3 : vector<16x50xi1> to vector<16x50xi32>
    %5 = arith.sitofp %4 : vector<16x50xi32> to vector<16x50xf32>
    %6 = arith.truncf %5 : vector<16x50xf32> to vector<16x50xbf16>
    %c0_1 = arith.constant 0 : index
    %c0_2 = arith.constant 0 : index
    %7 = vector.load %arg1[%c0_1, %c0_2] : memref<50x768xbf16, #tpu.memory_space<vmem>>, vector<50x768xbf16>
    %cst = arith.constant dense<0.000000e+00> : vector<16x768xf32>
    %8 = tpu.matmul %6, %7, %cst {dimension_numbers = #tpu.dot_dimension_numbers<[1], [0], [0], [1], [0, 0, 1, 1], [], []>} : vector<16x50xbf16>, vector<50x768xbf16>, vector<16x768xf32> -> vector<16x768xf32>
    %c0_3 = arith.constant 0 : index
    %c0_4 = arith.constant 0 : index
    %9 = vector.load %arg2[%c0_3, %c0_4] : memref<256x384xbf16, #tpu.memory_space<vmem>>, vector<256x384xbf16>
    %cst_5 = arith.constant 0.000000e+00 : f32
    %10 = vector.broadcast %cst_5 : f32 to vector<8x128xf32>
    %11 = vector.extract_strided_slice %8 {offsets = [0, 0], sizes = [8, 384], strides = [1, 1]} : vector<16x768xf32> to vector<8x384xf32>
    %12 = vector.extract_strided_slice %8 {offsets = [8, 384], sizes = [8, 384], strides = [1, 1]} : vector<16x768xf32> to vector<8x384xf32>
    %13 = tpu.concatenate %10, %10 in 1 : vector<8x128xf32>, vector<8x128xf32> -> vector<8x256xf32>
    %14 = tpu.concatenate %10, %10 in 1 : vector<8x128xf32>, vector<8x128xf32> -> vector<8x256xf32>
    %15 = tpu.concatenate %13, %14 in 0 : vector<8x256xf32>, vector<8x256xf32> -> vector<16x256xf32>
    %16 = arith.truncf %15 : vector<16x256xf32> to vector<16x256xbf16>
    %cst_6 = arith.constant dense<0.000000e+00> : vector<16x384xf32>
    %17 = tpu.matmul %16, %9, %cst_6 {dimension_numbers = #tpu.dot_dimension_numbers<[1], [0], [0], [1], [0, 0, 1, 1], [], []>} : vector<16x256xbf16>, vector<256x384xbf16>, vector<16x384xf32> -> vector<16x384xf32>
    %18 = vector.extract_strided_slice %17 {offsets = [0, 0], sizes = [8, 384], strides = [1, 1]} : vector<16x384xf32> to vector<8x384xf32>
    %19 = vector.extract_strided_slice %11 {offsets = [0, 0], sizes = [8, 128], strides = [1, 1]} : vector<8x384xf32> to vector<8x128xf32>
    %20 = vector.extract_strided_slice %18 {offsets = [0, 0], sizes = [8, 128], strides = [1, 1]} : vector<8x384xf32> to vector<8x128xf32>
    %21 = arith.addf %19, %20 : vector<8x128xf32>
    %22 = arith.negf %21 : vector<8x128xf32>
    %23 = math.exp %22 : vector<8x128xf32>
    %cst_7 = arith.constant 1.000000e+00 : f32
    %24 = vector.broadcast %cst_7 : f32 to vector<8x128xf32>
    %25 = arith.addf %24, %23 : vector<8x128xf32>
    %26 = arith.divf %24, %25 : vector<8x128xf32>
    %27 = vector.extract_strided_slice %11 {offsets = [0, 128], sizes = [8, 128], strides = [1, 1]} : vector<8x384xf32> to vector<8x128xf32>
    %28 = vector.extract_strided_slice %18 {offsets = [0, 128], sizes = [8, 128], strides = [1, 1]} : vector<8x384xf32> to vector<8x128xf32>
    %29 = arith.addf %27, %28 : vector<8x128xf32>
    %30 = arith.negf %29 : vector<8x128xf32>
    %31 = math.exp %30 : vector<8x128xf32>
    %cst_8 = arith.constant 1.000000e+00 : f32
    %32 = vector.broadcast %cst_8 : f32 to vector<8x128xf32>
    %33 = arith.addf %32, %31 : vector<8x128xf32>
    %34 = arith.divf %32, %33 : vector<8x128xf32>
    %35 = vector.extract_strided_slice %11 {offsets = [0, 256], sizes = [8, 128], strides = [1, 1]} : vector<8x384xf32> to vector<8x128xf32>
    %36 = vector.extract_strided_slice %18 {offsets = [0, 256], sizes = [8, 128], strides = [1, 1]} : vector<8x384xf32> to vector<8x128xf32>
    %37 = arith.mulf %26, %36 : vector<8x128xf32>
    %38 = arith.addf %35, %37 : vector<8x128xf32>
    %39 = math.tanh %38 : vector<8x128xf32>
    %cst_9 = arith.constant 1.000000e+00 : f32
    %40 = vector.broadcast %cst_9 : f32 to vector<8x128xf32>
    %41 = arith.subf %40, %34 : vector<8x128xf32>
    %42 = arith.mulf %41, %39 : vector<8x128xf32>
    %43 = arith.mulf %34, %10 : vector<8x128xf32>
    %44 = arith.addf %42, %43 : vector<8x128xf32>
    %45 = vector.extract_strided_slice %17 {offsets = [8, 0], sizes = [8, 384], strides = [1, 1]} : vector<16x384xf32> to vector<8x384xf32>
    %46 = vector.extract_strided_slice %12 {offsets = [0, 0], sizes = [8, 128], strides = [1, 1]} : vector<8x384xf32> to vector<8x128xf32>
    %47 = vector.extract_strided_slice %45 {offsets = [0, 0], sizes = [8, 128], strides = [1, 1]} : vector<8x384xf32> to vector<8x128xf32>
    %48 = arith.addf %46, %47 : vector<8x128xf32>
    %49 = arith.negf %48 : vector<8x128xf32>
    %50 = math.exp %49 : vector<8x128xf32>
    %cst_10 = arith.constant 1.000000e+00 : f32
    %51 = vector.broadcast %cst_10 : f32 to vector<8x128xf32>
    %52 = arith.addf %51, %50 : vector<8x128xf32>
    %53 = arith.divf %51, %52 : vector<8x128xf32>
    %54 = vector.extract_strided_slice %12 {offsets = [0, 128], sizes = [8, 128], strides = [1, 1]} : vector<8x384xf32> to vector<8x128xf32>
    %55 = vector.extract_strided_slice %45 {offsets = [0, 128], sizes = [8, 128], strides = [1, 1]} : vector<8x384xf32> to vector<8x128xf32>
    %56 = arith.addf %54, %55 : vector<8x128xf32>
    %57 = arith.negf %56 : vector<8x128xf32>
    %58 = math.exp %57 : vector<8x128xf32>
    %cst_11 = arith.constant 1.000000e+00 : f32
    %59 = vector.broadcast %cst_11 : f32 to vector<8x128xf32>
    %60 = arith.addf %59, %58 : vector<8x128xf32>
    %61 = arith.divf %59, %60 : vector<8x128xf32>
    %62 = vector.extract_strided_slice %12 {offsets = [0, 256], sizes = [8, 128], strides = [1, 1]} : vector<8x384xf32> to vector<8x128xf32>
    %63 = vector.extract_strided_slice %45 {offsets = [0, 256], sizes = [8, 128], strides = [1, 1]} : vector<8x384xf32> to vector<8x128xf32>
    %64 = arith.mulf %53, %63 : vector<8x128xf32>
    %65 = arith.addf %62, %64 : vector<8x128xf32>
    %66 = math.tanh %65 : vector<8x128xf32>
    %cst_12 = arith.constant 1.000000e+00 : f32
    %67 = vector.broadcast %cst_12 : f32 to vector<8x128xf32>
    %68 = arith.subf %67, %61 : vector<8x128xf32>
    %69 = arith.mulf %68, %66 : vector<8x128xf32>
    %70 = arith.mulf %61, %10 : vector<8x128xf32>
    %71 = arith.addf %69, %70 : vector<8x128xf32>
    %72 = vector.extract_strided_slice %8 {offsets = [8, 0], sizes = [8, 384], strides = [1, 1]} : vector<16x768xf32> to vector<8x384xf32>
    %73 = vector.extract_strided_slice %8 {offsets = [0, 384], sizes = [8, 384], strides = [1, 1]} : vector<16x768xf32> to vector<8x384xf32>
    %74 = tpu.concatenate %44, %10 in 1 : vector<8x128xf32>, vector<8x128xf32> -> vector<8x256xf32>
    %75 = tpu.concatenate %10, %71 in 1 : vector<8x128xf32>, vector<8x128xf32> -> vector<8x256xf32>
    %76 = tpu.concatenate %74, %75 in 0 : vector<8x256xf32>, vector<8x256xf32> -> vector<16x256xf32>
    %77 = arith.truncf %76 : vector<16x256xf32> to vector<16x256xbf16>
    %cst_13 = arith.constant dense<0.000000e+00> : vector<16x384xf32>
    %78 = tpu.matmul %77, %9, %cst_13 {dimension_numbers = #tpu.dot_dimension_numbers<[1], [0], [0], [1], [0, 0, 1, 1], [], []>} : vector<16x256xbf16>, vector<256x384xbf16>, vector<16x384xf32> -> vector<16x384xf32>
    %79 = vector.extract_strided_slice %78 {offsets = [0, 0], sizes = [8, 384], strides = [1, 1]} : vector<16x384xf32> to vector<8x384xf32>
    %80 = vector.extract_strided_slice %72 {offsets = [0, 0], sizes = [8, 128], strides = [1, 1]} : vector<8x384xf32> to vector<8x128xf32>
    %81 = vector.extract_strided_slice %79 {offsets = [0, 0], sizes = [8, 128], strides = [1, 1]} : vector<8x384xf32> to vector<8x128xf32>
    %82 = arith.addf %80, %81 : vector<8x128xf32>
    %83 = arith.negf %82 : vector<8x128xf32>
    %84 = math.exp %83 : vector<8x128xf32>
    %cst_14 = arith.constant 1.000000e+00 : f32
    %85 = vector.broadcast %cst_14 : f32 to vector<8x128xf32>
    %86 = arith.addf %85, %84 : vector<8x128xf32>
    %87 = arith.divf %85, %86 : vector<8x128xf32>
    %88 = vector.extract_strided_slice %72 {offsets = [0, 128], sizes = [8, 128], strides = [1, 1]} : vector<8x384xf32> to vector<8x128xf32>
    %89 = vector.extract_strided_slice %79 {offsets = [0, 128], sizes = [8, 128], strides = [1, 1]} : vector<8x384xf32> to vector<8x128xf32>
    %90 = arith.addf %88, %89 : vector<8x128xf32>
    %91 = arith.negf %90 : vector<8x128xf32>
    %92 = math.exp %91 : vector<8x128xf32>
    %cst_15 = arith.constant 1.000000e+00 : f32
    %93 = vector.broadcast %cst_15 : f32 to vector<8x128xf32>
    %94 = arith.addf %93, %92 : vector<8x128xf32>
    %95 = arith.divf %93, %94 : vector<8x128xf32>
    %96 = vector.extract_strided_slice %72 {offsets = [0, 256], sizes = [8, 128], strides = [1, 1]} : vector<8x384xf32> to vector<8x128xf32>
    %97 = vector.extract_strided_slice %79 {offsets = [0, 256], sizes = [8, 128], strides = [1, 1]} : vector<8x384xf32> to vector<8x128xf32>
    %98 = arith.mulf %87, %97 : vector<8x128xf32>
    %99 = arith.addf %96, %98 : vector<8x128xf32>
    %100 = math.tanh %99 : vector<8x128xf32>
    %cst_16 = arith.constant 1.000000e+00 : f32
    %101 = vector.broadcast %cst_16 : f32 to vector<8x128xf32>
    %102 = arith.subf %101, %95 : vector<8x128xf32>
    %103 = arith.mulf %102, %100 : vector<8x128xf32>
    %104 = arith.mulf %95, %44 : vector<8x128xf32>
    %105 = arith.addf %103, %104 : vector<8x128xf32>
    %106 = vector.extract_strided_slice %78 {offsets = [8, 0], sizes = [8, 384], strides = [1, 1]} : vector<16x384xf32> to vector<8x384xf32>
    %107 = vector.extract_strided_slice %73 {offsets = [0, 0], sizes = [8, 128], strides = [1, 1]} : vector<8x384xf32> to vector<8x128xf32>
    %108 = vector.extract_strided_slice %106 {offsets = [0, 0], sizes = [8, 128], strides = [1, 1]} : vector<8x384xf32> to vector<8x128xf32>
    %109 = arith.addf %107, %108 : vector<8x128xf32>
    %110 = arith.negf %109 : vector<8x128xf32>
    %111 = math.exp %110 : vector<8x128xf32>
    %cst_17 = arith.constant 1.000000e+00 : f32
    %112 = vector.broadcast %cst_17 : f32 to vector<8x128xf32>
    %113 = arith.addf %112, %111 : vector<8x128xf32>
    %114 = arith.divf %112, %113 : vector<8x128xf32>
    %115 = vector.extract_strided_slice %73 {offsets = [0, 128], sizes = [8, 128], strides = [1, 1]} : vector<8x384xf32> to vector<8x128xf32>
    %116 = vector.extract_strided_slice %106 {offsets = [0, 128], sizes = [8, 128], strides = [1, 1]} : vector<8x384xf32> to vector<8x128xf32>
    %117 = arith.addf %115, %116 : vector<8x128xf32>
    %118 = arith.negf %117 : vector<8x128xf32>
    %119 = math.exp %118 : vector<8x128xf32>
    %cst_18 = arith.constant 1.000000e+00 : f32
    %120 = vector.broadcast %cst_18 : f32 to vector<8x128xf32>
    %121 = arith.addf %120, %119 : vector<8x128xf32>
    %122 = arith.divf %120, %121 : vector<8x128xf32>
    %123 = vector.extract_strided_slice %73 {offsets = [0, 256], sizes = [8, 128], strides = [1, 1]} : vector<8x384xf32> to vector<8x128xf32>
    %124 = vector.extract_strided_slice %106 {offsets = [0, 256], sizes = [8, 128], strides = [1, 1]} : vector<8x384xf32> to vector<8x128xf32>
    %125 = arith.mulf %114, %124 : vector<8x128xf32>
    %126 = arith.addf %123, %125 : vector<8x128xf32>
    %127 = math.tanh %126 : vector<8x128xf32>
    %cst_19 = arith.constant 1.000000e+00 : f32
    %128 = vector.broadcast %cst_19 : f32 to vector<8x128xf32>
    %129 = arith.subf %128, %122 : vector<8x128xf32>
    %130 = arith.mulf %129, %127 : vector<8x128xf32>
    %131 = arith.mulf %122, %71 : vector<8x128xf32>
    %132 = arith.addf %130, %131 : vector<8x128xf32>
    %133 = tpu.concatenate %44, %105 in 0 : vector<8x128xf32>, vector<8x128xf32> -> vector<16x128xf32>
    %134 = tpu.concatenate %132, %71 in 0 : vector<8x128xf32>, vector<8x128xf32> -> vector<16x128xf32>
    %c0_20 = arith.constant 0 : index
    %c0_21 = arith.constant 0 : index
    %135 = vector.load %arg3[%c0_20, %c0_21] : memref<256x160xbf16, #tpu.memory_space<vmem>>, vector<256x160xbf16>
    %136 = arith.truncf %133 : vector<16x128xf32> to vector<16x128xbf16>
    %137 = vector.extract_strided_slice %135 {offsets = [0, 0], sizes = [128, 160], strides = [1, 1]} : vector<256x160xbf16> to vector<128x160xbf16>
    %cst_22 = arith.constant dense<0.000000e+00> : vector<16x160xf32>
    %138 = tpu.matmul %136, %137, %cst_22 {dimension_numbers = #tpu.dot_dimension_numbers<[1], [0], [0], [1], [0, 0, 1, 1], [], []>} : vector<16x128xbf16>, vector<128x160xbf16>, vector<16x160xf32> -> vector<16x160xf32>
    %139 = arith.truncf %134 : vector<16x128xf32> to vector<16x128xbf16>
    %140 = vector.extract_strided_slice %135 {offsets = [128, 0], sizes = [128, 160], strides = [1, 1]} : vector<256x160xbf16> to vector<128x160xbf16>
    %cst_23 = arith.constant dense<0.000000e+00> : vector<16x160xf32>
    %141 = tpu.matmul %139, %140, %cst_23 {dimension_numbers = #tpu.dot_dimension_numbers<[1], [0], [0], [1], [0, 0, 1, 1], [], []>} : vector<16x128xbf16>, vector<128x160xbf16>, vector<16x160xf32> -> vector<16x160xf32>
    %142 = arith.addf %138, %141 : vector<16x160xf32>
    %143 = tpu.iota {dimensions = array<i32: 0>} : vector<10x160xi32>
    %144 = tpu.iota {dimensions = array<i32: 1>} : vector<10x160xi32>
    %c16_i32 = arith.constant 16 : i32
    %145 = vector.broadcast %c16_i32 : i32 to vector<10x160xi32>
    %146 = arith.muli %143, %145 : vector<10x160xi32>
    %147 = arith.cmpi sge, %144, %146 : vector<10x160xi32>
    %c1_i32 = arith.constant 1 : i32
    %148 = vector.broadcast %c1_i32 : i32 to vector<10x160xi32>
    %149 = arith.addi %143, %148 : vector<10x160xi32>
    %c16_i32_24 = arith.constant 16 : i32
    %150 = vector.broadcast %c16_i32_24 : i32 to vector<10x160xi32>
    %151 = arith.muli %149, %150 : vector<10x160xi32>
    %152 = arith.cmpi slt, %144, %151 : vector<10x160xi32>
    %153 = arith.andi %147, %152 : vector<10x160xi1>
    %154 = arith.extui %153 : vector<10x160xi1> to vector<10x160xi32>
    %155 = arith.sitofp %154 : vector<10x160xi32> to vector<10x160xf32>
    %156 = tpu.iota {dimensions = array<i32: 0>} : vector<160x10xi32>
    %157 = tpu.iota {dimensions = array<i32: 1>} : vector<160x10xi32>
    %c16_i32_25 = arith.constant 16 : i32
    %158 = vector.broadcast %c16_i32_25 : i32 to vector<160x10xi32>
    %159 = arith.muli %157, %158 : vector<160x10xi32>
    %160 = arith.cmpi sge, %156, %159 : vector<160x10xi32>
    %c1_i32_26 = arith.constant 1 : i32
    %161 = vector.broadcast %c1_i32_26 : i32 to vector<160x10xi32>
    %162 = arith.addi %157, %161 : vector<160x10xi32>
    %c16_i32_27 = arith.constant 16 : i32
    %163 = vector.broadcast %c16_i32_27 : i32 to vector<160x10xi32>
    %164 = arith.muli %162, %163 : vector<160x10xi32>
    %165 = arith.cmpi slt, %156, %164 : vector<160x10xi32>
    %166 = arith.andi %160, %165 : vector<160x10xi1>
    %167 = arith.extui %166 : vector<160x10xi1> to vector<160x10xi32>
    %168 = arith.sitofp %167 : vector<160x10xi32> to vector<160x10xf32>
    %169 = tpu.iota {dimensions = array<i32: 0>} : vector<2x16xi32>
    %170 = tpu.iota {dimensions = array<i32: 1>} : vector<2x16xi32>
    %c8_i32 = arith.constant 8 : i32
    %171 = vector.broadcast %c8_i32 : i32 to vector<2x16xi32>
    %172 = arith.muli %169, %171 : vector<2x16xi32>
    %173 = arith.cmpi sge, %170, %172 : vector<2x16xi32>
    %c1_i32_28 = arith.constant 1 : i32
    %174 = vector.broadcast %c1_i32_28 : i32 to vector<2x16xi32>
    %175 = arith.addi %169, %174 : vector<2x16xi32>
    %c8_i32_29 = arith.constant 8 : i32
    %176 = vector.broadcast %c8_i32_29 : i32 to vector<2x16xi32>
    %177 = arith.muli %175, %176 : vector<2x16xi32>
    %178 = arith.cmpi slt, %170, %177 : vector<2x16xi32>
    %179 = arith.andi %173, %178 : vector<2x16xi1>
    %180 = arith.extui %179 : vector<2x16xi1> to vector<2x16xi32>
    %181 = arith.sitofp %180 : vector<2x16xi32> to vector<2x16xf32>
    %182 = tpu.iota {dimensions = array<i32: 0>} : vector<16x2xi32>
    %183 = tpu.iota {dimensions = array<i32: 1>} : vector<16x2xi32>
    %c8_i32_30 = arith.constant 8 : i32
    %184 = vector.broadcast %c8_i32_30 : i32 to vector<16x2xi32>
    %185 = arith.muli %183, %184 : vector<16x2xi32>
    %186 = arith.cmpi sge, %182, %185 : vector<16x2xi32>
    %c1_i32_31 = arith.constant 1 : i32
    %187 = vector.broadcast %c1_i32_31 : i32 to vector<16x2xi32>
    %188 = arith.addi %183, %187 : vector<16x2xi32>
    %c8_i32_32 = arith.constant 8 : i32
    %189 = vector.broadcast %c8_i32_32 : i32 to vector<16x2xi32>
    %190 = arith.muli %188, %189 : vector<16x2xi32>
    %191 = arith.cmpi slt, %182, %190 : vector<16x2xi32>
    %192 = arith.andi %186, %191 : vector<16x2xi1>
    %193 = arith.extui %192 : vector<16x2xi1> to vector<16x2xi32>
    %194 = arith.sitofp %193 : vector<16x2xi32> to vector<16x2xf32>
    %cst_33 = arith.constant 0.000000e+00 : f32
    %195 = vector.broadcast %cst_33 : f32 to vector<16x10xf32>
    %cst_34 = arith.constant dense<0xFF800000> : vector<16xf32>
    %196 = vector.multi_reduction <maximumf>, %195, %cst_34 [1] : vector<16x10xf32> to vector<16xf32>
    %197 = vector.shape_cast %196 : vector<16xf32> to vector<16x1xf32>
    %198 = vector.broadcast %197 : vector<16x1xf32> to vector<16x10xf32>
    %199 = arith.subf %195, %198 : vector<16x10xf32>
    %200 = math.exp %199 : vector<16x10xf32>
    %cst_35 = arith.constant dense<0.000000e+00> : vector<16xf32>
    %201 = vector.multi_reduction <add>, %200, %cst_35 [1] : vector<16x10xf32> to vector<16xf32>
    %202 = vector.shape_cast %201 : vector<16xf32> to vector<16x1xf32>
    %203 = vector.broadcast %202 : vector<16x1xf32> to vector<16x10xf32>
    %204 = arith.divf %200, %203 : vector<16x10xf32>
    %cst_36 = arith.constant dense<0.000000e+00> : vector<16x160xf32>
    %205 = tpu.matmul %204, %155, %cst_36 {dimension_numbers = #tpu.dot_dimension_numbers<[1], [0], [0], [1], [0, 0, 1, 1], [], []>} : vector<16x10xf32>, vector<10x160xf32>, vector<16x160xf32> -> vector<16x160xf32>
    %206 = arith.mulf %205, %142 : vector<16x160xf32>
    %cst_37 = arith.constant dense<0.000000e+00> : vector<2x160xf32>
    %207 = tpu.matmul %181, %206, %cst_37 {dimension_numbers = #tpu.dot_dimension_numbers<[1], [0], [0], [1], [0, 0, 1, 1], [], []>} : vector<2x16xf32>, vector<16x160xf32>, vector<2x160xf32> -> vector<2x160xf32>
    %208 = arith.mulf %207, %207 : vector<2x160xf32>
    %cst_38 = arith.constant dense<0.000000e+00> : vector<2x10xf32>
    %209 = tpu.matmul %208, %168, %cst_38 {dimension_numbers = #tpu.dot_dimension_numbers<[1], [0], [0], [1], [0, 0, 1, 1], [], []>} : vector<2x160xf32>, vector<160x10xf32>, vector<2x10xf32> -> vector<2x10xf32>
    %cst_39 = arith.constant 1.000000e-07 : f32
    %210 = vector.broadcast %cst_39 : f32 to vector<2x10xf32>
    %211 = arith.addf %209, %210 : vector<2x10xf32>
    %212 = math.rsqrt %211 : vector<2x10xf32>
    %cst_40 = arith.constant dense<0.000000e+00> : vector<2x160xf32>
    %213 = tpu.matmul %212, %155, %cst_40 {dimension_numbers = #tpu.dot_dimension_numbers<[1], [0], [0], [1], [0, 0, 1, 1], [], []>} : vector<2x10xf32>, vector<10x160xf32>, vector<2x160xf32> -> vector<2x160xf32>
    %214 = arith.mulf %207, %213 : vector<2x160xf32>
    %cst_41 = arith.constant dense<0.000000e+00> : vector<16x160xf32>
    %215 = tpu.matmul %194, %214, %cst_41 {dimension_numbers = #tpu.dot_dimension_numbers<[1], [0], [0], [1], [0, 0, 1, 1], [], []>} : vector<16x2xf32>, vector<2x160xf32>, vector<16x160xf32> -> vector<16x160xf32>
    %216 = arith.mulf %142, %215 : vector<16x160xf32>
    %cst_42 = arith.constant dense<0.000000e+00> : vector<16x10xf32>
    %217 = tpu.matmul %216, %168, %cst_42 {dimension_numbers = #tpu.dot_dimension_numbers<[1], [0], [0], [1], [0, 0, 1, 1], [], []>} : vector<16x160xf32>, vector<160x10xf32>, vector<16x10xf32> -> vector<16x10xf32>
    %cst_43 = arith.constant dense<0xFF800000> : vector<16xf32>
    %218 = vector.multi_reduction <maximumf>, %217, %cst_43 [1] : vector<16x10xf32> to vector<16xf32>
    %219 = vector.shape_cast %218 : vector<16xf32> to vector<16x1xf32>
    %220 = vector.broadcast %219 : vector<16x1xf32> to vector<16x10xf32>
    %221 = arith.subf %217, %220 : vector<16x10xf32>
    %222 = math.exp %221 : vector<16x10xf32>
    %cst_44 = arith.constant dense<0.000000e+00> : vector<16xf32>
    %223 = vector.multi_reduction <add>, %222, %cst_44 [1] : vector<16x10xf32> to vector<16xf32>
    %224 = vector.shape_cast %223 : vector<16xf32> to vector<16x1xf32>
    %225 = vector.broadcast %224 : vector<16x1xf32> to vector<16x10xf32>
    %226 = arith.divf %222, %225 : vector<16x10xf32>
    %cst_45 = arith.constant dense<0.000000e+00> : vector<16x160xf32>
    %227 = tpu.matmul %226, %155, %cst_45 {dimension_numbers = #tpu.dot_dimension_numbers<[1], [0], [0], [1], [0, 0, 1, 1], [], []>} : vector<16x10xf32>, vector<10x160xf32>, vector<16x160xf32> -> vector<16x160xf32>
    %228 = arith.mulf %227, %142 : vector<16x160xf32>
    %cst_46 = arith.constant dense<0.000000e+00> : vector<2x160xf32>
    %229 = tpu.matmul %181, %228, %cst_46 {dimension_numbers = #tpu.dot_dimension_numbers<[1], [0], [0], [1], [0, 0, 1, 1], [], []>} : vector<2x16xf32>, vector<16x160xf32>, vector<2x160xf32> -> vector<2x160xf32>
    %230 = arith.mulf %229, %229 : vector<2x160xf32>
    %cst_47 = arith.constant dense<0.000000e+00> : vector<2x10xf32>
    %231 = tpu.matmul %230, %168, %cst_47 {dimension_numbers = #tpu.dot_dimension_numbers<[1], [0], [0], [1], [0, 0, 1, 1], [], []>} : vector<2x160xf32>, vector<160x10xf32>, vector<2x10xf32> -> vector<2x10xf32>
    %cst_48 = arith.constant 1.000000e-07 : f32
    %232 = vector.broadcast %cst_48 : f32 to vector<2x10xf32>
    %233 = arith.addf %231, %232 : vector<2x10xf32>
    %234 = math.rsqrt %233 : vector<2x10xf32>
    %cst_49 = arith.constant dense<0.000000e+00> : vector<2x160xf32>
    %235 = tpu.matmul %234, %155, %cst_49 {dimension_numbers = #tpu.dot_dimension_numbers<[1], [0], [0], [1], [0, 0, 1, 1], [], []>} : vector<2x10xf32>, vector<10x160xf32>, vector<2x160xf32> -> vector<2x160xf32>
    %236 = arith.mulf %229, %235 : vector<2x160xf32>
    %cst_50 = arith.constant dense<0.000000e+00> : vector<16x160xf32>
    %237 = tpu.matmul %194, %236, %cst_50 {dimension_numbers = #tpu.dot_dimension_numbers<[1], [0], [0], [1], [0, 0, 1, 1], [], []>} : vector<16x2xf32>, vector<2x160xf32>, vector<16x160xf32> -> vector<16x160xf32>
    %238 = arith.mulf %142, %237 : vector<16x160xf32>
    %cst_51 = arith.constant dense<0.000000e+00> : vector<16x10xf32>
    %239 = tpu.matmul %238, %168, %cst_51 {dimension_numbers = #tpu.dot_dimension_numbers<[1], [0], [0], [1], [0, 0, 1, 1], [], []>} : vector<16x160xf32>, vector<160x10xf32>, vector<16x10xf32> -> vector<16x10xf32>
    %cst_52 = arith.constant dense<0xFF800000> : vector<16xf32>
    %240 = vector.multi_reduction <maximumf>, %239, %cst_52 [1] : vector<16x10xf32> to vector<16xf32>
    %241 = vector.shape_cast %240 : vector<16xf32> to vector<16x1xf32>
    %242 = vector.broadcast %241 : vector<16x1xf32> to vector<16x10xf32>
    %243 = arith.subf %239, %242 : vector<16x10xf32>
    %244 = math.exp %243 : vector<16x10xf32>
    %cst_53 = arith.constant dense<0.000000e+00> : vector<16xf32>
    %245 = vector.multi_reduction <add>, %244, %cst_53 [1] : vector<16x10xf32> to vector<16xf32>
    %246 = vector.shape_cast %245 : vector<16xf32> to vector<16x1xf32>
    %247 = vector.broadcast %246 : vector<16x1xf32> to vector<16x10xf32>
    %248 = arith.divf %244, %247 : vector<16x10xf32>
    %cst_54 = arith.constant dense<0.000000e+00> : vector<16x160xf32>
    %249 = tpu.matmul %248, %155, %cst_54 {dimension_numbers = #tpu.dot_dimension_numbers<[1], [0], [0], [1], [0, 0, 1, 1], [], []>} : vector<16x10xf32>, vector<10x160xf32>, vector<16x160xf32> -> vector<16x160xf32>
    %250 = arith.mulf %249, %142 : vector<16x160xf32>
    %cst_55 = arith.constant dense<0.000000e+00> : vector<2x160xf32>
    %251 = tpu.matmul %181, %250, %cst_55 {dimension_numbers = #tpu.dot_dimension_numbers<[1], [0], [0], [1], [0, 0, 1, 1], [], []>} : vector<2x16xf32>, vector<16x160xf32>, vector<2x160xf32> -> vector<2x160xf32>
    %252 = arith.mulf %251, %251 : vector<2x160xf32>
    %cst_56 = arith.constant dense<0.000000e+00> : vector<2x10xf32>
    %253 = tpu.matmul %252, %168, %cst_56 {dimension_numbers = #tpu.dot_dimension_numbers<[1], [0], [0], [1], [0, 0, 1, 1], [], []>} : vector<2x160xf32>, vector<160x10xf32>, vector<2x10xf32> -> vector<2x10xf32>
    %cst_57 = arith.constant 1.000000e-07 : f32
    %254 = vector.broadcast %cst_57 : f32 to vector<2x10xf32>
    %255 = arith.addf %253, %254 : vector<2x10xf32>
    %256 = math.rsqrt %255 : vector<2x10xf32>
    %cst_58 = arith.constant dense<0.000000e+00> : vector<2x160xf32>
    %257 = tpu.matmul %256, %155, %cst_58 {dimension_numbers = #tpu.dot_dimension_numbers<[1], [0], [0], [1], [0, 0, 1, 1], [], []>} : vector<2x10xf32>, vector<10x160xf32>, vector<2x160xf32> -> vector<2x160xf32>
    %258 = arith.mulf %251, %257 : vector<2x160xf32>
    %cst_59 = arith.constant dense<0.000000e+00> : vector<16x160xf32>
    %259 = tpu.matmul %194, %258, %cst_59 {dimension_numbers = #tpu.dot_dimension_numbers<[1], [0], [0], [1], [0, 0, 1, 1], [], []>} : vector<16x2xf32>, vector<2x160xf32>, vector<16x160xf32> -> vector<16x160xf32>
    %260 = arith.mulf %142, %259 : vector<16x160xf32>
    %cst_60 = arith.constant dense<0.000000e+00> : vector<16x10xf32>
    %261 = tpu.matmul %260, %168, %cst_60 {dimension_numbers = #tpu.dot_dimension_numbers<[1], [0], [0], [1], [0, 0, 1, 1], [], []>} : vector<16x160xf32>, vector<160x10xf32>, vector<16x10xf32> -> vector<16x10xf32>
    %cst_61 = arith.constant dense<0xFF800000> : vector<16xf32>
    %262 = vector.multi_reduction <maximumf>, %261, %cst_61 [1] : vector<16x10xf32> to vector<16xf32>
    %263 = vector.shape_cast %262 : vector<16xf32> to vector<16x1xf32>
    %264 = vector.broadcast %263 : vector<16x1xf32> to vector<16x10xf32>
    %265 = arith.subf %261, %264 : vector<16x10xf32>
    %266 = math.exp %265 : vector<16x10xf32>
    %cst_62 = arith.constant dense<0.000000e+00> : vector<16xf32>
    %267 = vector.multi_reduction <add>, %266, %cst_62 [1] : vector<16x10xf32> to vector<16xf32>
    %268 = vector.shape_cast %267 : vector<16xf32> to vector<16x1xf32>
    %269 = vector.broadcast %268 : vector<16x1xf32> to vector<16x10xf32>
    %270 = arith.divf %266, %269 : vector<16x10xf32>
    %cst_63 = arith.constant dense<0.000000e+00> : vector<16x160xf32>
    %271 = tpu.matmul %270, %155, %cst_63 {dimension_numbers = #tpu.dot_dimension_numbers<[1], [0], [0], [1], [0, 0, 1, 1], [], []>} : vector<16x10xf32>, vector<10x160xf32>, vector<16x160xf32> -> vector<16x160xf32>
    %272 = arith.mulf %271, %142 : vector<16x160xf32>
    %cst_64 = arith.constant dense<0.000000e+00> : vector<2x160xf32>
    %273 = tpu.matmul %181, %272, %cst_64 {dimension_numbers = #tpu.dot_dimension_numbers<[1], [0], [0], [1], [0, 0, 1, 1], [], []>} : vector<2x16xf32>, vector<16x160xf32>, vector<2x160xf32> -> vector<2x160xf32>
    %274 = arith.mulf %273, %273 : vector<2x160xf32>
    %cst_65 = arith.constant dense<0.000000e+00> : vector<2x10xf32>
    %275 = tpu.matmul %274, %168, %cst_65 {dimension_numbers = #tpu.dot_dimension_numbers<[1], [0], [0], [1], [0, 0, 1, 1], [], []>} : vector<2x160xf32>, vector<160x10xf32>, vector<2x10xf32> -> vector<2x10xf32>
    %cst_66 = arith.constant 1.000000e-07 : f32
    %276 = vector.broadcast %cst_66 : f32 to vector<2x10xf32>
    %277 = arith.addf %275, %276 : vector<2x10xf32>
    %278 = math.rsqrt %277 : vector<2x10xf32>
    %cst_67 = arith.constant dense<0.000000e+00> : vector<2x160xf32>
    %279 = tpu.matmul %278, %155, %cst_67 {dimension_numbers = #tpu.dot_dimension_numbers<[1], [0], [0], [1], [0, 0, 1, 1], [], []>} : vector<2x10xf32>, vector<10x160xf32>, vector<2x160xf32> -> vector<2x160xf32>
    %280 = arith.mulf %273, %279 : vector<2x160xf32>
    %cst_68 = arith.constant dense<0.000000e+00> : vector<16x160xf32>
    %281 = tpu.matmul %194, %280, %cst_68 {dimension_numbers = #tpu.dot_dimension_numbers<[1], [0], [0], [1], [0, 0, 1, 1], [], []>} : vector<16x2xf32>, vector<2x160xf32>, vector<16x160xf32> -> vector<16x160xf32>
    %282 = arith.mulf %142, %281 : vector<16x160xf32>
    %cst_69 = arith.constant dense<0.000000e+00> : vector<16x10xf32>
    %283 = tpu.matmul %282, %168, %cst_69 {dimension_numbers = #tpu.dot_dimension_numbers<[1], [0], [0], [1], [0, 0, 1, 1], [], []>} : vector<16x160xf32>, vector<160x10xf32>, vector<16x10xf32> -> vector<16x10xf32>
    %cst_70 = arith.constant dense<0xFF800000> : vector<16xf32>
    %284 = vector.multi_reduction <maximumf>, %283, %cst_70 [1] : vector<16x10xf32> to vector<16xf32>
    %285 = vector.shape_cast %284 : vector<16xf32> to vector<16x1xf32>
    %286 = vector.broadcast %285 : vector<16x1xf32> to vector<16x10xf32>
    %287 = arith.subf %283, %286 : vector<16x10xf32>
    %288 = math.exp %287 : vector<16x10xf32>
    %cst_71 = arith.constant dense<0.000000e+00> : vector<16xf32>
    %289 = vector.multi_reduction <add>, %288, %cst_71 [1] : vector<16x10xf32> to vector<16xf32>
    %290 = vector.shape_cast %289 : vector<16xf32> to vector<16x1xf32>
    %291 = vector.broadcast %290 : vector<16x1xf32> to vector<16x10xf32>
    %292 = arith.divf %288, %291 : vector<16x10xf32>
    %cst_72 = arith.constant dense<0.000000e+00> : vector<16x160xf32>
    %293 = tpu.matmul %292, %155, %cst_72 {dimension_numbers = #tpu.dot_dimension_numbers<[1], [0], [0], [1], [0, 0, 1, 1], [], []>} : vector<16x10xf32>, vector<10x160xf32>, vector<16x160xf32> -> vector<16x160xf32>
    %294 = arith.mulf %293, %142 : vector<16x160xf32>
    %cst_73 = arith.constant dense<0.000000e+00> : vector<2x160xf32>
    %295 = tpu.matmul %181, %294, %cst_73 {dimension_numbers = #tpu.dot_dimension_numbers<[1], [0], [0], [1], [0, 0, 1, 1], [], []>} : vector<2x16xf32>, vector<16x160xf32>, vector<2x160xf32> -> vector<2x160xf32>
    %296 = arith.mulf %295, %295 : vector<2x160xf32>
    %cst_74 = arith.constant dense<0.000000e+00> : vector<2x10xf32>
    %297 = tpu.matmul %296, %168, %cst_74 {dimension_numbers = #tpu.dot_dimension_numbers<[1], [0], [0], [1], [0, 0, 1, 1], [], []>} : vector<2x160xf32>, vector<160x10xf32>, vector<2x10xf32> -> vector<2x10xf32>
    %cst_75 = arith.constant 1.000000e-07 : f32
    %298 = vector.broadcast %cst_75 : f32 to vector<2x10xf32>
    %299 = arith.addf %297, %298 : vector<2x10xf32>
    %300 = math.rsqrt %299 : vector<2x10xf32>
    %cst_76 = arith.constant dense<0.000000e+00> : vector<2x160xf32>
    %301 = tpu.matmul %300, %155, %cst_76 {dimension_numbers = #tpu.dot_dimension_numbers<[1], [0], [0], [1], [0, 0, 1, 1], [], []>} : vector<2x10xf32>, vector<10x160xf32>, vector<2x160xf32> -> vector<2x160xf32>
    %302 = arith.mulf %295, %301 : vector<2x160xf32>
    %c0_77 = arith.constant 0 : index
    %c0_78 = arith.constant 0 : index
    %303 = vector.load %arg4[%c0_77, %c0_78] : memref<160x4xbf16, #tpu.memory_space<vmem>>, vector<160x4xbf16>
    %304 = arith.extf %303 : vector<160x4xbf16> to vector<160x4xf32>
    %cst_79 = arith.constant dense<0.000000e+00> : vector<2x4xf32>
    %305 = tpu.matmul %302, %304, %cst_79 {dimension_numbers = #tpu.dot_dimension_numbers<[1], [0], [0], [1], [0, 0, 1, 1], [], []>} : vector<2x160xf32>, vector<160x4xf32>, vector<2x4xf32> -> vector<2x4xf32>
    %c0_80 = arith.constant 0 : index
    %c0_81 = arith.constant 0 : index
    %306 = vector.load %arg5[%c0_80, %c0_81] : memref<1x4xf32, #tpu.memory_space<vmem>>, vector<1x4xf32>
    %307 = vector.broadcast %306 : vector<1x4xf32> to vector<2x4xf32>
    %308 = arith.addf %305, %307 : vector<2x4xf32>
    %c0_82 = arith.constant 0 : index
    %c0_83 = arith.constant 0 : index
    %309 = vector.load %arg6[%c0_82, %c0_83] : memref<2x4xf32, #tpu.memory_space<vmem>>, vector<2x4xf32>
    tpu.vector_store %arg6[%c0_82, %c0_83], %308 {strides = array<i32>} : memref<2x4xf32, #tpu.memory_space<vmem>>, vector<2x4xf32>,
    return
  }
}

</mosaic_0001>

<bundles_post_ra>
// kernel: capsule_forward.1
= control target key start
LH: loop header
LB: loop body
LE: loop exit
PB: predicated region body
PF: predicated region fallthrough
CT: control target
= control target key end

     0   :  { %11 = vsyncpa [#allocation3], 0  ;;  %s6385_s0 = inlined_call_operand.vmem [shape: s32[16,1], index: 0, kind: input, shape index: {}]   ;;  %s6386_s1 = inlined_call_operand.hbm [shape: bf16[50,768], index: 1, kind: input, shape index: {}]   ;;  %s6387_s2 = inlined_call_operand.vmem [shape: bf16[256,384], index: 2, kind: input, shape index: {}]   ;;  %s6388_s3 = inlined_call_operand.vmem [shape: bf16[256,160], index: 3, kind: input, shape index: {}]   ;;  %s6389_s4 = inlined_call_operand.vmem [shape: bf16[160,4], index: 4, kind: input, shape index: {}]   ;;  %s6390_s5 = inlined_call_operand.vmem [shape: f32[1,4], index: 5, kind: input, shape index: {}]   ;;  %s6391_s6 = inlined_call_operand.hbm [shape: f32[2,4], index: 6, kind: output, shape index: {}]  }
   0x1   :  { %12 = vsyncpa [#allocation4], 0  ;;  %s4621_s21 = smov [#allocation2]  }
   0x2   :  { %s20_s22 = sshll.u32 %s4621_s21, 4  ;;  %s21_s22 = int_to_ptr.vmem [resolvable:$true] %s20_s22 }
   0x3   :  { %s4585_s23 = scalar_lea.vmem %s21_s22, 2688  ;;  %p4590_p1 = scmp.lt.s32.totalorder %s21_s22, %s21_s22 }
   0x4   :  { %p4586_p0 = scmp.ne.s32.totalorder %s21_s22, %s4585_s23  ;;  %p4591_p2 = scmp.lt.s32.totalorder %s4585_s23, %s4585_s23 }
   0x6   :  { %p4592_p3 = por %p4591_p2, %p4590_p1 }
   0x8   :  { %p4593_p4 = pnand %p4592_p3, %p4586_p0 }
   0xa   :  { %4596 = shalt.err (!%p4593_p4)
}
   0xb   :  { %s4622_s24 = smov 384   ;;  %s4623_s25 = smov 24  }
   0xc   :  { %26 = dma.hbm_to_vmem [thread:$0]  %s6386_s1, 2688, %s21_s22, [#allocation3], %s4622_s24, %s4622_s24, %s4623_s25  }
   0xd   :  { %4617 = dma.done.wait [#allocation3], 2688  }
   0xe   :  { %4618 = vsyncadd [#allocation3], 4294964608  ;;  %v4624_v0 = vmov 0   ;;  %v39_v1 = vld [vmem:[%s6385_s0] sm:$0xff]  ;;  %v40_v2 = vld [vmem:[%s6385_s0 + $0x8] sm:$0xff]  ;;  %vm186_vm0 = vcmask 1040384   ;;  %v41_v28 = vlaneseq }
   0xf   :  { %4347 = vset.pattern.permute.xlu0 %v4624_v0  ;;  %237 = vmatprep.mubr.bf16.mxu0 %v4624_v0  ;;  %v74_v3 = vld [vmem:[#allocation2 + $0x90] sm:$0x11]  ;;  %v75_v5 = vld [vmem:[#allocation2 + $0x98] sm:$0x11]  ;;  %v4354_v11 = vld [vmem:[#allocation2 + $0x6c] ss:$24 sps:$4 sm:$0xff]  }
  0x10   :  { %280 = vmatprep.mubr.bf16.mxu1 %v4624_v0  ;;  %44 = vperm.xlu0 %4347, %v39_v1   ;;  %v3849_v4 = vcombine.high %v74_v3, %v74_v3  ;;  %v3848_v6 = vcombine.low %v74_v3, %v74_v3  ;;  %v3851_v7 = vcombine.high %v75_v5, %v75_v5  ;;  %v4352_v9 = vld [vmem:[#allocation2 + $0x64] ss:$24 sps:$4 sm:$0xff]   ;;  %v4356_v13 = vld [vmem:[#allocation2 + $0x60] ss:$24 sps:$4 sm:$0xff]   ;;  %v4358_v15 = vld [vmem:[#allocation2 + $0x34] ss:$24 sps:$4 sm:$0xff]  }
  0x11   :  { %v3850_v8 = vcombine.low %v75_v5, %v75_v5  ;;  %v4357_v14 = vld [vmem:[#allocation2 + $0x68] ss:$24 sps:$4 sm:$0xff]   ;;  %v4360_v16 = vld [vmem:[#allocation2 + $0x3c] ss:$24 sps:$4 sm:$0xff]   ;;  %v4363_v18 = vld [vmem:[#allocation2 + $0x38] ss:$24 sps:$4 sm:$0xff]  }
  0x12   :  { %3854 = vmatprep.subr.msk.bf16.mxu0 %vm186_vm0, %v3849_v4  ;;  %v188_v10 = vsel %vm186_vm0, %v3848_v6, 0  ;;  %3856 = vmatprep.subr.msk.bf16.mxu1 %vm186_vm0, %v3851_v7  ;;  %v4362_v17 = vld [vmem:[#allocation2 + $0x30] ss:$24 sps:$4 sm:$0xff]   ;;  %v4364_v19 = vld [vmem:[#allocation2 + $0x4] ss:$24 sps:$4 sm:$0xff]   ;;  %v4689_v29 = vand.u32 127, %v41_v28 }
  0x13   :  { %214 = vmatpush1.bf16.msra.mxu0 %v188_v10  ;;  %v194_v12 = vsel %vm186_vm0, %v3850_v8, 0  ;;  %v76_v20 = vld [vmem:[#allocation2 + $0xa0] sm:$0x11]  ;;  %v4684_v27 = vld [vmem:[%s6387_s2 + $0xac] ss:$12 sps:$4 sm:$0xff]   ;;  %v4625_v32 = vmov 0.0  }
  0x14   :  { %47 = vperm.xlu0 %4347, %v40_v2   ;;  %257 = vmatpush1.bf16.msra.mxu1 %v194_v12  ;;  %v4366_v21 = vld [vmem:[#allocation2 + $0xc] ss:$24 sps:$4 sm:$0xff]   ;;  %v3852_v22 = vcombine.low %v76_v20, %v76_v20  ;;  %v4368_v23 = vld [vmem:[#allocation2] ss:$24 sps:$4 sm:$0xff]   ;;  %v3853_v26 = vcombine.high %v76_v20, %v76_v20  ;;  %v4698_v35 = vld [vmem:[%s6387_s2 + $0xa8] ss:$12 sps:$4 sm:$0xff]  }
  0x15   :  { %215 = vmatprep.subr.bf16.mxu0 %v4352_v9  ;;  %258 = vmatprep.subr.bf16.mxu1 %v4354_v11  ;;  %v4369_v25 = vld [vmem:[#allocation2 + $0x8] ss:$24 sps:$4 sm:$0xff]   ;;  %vm182_vm3 = vcmask 408576   ;;  %v4377_v37 = vld [vmem:[#allocation2 + $0x74] ss:$24 sps:$4 sm:$0xff]   ;;  %v4626_v43 = vmov 0.0|0.0  }
  0x16   :  { %v200_v24 = vsel %vm186_vm0, %v3852_v22, 0  ;;  %v4703_v38 = vld [vmem:[%s6387_s2 + $0x94] ss:$12 sps:$4 sm:$0xff]   ;;  %v4375_v39 = vld [vmem:[#allocation2 + $0x70] ss:$24 sps:$4 sm:$0xff]   ;;  %vm6392_vm4 = vcmask 80896  }
  0x17   :  { %216 = vmatpush1.bf16.msra.mxu0 %v4356_v13  ;;  %v4711_v40 = vld [vmem:[%s6387_s2 + $0x90] ss:$12 sps:$4 sm:$0xff]   ;;  %v4381_v44 = vld [vmem:[#allocation2 + $0x40] ss:$24 sps:$4 sm:$0xff]   ;;  %v4389_v46 = vld [vmem:[#allocation2 + $0x14] ss:$24 sps:$4 sm:$0xff]  }
  0x18   :  { %259 = vmatpush1.bf16.msra.mxu1 %v4357_v14  ;;  %217 = vmatprep.subr.bf16.mxu0 %v4358_v15  ;;  %v4383_v41 = vld [vmem:[#allocation2 + $0x44] ss:$24 sps:$4 sm:$0xff]   ;;  %v4387_v48 = vld [vmem:[#allocation2 + $0x10] ss:$24 sps:$4 sm:$0xff]   ;;  %v4737_v49 = vld [vmem:[%s6387_s2 + $0x60] ss:$12 sps:$4 sm:$0xff]  }
  0x19   :  { %260 = vmatprep.subr.bf16.mxu1 %v4360_v16  ;;  %v4717_v42 = vld [vmem:[%s6387_s2 + $0x7c] ss:$12 sps:$4 sm:$0xff]   ;;  %v4725_v45 = vld [vmem:[%s6387_s2 + $0x78] ss:$12 sps:$4 sm:$0xff]   ;;  %v4765_v54 = vld [vmem:[%s6387_s2 + $0x34] ss:$12 sps:$4 sm:$0xff]  }
  0x1a   :  { %v4731_v47 = vld [vmem:[%s6387_s2 + $0x64] ss:$12 sps:$4 sm:$0xff]   ;;  %v4743_v50 = vld [vmem:[%s6387_s2 + $0x4c] ss:$12 sps:$4 sm:$0xff]   ;;  %v4754_v52 = vld [vmem:[%s6387_s2 + $0x48] ss:$12 sps:$4 sm:$0xff]  }
  0x1b   :  { %218 = vmatpush1.bf16.msra.mxu0 %v4362_v17  ;;  %v4748_v51 = vld [vmem:[%s6387_s2 + $0x170] ss:$12 sps:$4 sm:$0xff]   ;;  %v4771_v55 = vld [vmem:[%s6387_s2 + $0x158] ss:$12 sps:$4 sm:$0xff]   ;;  %v4796_v59 = vld [vmem:[%s6387_s2 + $0x140] ss:$12 sps:$4 sm:$0xff]  }
  0x1c   :  { %261 = vmatpush1.bf16.msra.mxu1 %v4363_v18  ;;  %219 = vmatprep.subr.bf16.mxu0 %v4364_v19  ;;  %v4759_v53 = vld [vmem:[%s6387_s2 + $0xb0] ss:$12 sps:$4 sm:$0xff]   ;;  %v4784_v57 = vld [vmem:[%s6387_s2 + $0x98] ss:$12 sps:$4 sm:$0xff]   ;;  %v4809_v61 = vld [vmem:[%s6387_s2 + $0x80] ss:$12 sps:$4 sm:$0xff]  }
  0x1d   :  { %262 = vmatprep.subr.bf16.mxu1 %v4366_v21  ;;  %v4778_v56 = vld [vmem:[%s6387_s2 + $0x30] ss:$12 sps:$4 sm:$0xff]   ;;  %v4803_v60 = vld [vmem:[%s6387_s2 + $0x18] ss:$12 sps:$4 sm:$0xff]   ;;  %v4821_v63 = vld [vmem:[%s6387_s2 + $0x128] ss:$12 sps:$4 sm:$0xff]  }
  0x1e   :  { %v4790_v58 = vld [vmem:[%s6387_s2 + $0x1c] ss:$12 sps:$4 sm:$0xff]   ;;  %v4815_v62 = vld [vmem:[%s6387_s2 + $0x4] ss:$12 sps:$4 sm:$0xff]   ;;  %v4827_v1 = vld [vmem:[%s6387_s2] ss:$12 sps:$4 sm:$0xff]  }
  0x1f   :  { %220 = vmatpush1.bf16.msra.mxu0 %v4368_v23  ;;  %v4833_v2 = vld [vmem:[%s6387_s2 + $0x68] ss:$12 sps:$4 sm:$0xff]   ;;  %v4839_v3 = vld [vmem:[%s6387_s2 + $0x16c] ss:$12 sps:$4 sm:$0xff]   ;;  %v4845_v4 = vld [vmem:[%s6387_s2 + $0x110] ss:$12 sps:$4 sm:$0xff]  }
  0x20   :  { %263 = vmatpush1.bf16.msra.mxu1 %v4369_v25  ;;  %3858 = vmatprep.subr.msk.bf16.mxu0 %vm186_vm0, %v3853_v26  ;;  %v4851_v5 = vld [vmem:[%s6387_s2 + $0x168] ss:$12 sps:$4 sm:$0xff]   ;;  %v4857_v6 = vld [vmem:[%s6387_s2 + $0x50] ss:$12 sps:$4 sm:$0xff]   ;;  %v4869_v8 = vld [vmem:[%s6387_s2 + $0xf8] ss:$12 sps:$4 sm:$0xff]  }
  0x21   :  { %655 = vmatprep.subr.bf16.mxu1 %v4684_v27  ;;  %v4863_v7 = vld [vmem:[%s6387_s2 + $0x154] ss:$12 sps:$4 sm:$0xff]   ;;  %v4875_v9 = vld [vmem:[%s6387_s2 + $0x150] ss:$12 sps:$4 sm:$0xff]   ;;  %v4881_v10 = vld [vmem:[%s6387_s2 + $0x38] ss:$12 sps:$4 sm:$0xff]  }
  0x22   :  { %v4887_v11 = vld [vmem:[%s6387_s2 + $0x13c] ss:$12 sps:$4 sm:$0xff]   ;;  %v4893_v12 = vld [vmem:[%s6387_s2 + $0xe0] ss:$12 sps:$4 sm:$0xff]   ;;  %v4899_v13 = vld [vmem:[%s6387_s2 + $0x138] ss:$12 sps:$4 sm:$0xff]  }
  0x23   :  { %v4905_v14 = vld [vmem:[%s6387_s2 + $0x20] ss:$12 sps:$4 sm:$0xff]   ;;  %v4911_v15 = vld [vmem:[%s6387_s2 + $0x124] ss:$12 sps:$4 sm:$0xff]   ;;  %v4917_v16 = vld [vmem:[%s6387_s2 + $0xc8] ss:$12 sps:$4 sm:$0xff]  }
  0x24   :  { %v4414_v17 = vld [vmem:[%s6387_s2 + $0x120] ss:$12 sps:$4 sm:$0xff]   ;;  %v4444_v18 = vld [vmem:[%s6387_s2 + $0x8] ss:$12 sps:$4 sm:$0xff]   ;;  %v4420_v22 = vld [vmem:[%s6387_s2 + $0xf0] ss:$12 sps:$4 sm:$0xff]  }
  0x25   :  { %v4419_v19 = vld [vmem:[%s6387_s2 + $0x10c] ss:$12 sps:$4 sm:$0xff]   ;;  %v4417_v20 = vld [vmem:[%s6387_s2 + $0x108] ss:$12 sps:$4 sm:$0xff]   ;;  %v4430_v25 = vld [vmem:[%s6387_s2 + $0xc4] ss:$12 sps:$4 sm:$0xff]  }
  0x26   :  { %v4422_v21 = vld [vmem:[%s6387_s2 + $0xf4] ss:$12 sps:$4 sm:$0xff]   ;;  %v4425_v23 = vld [vmem:[%s6387_s2 + $0xdc] ss:$12 sps:$4 sm:$0xff]   ;;  %vm6393_vm5 = vcmask 1041408   ;;  %s4628_s26 = smov [#allocation5]  }
  0x27   :  { %v4428_v26 = vld [vmem:[%s6387_s2 + $0xc0] ss:$12 sps:$4 sm:$0xff]   ;;  %s3819_s27 = sshll.u32 %s4628_s26, 4  ;;  %s3820_s27 = int_to_ptr.vmem [resolvable:$true] %s3819_s27 }
  0x28   :  { %s4597_s28 = scalar_lea.vmem %s3820_s27, 32  ;;  %p4602_p6 = scmp.lt.s32.totalorder %s3820_s27, %s3820_s27 }
  0x29   :  { %p4598_p5 = scmp.ne.s32.totalorder %s3820_s27, %s4597_s28  ;;  %p4603_p7 = scmp.lt.s32.totalorder %s4597_s28, %s4597_s28 }
  0x2b   :  { %p4604_p8 = por %p4603_p7, %p4602_p6 }
  0x2d   :  { %p4605_p9 = pnand %p4604_p8, %p4598_p5 }
  0x8b   :  { %v45_v30 = vpop.permute.xlu0 %44 }
  0x8c   :  { %vm49_vm1 = vcmp.eq.s32.totalorder %v45_v30, %v4689_v29 }
  0x8d   :  { %v3828_v33 = vsel %vm49_vm1, 1.0, %v4625_v32 }
  0x8f   :  { %v48_v31 = vpop.permute.xlu0 %47 }
  0x90   :  { %vm50_vm2 = vcmp.eq.s32.totalorder %v48_v31, %v4689_v29 }
  0x91   :  { %v3829_v34 = vsel %vm50_vm2, 1.0, %v4625_v32 }
  0x92   :  { %v55_v36 = vpack.c.bf16 %v3829_v34, %v3828_v33 }
  0x94   :  { %3855 = vmatmul.mubr.msk.bf16.vlgmr.msra.gmra.mxu0 %vm182_vm3, %v55_v36  ;;  %3857 = vmatmul.mubr.msk.bf16.vlgmr.msra.gmra.mxu1 %vm182_vm3, %v55_v36 }
  0x95   :  { %300 = vmatpush1.bf16.msra.mxu0 %v200_v24  ;;  %656 = vmatpush1.bf16.msra.mxu1 %v4698_v35  ;;  %v4423_v24 = vld [vmem:[%s6387_s2 + $0xd8] ss:$12 sps:$4 sm:$0xff]  }
  0x96   :  { %301 = vmatprep.subr.bf16.mxu0 %v4377_v37  ;;  %657 = vmatprep.subr.bf16.mxu1 %v4703_v38 }
  0x97   :  { %323 = vmatprep.mubr.bf16.mxu0 %v4624_v0  ;;  %687 = vmatprep.mubr.bf16.mxu1 %v4626_v43 }
  0x99   :  { %302 = vmatpush1.bf16.msra.mxu0 %v4375_v39  ;;  %658 = vmatpush1.bf16.msra.mxu1 %v4711_v40 }
  0x9a   :  { %303 = vmatprep.subr.bf16.mxu0 %v4383_v41  ;;  %659 = vmatprep.subr.bf16.mxu1 %v4717_v42 }
  0x9d   :  { %304 = vmatpush1.bf16.msra.mxu0 %v4381_v44  ;;  %660 = vmatpush1.bf16.msra.mxu1 %v4725_v45 }
  0x9e   :  { %305 = vmatprep.subr.bf16.mxu0 %v4389_v46  ;;  %661 = vmatprep.subr.bf16.mxu1 %v4731_v47 }
  0xa1   :  { %306 = vmatpush1.bf16.msra.mxu0 %v4387_v48  ;;  %662 = vmatpush1.bf16.msra.mxu1 %v4737_v49 }
  0xa2   :  { %663 = vmatprep.subr.bf16.mxu1 %v4743_v50  ;;  %4295 = vmatprep.subr.bf16.mxu0 %v4748_v51 }
  0xa4   :  { %3859 = vmatmul.mubr.msk.bf16.vlgmr.msra.gmra.mxu0 %vm182_vm3, %v55_v36 }
  0xa5   :  { %664 = vmatpush1.bf16.msra.mxu1 %v4754_v52  ;;  %4296 = vmatpush3.bf16.msra.mxu0 %v4759_v53 }
  0xa6   :  { %665 = vmatprep.subr.bf16.mxu1 %v4765_v54  ;;  %4297 = vmatprep.subr.bf16.mxu0 %v4771_v55 }
  0xa7   :  { %730 = vmatprep.mubr.bf16.mxu0 %v4626_v43 }
  0xa9   :  { %666 = vmatpush1.bf16.msra.mxu1 %v4778_v56  ;;  %4298 = vmatpush3.bf16.msra.mxu0 %v4784_v57 }
  0xaa   :  { %667 = vmatprep.subr.bf16.mxu1 %v4790_v58  ;;  %4299 = vmatprep.subr.bf16.mxu0 %v4796_v59 }
  0xad   :  { %668 = vmatpush1.bf16.msra.mxu1 %v4803_v60  ;;  %4300 = vmatpush3.bf16.msra.mxu0 %v4809_v61 }
  0xae   :  { %669 = vmatprep.subr.bf16.mxu1 %v4815_v62  ;;  %4301 = vmatprep.subr.bf16.mxu0 %v4821_v63 }
  0xb1   :  { %670 = vmatpush1.bf16.msra.mxu1 %v4827_v1  ;;  %4302 = vmatpush3.bf16.msra.mxu0 %v4833_v2 }
  0xb2   :  { %671 = vmatprep.subr.bf16.mxu1 %v4839_v3  ;;  %4303 = vmatprep.subr.bf16.mxu0 %v4845_v4 }
  0xb5   :  { %672 = vmatpush2.bf16.msra.mxu1 %v4851_v5  ;;  %4304 = vmatpush3.bf16.msra.mxu0 %v4857_v6 }
  0xb6   :  { %673 = vmatprep.subr.bf16.mxu1 %v4863_v7  ;;  %4305 = vmatprep.subr.bf16.mxu0 %v4869_v8 }
  0xb9   :  { %674 = vmatpush2.bf16.msra.mxu1 %v4875_v9  ;;  %4306 = vmatpush3.bf16.msra.mxu0 %v4881_v10 }
  0xba   :  { %675 = vmatprep.subr.bf16.mxu1 %v4887_v11  ;;  %4307 = vmatprep.subr.bf16.mxu0 %v4893_v12 }
  0xbd   :  { %676 = vmatpush2.bf16.msra.mxu1 %v4899_v13  ;;  %4308 = vmatpush3.bf16.msra.mxu0 %v4905_v14 }
  0xbe   :  { %677 = vmatprep.subr.bf16.mxu1 %v4911_v15  ;;  %4309 = vmatprep.subr.bf16.mxu0 %v4917_v16 }
  0xc1   :  { %678 = vmatpush2.bf16.msra.mxu1 %v4414_v17  ;;  %4310 = vmatpush3.bf16.msra.mxu0 %v4444_v18 }
  0xc2   :  { %679 = vmatprep.subr.bf16.mxu1 %v4419_v19  ;;  %783 = vmatprep.subr.bf16.mxu0 %v4684_v27  ;;  %v1360_v27 = vsel %vm6392_vm4, 1.0, %v4625_v32 }
  0xc3   :  { %1361 = vadd.xlane.f32.xlu1 %v1360_v27  ;;  %v4445_v27 = vld [vmem:[%s6388_s3 + $0x70] ss:$8 sps:$4 sm:$0xff]  }
  0xc4   :  { %731 = vmatmul.mubr.bf16.vlgmr.msra.gmra.mxu0 %v4626_v43 }
  0xc5   :  { %680 = vmatpush2.bf16.msra.mxu1 %v4417_v20  ;;  %784 = vmatpush1.bf16.msra.mxu0 %v4698_v35 }
  0xc6   :  { %681 = vmatprep.subr.bf16.mxu1 %v4422_v21  ;;  %785 = vmatprep.subr.bf16.mxu0 %v4703_v38 }
  0xc9   :  { %682 = vmatpush2.bf16.msra.mxu1 %v4420_v22  ;;  %786 = vmatpush1.bf16.msra.mxu0 %v4711_v40 }
  0xca   :  { %683 = vmatprep.subr.bf16.mxu1 %v4425_v23  ;;  %787 = vmatprep.subr.bf16.mxu0 %v4717_v42 }
  0xcd   :  { %684 = vmatpush2.bf16.msra.mxu1 %v4423_v24  ;;  %788 = vmatpush1.bf16.msra.mxu0 %v4725_v45 }
  0xce   :  { %685 = vmatprep.subr.bf16.mxu1 %v4430_v25  ;;  %789 = vmatprep.subr.bf16.mxu0 %v4731_v47 }
  0xd1   :  { %686 = vmatpush2.bf16.msra.mxu1 %v4428_v26  ;;  %790 = vmatpush1.bf16.msra.mxu0 %v4737_v49 }
  0xd2   :  { %791 = vmatprep.subr.bf16.mxu0 %v4743_v50  ;;  %4317 = vmatprep.subr.bf16.mxu1 %v4748_v51 }
  0xd4   :  { %688 = vmatmul.mubr.bf16.vlgmr.msra.gmra.mxu1 %v4626_v43 }
  0xd5   :  { %792 = vmatpush1.bf16.msra.mxu0 %v4754_v52  ;;  %4318 = vmatpush3.bf16.msra.mxu1 %v4759_v53 }
  0xd6   :  { %793 = vmatprep.subr.bf16.mxu0 %v4765_v54  ;;  %4319 = vmatprep.subr.bf16.mxu1 %v4771_v55 }
  0xd9   :  { %794 = vmatpush1.bf16.msra.mxu0 %v4778_v56  ;;  %4320 = vmatpush3.bf16.msra.mxu1 %v4784_v57 }
  0xda   :  { %795 = vmatprep.subr.bf16.mxu0 %v4790_v58  ;;  %4321 = vmatprep.subr.bf16.mxu1 %v4796_v59 }
  0xdd   :  { %796 = vmatpush1.bf16.msra.mxu0 %v4803_v60  ;;  %4322 = vmatpush3.bf16.msra.mxu1 %v4809_v61 }
  0xde   :  { %797 = vmatprep.subr.bf16.mxu0 %v4815_v62  ;;  %4323 = vmatprep.subr.bf16.mxu1 %v4821_v63 }
  0xe1   :  { %798 = vmatpush1.bf16.msra.mxu0 %v4827_v1  ;;  %4324 = vmatpush3.bf16.msra.mxu1 %v4833_v2 }
  0xe2   :  { %799 = vmatprep.subr.bf16.mxu0 %v4839_v3  ;;  %4325 = vmatprep.subr.bf16.mxu1 %v4845_v4 }
  0xe5   :  { %800 = vmatpush2.bf16.msra.mxu0 %v4851_v5  ;;  %4326 = vmatpush3.bf16.msra.mxu1 %v4857_v6 }
  0xe6   :  { %801 = vmatprep.subr.bf16.mxu0 %v4863_v7  ;;  %4327 = vmatprep.subr.bf16.mxu1 %v4869_v8 }
  0xe9   :  { %802 = vmatpush2.bf16.msra.mxu0 %v4875_v9  ;;  %4328 = vmatpush3.bf16.msra.mxu1 %v4881_v10 }
  0xea   :  { %803 = vmatprep.subr.bf16.mxu0 %v4887_v11  ;;  %4329 = vmatprep.subr.bf16.mxu1 %v4893_v12 }
  0xed   :  { %804 = vmatpush2.bf16.msra.mxu0 %v4899_v13  ;;  %4330 = vmatpush3.bf16.msra.mxu1 %v4905_v14 }
  0xee   :  { %805 = vmatprep.subr.bf16.mxu0 %v4911_v15  ;;  %4331 = vmatprep.subr.bf16.mxu1 %v4917_v16 }
  0xf1   :  { %806 = vmatpush2.bf16.msra.mxu0 %v4414_v17  ;;  %4332 = vmatpush3.bf16.msra.mxu1 %v4444_v18 }
  0xf2   :  { %807 = vmatprep.subr.bf16.mxu0 %v4419_v19 }
  0xf5   :  { %808 = vmatpush2.bf16.msra.mxu0 %v4417_v20 }
  0xf6   :  { %809 = vmatprep.subr.bf16.mxu0 %v4422_v21 }
  0xf9   :  { %810 = vmatpush2.bf16.msra.mxu0 %v4420_v22 }
  0xfa   :  { %811 = vmatprep.subr.bf16.mxu0 %v4425_v23 }
  0xfd   :  { %812 = vmatpush2.bf16.msra.mxu0 %v4423_v24 }
  0xfe   :  { %813 = vmatprep.subr.bf16.mxu0 %v4430_v25 }
 0x101   :  { %814 = vmatpush2.bf16.msra.mxu0 %v4428_v26  ;;  %v4447_v26 = vld [vmem:[%s6388_s3 + $0x74] ss:$8 sps:$4 sm:$0xff]  }
 0x102   :  { %1146 = vmatprep.subr.bf16.mxu0 %v4447_v26 }
 0x154   :  { %v282_v30 = vpop.f32.mrf.mxu1  ;;  %v239_v31 = vpop.f32.mrf.mxu0 }
 0x156   :  { %v4995_v33 = vpop.f32.mrf.mxu1  ;;  %v241_v34 = vpop.f32.mrf.mxu0 }
 0x158   :  { %v4997_v35 = vpop.f32.mrf.mxu1  ;;  %v4999_v36 = vpop.f32.mrf.mxu0 }
 0x15a   :  { %v288_v37 = vpop.f32.mrf.mxu1  ;;  %v5001_v38 = vpop.f32.mrf.mxu0 }
 0x164   :  { %v5003_v40 = vpop.f32.mrf.mxu0 }
 0x166   :  { %v5005_v45 = vpop.f32.mrf.mxu0 }
 0x168   :  { %v329_v50 = vpop.f32.mrf.mxu0 }
 0x16a   :  { %v331_v56 = vpop.f32.mrf.mxu0 }
 0x184   :  { %v4311_v58 = vpop.f32.mrf.mxu0 }
 0x186   :  { %v4312_v60 = vpop.f32.mrf.mxu0 }
 0x187   :  { %v4313_v2 = vadd.f32 %v4312_v60, %v4311_v58  ;;  %v4478_v58 = vld [vmem:[%s6388_s3 + $0xa0] ss:$8 sps:$4 sm:$0xff]   ;;  %v4486_v60 = vld [vmem:[%s6388_s3 + $0x94] ss:$8 sps:$4 sm:$0xff]  }
 0x188   :  { %v4314_v62 = vpop.f32.mrf.mxu0 }
 0x18a   :  { %v4315_v5 = vpop.f32.mrf.mxu0 }
 0x18b   :  { %v4316_v8 = vadd.f32 %v4315_v5, %v4314_v62  ;;  %v4484_v62 = vld [vmem:[%s6388_s3 + $0x90] ss:$8 sps:$4 sm:$0xff]  }
 0x194   :  { %v689_v39 = vpop.f32.mrf.mxu1 }
 0x195   :  { %v739_v41 = vadd.f32 %v689_v39, %v239_v31  ;;  %v4453_v31 = vld [vmem:[%s6388_s3 + $0x64] ss:$8 sps:$4 sm:$0xff]   ;;  %v4459_v39 = vld [vmem:[%s6388_s3 + $0x54] ss:$8 sps:$4 sm:$0xff]  }
 0x196   :  { %v691_v42 = vpop.f32.mrf.mxu1 }
 0x197   :  { %v3908_v43 = vmul.f32 -1.442695, %v739_v41  ;;  %v746_v49 = vadd.f32 %v691_v42, %v241_v34  ;;  %v4451_v34 = vld [vmem:[%s6388_s3 + $0x60] ss:$8 sps:$4 sm:$0xff]   ;;  %v4457_v42 = vld [vmem:[%s6388_s3 + $0x50] ss:$8 sps:$4 sm:$0xff]  }
 0x198   :  { %v693_v44 = vpop.f32.mrf.mxu1  ;;  %v4454_v41 = vld [vmem:[%s6388_s3 + $0xe0] ss:$8 sps:$4 sm:$0xff]  }
 0x199   :  { %4493 = vpow2.f32 %v3908_v43  ;;  %v760_v46 = vadd.f32 %v693_v44, %v288_v37  ;;  %v3909_v52 = vmul.f32 -1.442695, %v746_v49  ;;  %v4456_v37 = vld [vmem:[%s6388_s3 + $0xe4] ss:$8 sps:$4 sm:$0xff]   ;;  %v4462_v43 = vld [vmem:[%s6388_s3 + $0xd4] ss:$8 sps:$4 sm:$0xff]  }
 0x19a   :  { %v695_v48 = vpop.f32.mrf.mxu1  ;;  %v4465_v44 = vld [vmem:[%s6388_s3 + $0x44] ss:$8 sps:$4 sm:$0xff]   ;;  %v4471_v49 = vld [vmem:[%s6388_s3 + $0x34] ss:$8 sps:$4 sm:$0xff]  }
 0x19b   :  { %v3910_v47 = vmul.f32 -1.442695, %v760_v46  ;;  %v767_v51 = vadd.f32 %v695_v48, %v329_v50  ;;  %v4460_v46 = vld [vmem:[%s6388_s3 + $0xd0] ss:$8 sps:$4 sm:$0xff]   ;;  %v4468_v48 = vld [vmem:[%s6388_s3 + $0xc4] ss:$8 sps:$4 sm:$0xff]  }
 0x19c   :  { %v4466_v50 = vld [vmem:[%s6388_s3 + $0xc0] ss:$8 sps:$4 sm:$0xff]  }
 0x19d   :  { %4495 = vpow2.f32 %v3910_v47  ;;  %v3911_v53 = vmul.f32 -1.442695, %v767_v51  ;;  %v4463_v47 = vld [vmem:[%s6388_s3 + $0x40] ss:$8 sps:$4 sm:$0xff]   ;;  %v4469_v51 = vld [vmem:[%s6388_s3 + $0x30] ss:$8 sps:$4 sm:$0xff]  }
 0x19e   :  { %4497 = vpow2.f32 %v3909_v52  ;;  %v4474_v52 = vld [vmem:[%s6388_s3 + $0xb4] ss:$8 sps:$4 sm:$0xff]  }
 0x19f   :  { %4499 = vpow2.f32 %v3911_v53  ;;  %v4472_v53 = vld [vmem:[%s6388_s3 + $0xb0] ss:$8 sps:$4 sm:$0xff]  }
 0x1a6   :  { %v4494_v54 = vpop.eup %4493 }
 0x1a7   :  { %v743_v55 = vadd.f32 1.0, %v4494_v54  ;;  %v4475_v54 = vld [vmem:[%s6388_s3 + $0x20] ss:$8 sps:$4 sm:$0xff]  }
 0x1a9   :  { %4501 = vrcp.f32 %v743_v55  ;;  %v4477_v55 = vld [vmem:[%s6388_s3 + $0x24] ss:$8 sps:$4 sm:$0xff]  }
 0x1aa   :  { %v4496_v57 = vpop.eup %4495 }
 0x1ab   :  { %v764_v59 = vadd.f32 1.0, %v4496_v57  ;;  %v4498_v61 = vpop.eup %4497  ;;  %v4483_v57 = vld [vmem:[%s6388_s3 + $0x14] ss:$8 sps:$4 sm:$0xff]  }
 0x1ac   :  { %v4500_v63 = vpop.eup %4499  ;;  %v750_v1 = vadd.f32 1.0, %v4498_v61  ;;  %v4489_v61 = vld [vmem:[%s6388_s3 + $0x4] ss:$8 sps:$4 sm:$0xff]  }
 0x1ad   :  { %4503 = vrcp.f32 %v764_v59  ;;  %v771_v4 = vadd.f32 1.0, %v4500_v63  ;;  %v4481_v59 = vld [vmem:[%s6388_s3 + $0x10] ss:$8 sps:$4 sm:$0xff]   ;;  %v4487_v63 = vld [vmem:[%s6388_s3] ss:$8 sps:$4 sm:$0xff]  }
 0x1ae   :  { %4505 = vrcp.f32 %v750_v1  ;;  %v4492_v1 = vld [vmem:[%s6388_s3 + $0x84] ss:$8 sps:$4 sm:$0xff]  }
 0x1af   :  { %4507 = vrcp.f32 %v771_v4 }
 0x1b6   :  { %v4502_v3 = vpop.eup %4501 }
 0x1b7   :  { %v753_v6 = vmul.f32 %v4502_v3, %v4313_v2  ;;  %v5111_v2 = vshrl.u32 %v41_v28, 7  ;;  %v4490_v3 = vld [vmem:[%s6388_s3 + $0x80] ss:$8 sps:$4 sm:$0xff]  }
 0x1b9   :  { %v754_v7 = vadd.f32 %v753_v6, %v282_v30  ;;  %v4450_v30 = vld [vmem:[%s6388_s3 + $0xf4] ss:$8 sps:$4 sm:$0xff]   ;;  %v5118_v4 = vadd.s32 8, %v5111_v2  ;;  %v5122_v6 = vadd.s32 128, %v4689_v29 }
 0x1ba   :  { %v4504_v9 = vpop.eup %4503  ;;  %1023 = vmatprep.subr.bf16.mxu1 %v4450_v30 }
 0x1bb   :  { %4509 = vtanh.f32 %v754_v7  ;;  %v774_v10 = vmul.f32 %v4504_v9, %v4316_v8  ;;  %v4506_v12 = vpop.eup %4505  ;;  %v1200_v5 = vadd.s32 1, %v5118_v4  ;;  %v1194_v28 = vmul.u32 16, %v5118_v4 }
 0x1bc   :  { %v4508_v13 = vpop.eup %4507  ;;  %v756_v15 = vsub.f32 1.0, %v4506_v12  ;;  %v758_v19 = vmul.f32 0.0, %v4506_v12  ;;  %v1232_v9 = vadd.s32 120, %v5111_v2 }
 0x1bd   :  { %v775_v11 = vadd.f32 %v774_v10, %v331_v56  ;;  %v777_v17 = vsub.f32 1.0, %v4508_v13  ;;  %v779_v21 = vmul.f32 0.0, %v4508_v13  ;;  %v4480_v56 = vld [vmem:[%s6388_s3 + $0xa4] ss:$8 sps:$4 sm:$0xff]   ;;  %v1202_v7 = vmul.u32 16, %v1200_v5 }
 0x1be   :  { %vm1198_vm6 = vcmp.ge.s32.totalorder %v5122_v6, %v1194_v28  ;;  %vm5128_vm8 = vcmp.ge.s32.totalorder %v4689_v29, %v1194_v28  ;;  %v6458_v5 = vmov 0  ;;  %v5195_v28 = vadd.s32 1, %v4689_v29 }
 0x1bf   :  { %4511 = vtanh.f32 %v775_v11  ;;  %vm1206_vm7 = vcmp.lt.s32.totalorder %v5122_v6, %v1202_v7  ;;  %vm5133_vm9 = vcmp.lt.s32.totalorder %v4689_v29, %v1202_v7  ;;  %v5198_v7 = vmul.u32 16, %v4689_v29 }
 0x1c0   :  { %vm1210_vm10 = vmand %vm1198_vm6, %vm1206_vm7  ;;  %v5201_v8 = vmul.u32 16, %v5195_v28 }
 0x1c1   :  { %v5138_v10 = vsel %vm1210_vm10, 1.0, %v4625_v32  ;;  %vm1209_vm11 = vmand %vm5128_vm8, %vm5133_vm9  ;;  %vm1253_vm2 = vcmp.ge.s32.totalorder %v1232_v9, %v5198_v7 }
 0x1c2   :  { %vm1275_vm3 = vcmp.lt.s32.totalorder %v1232_v9, %v5201_v8 }
 0x1c3   :  { %vm5212_vm8 = vmand %vm1253_vm2, %vm1275_vm3 }
 0x1c8   :  { %v4510_v14 = vpop.eup %4509 }
 0x1c9   :  { %v757_v16 = vmul.f32 %v4510_v14, %v756_v15 }
 0x1cb   :  { %v5007_v22 = vadd.f32 %v758_v19, %v757_v16 }
 0x1cc   :  { %v4512_v18 = vpop.eup %4511 }
 0x1cd   :  { %v778_v20 = vmul.f32 %v4512_v18, %v777_v17  ;;  %v781_v25 = vpack.c.bf16 %v4625_v32, %v5007_v22 }
 0x1cf   :  { %v5009_v23 = vadd.f32 %v779_v21, %v778_v20 }
 0x1d1   :  { %v782_v24 = vpack.c.bf16 %v5009_v23, %v4625_v32 }
 0x1d3   :  { %815 = vmatprep.mubr.bf16.mxu0 %v782_v24  ;;  %858 = vmatprep.mubr.bf16.mxu1 %v782_v24 }
 0x1d4   :  { %816 = vmatmul.mubr.bf16.vlgmr.msra.gmra.mxu0 %v781_v25  ;;  %859 = vmatmul.mubr.bf16.vlgmr.msra.gmra.mxu1 %v781_v25 }
 0x1d5   :  { %1178 = vmatprep.mubr.bf16.mxu0 %v4624_v0  ;;  %1055 = vmatprep.mubr.bf16.mxu1 %v4624_v0  ;;  %v4448_v0 = vld [vmem:[%s6388_s3 + $0xf0] ss:$8 sps:$4 sm:$0xff]  }
 0x1d6   :  { %1147 = vmatpush1.bf16.msra.mxu0 %v4445_v27  ;;  %1024 = vmatpush1.bf16.msra.mxu1 %v4448_v0 }
 0x1d7   :  { %1148 = vmatprep.subr.bf16.mxu0 %v4453_v31  ;;  %1025 = vmatprep.subr.bf16.mxu1 %v4456_v37 }
 0x1da   :  { %1149 = vmatpush1.bf16.msra.mxu0 %v4451_v34  ;;  %1026 = vmatpush1.bf16.msra.mxu1 %v4454_v41 }
 0x1db   :  { %1150 = vmatprep.subr.bf16.mxu0 %v4459_v39  ;;  %1027 = vmatprep.subr.bf16.mxu1 %v4462_v43 }
 0x1de   :  { %1151 = vmatpush1.bf16.msra.mxu0 %v4457_v42  ;;  %1028 = vmatpush1.bf16.msra.mxu1 %v4460_v46 }
 0x1df   :  { %1152 = vmatprep.subr.bf16.mxu0 %v4465_v44  ;;  %1029 = vmatprep.subr.bf16.mxu1 %v4468_v48 }
 0x1e2   :  { %1153 = vmatpush1.bf16.msra.mxu0 %v4463_v47  ;;  %1030 = vmatpush1.bf16.msra.mxu1 %v4466_v50 }
 0x1e3   :  { %1154 = vmatprep.subr.bf16.mxu0 %v4471_v49  ;;  %1031 = vmatprep.subr.bf16.mxu1 %v4474_v52 }
 0x1e6   :  { %1155 = vmatpush1.bf16.msra.mxu0 %v4469_v51  ;;  %1032 = vmatpush1.bf16.msra.mxu1 %v4472_v53  ;;  %v1362_v51 = vpop.xlane.xlu1 %1361  ;;  %v5153_v53 = vadd.s32 1, %v5111_v2 }
 0x1e7   :  { %1156 = vmatprep.subr.bf16.mxu0 %v4477_v55  ;;  %1033 = vmatprep.subr.bf16.mxu1 %v4480_v56 }
 0x1ea   :  { %1157 = vmatpush1.bf16.msra.mxu0 %v4475_v54  ;;  %1034 = vmatpush1.bf16.msra.mxu1 %v4478_v58  ;;  %v1193_v58 = vmul.u32 16, %v5111_v2 }
 0x1eb   :  { %1158 = vmatprep.subr.bf16.mxu0 %v4483_v57  ;;  %1035 = vmatprep.subr.bf16.mxu1 %v4486_v60 }
 0x1ec   :  { %vm1196_vm12 = vcmp.ge.s32.totalorder %v5122_v6, %v1193_v58  ;;  %vm1195_vm14 = vcmp.ge.s32.totalorder %v4689_v29, %v1193_v58 }
 0x1ee   :  { %1159 = vmatpush1.bf16.msra.mxu0 %v4481_v59  ;;  %1036 = vmatpush1.bf16.msra.mxu1 %v4484_v62  ;;  %v1201_v59 = vmul.u32 16, %v5153_v53 }
 0x1ef   :  { %1160 = vmatprep.subr.bf16.mxu0 %v4489_v61  ;;  %1037 = vmatprep.subr.bf16.mxu1 %v4492_v1 }
 0x1f0   :  { %vm1204_vm13 = vcmp.lt.s32.totalorder %v5122_v6, %v1201_v59  ;;  %vm1203_vm15 = vcmp.lt.s32.totalorder %v4689_v29, %v1201_v59 }
 0x1f1   :  { %vm5173_vm0 = vmand %vm1196_vm12, %vm1204_vm13 }
 0x1f2   :  { %1161 = vmatpush1.bf16.msra.mxu0 %v4487_v63  ;;  %1038 = vmatpush1.bf16.msra.mxu1 %v4490_v3  ;;  %v6456_v3 = vmov 0  ;;  %vm5177_vm1 = vmand %vm1195_vm14, %vm1203_vm15 }
 0x1f3   :  { %1537 = vmatprep.subr.mxu0 %v4625_v32  ;;  %3975 = vmatprep.subr.msk.mxu1 %vm6393_vm5, %v5138_v10  ;;  %v6457_v3 = vsel %vm5173_vm0, 4294967295, %v6456_v3  ;;  %v6459_v5 = vsel %vm5177_vm1, 4294967295, %v6458_v5 }
 0x294   :  { %v817_v11 = vpop.f32.mrf.mxu0  ;;  %v4333_v27 = vpop.f32.mrf.mxu1 }
 0x295   :  { %v867_v12 = vadd.f32 %v817_v11, %v4999_v36  ;;  %v1231_v11 = vadd.s32 112, %v5111_v2 }
 0x296   :  { %v819_v13 = vpop.f32.mrf.mxu0  ;;  %v4334_v31 = vpop.f32.mrf.mxu1 }
 0x297   :  { %v3912_v14 = vmul.f32 -1.442695, %v867_v12  ;;  %v874_v17 = vadd.f32 %v819_v13, %v5001_v38  ;;  %v4335_v37 = vadd.f32 %v4334_v31, %v4333_v27  ;;  %v1230_v12 = vadd.s32 104, %v5111_v2 }
 0x298   :  { %v821_v15 = vpop.f32.mrf.mxu0  ;;  %v4336_v0 = vpop.f32.mrf.mxu1  ;;  %v1229_v13 = vadd.s32 96, %v5111_v2  ;;  %vm1252_vm6 = vcmp.ge.s32.totalorder %v1231_v11, %v5198_v7  ;;  %vm1274_vm7 = vcmp.lt.s32.totalorder %v1231_v11, %v5201_v8  ;;  %v6472_v27 = vmov 0 }
 0x299   :  { %4513 = vpow2.f32 %v3912_v14  ;;  %v888_v16 = vadd.f32 %v821_v15, %v4995_v33  ;;  %v3913_v21 = vmul.f32 -1.442695, %v874_v17  ;;  %v1228_v14 = vadd.s32 88, %v5111_v2 }
 0x29a   :  { %v823_v19 = vpop.f32.mrf.mxu0  ;;  %vm1251_vm9 = vcmp.ge.s32.totalorder %v1230_v12, %v5198_v7  ;;  %vm1273_vm10 = vcmp.lt.s32.totalorder %v1230_v12, %v5201_v8  ;;  %vm1250_vm12 = vcmp.ge.s32.totalorder %v1229_v13, %v5198_v7  ;;  %vm1272_vm13 = vcmp.lt.s32.totalorder %v1229_v13, %v5201_v8 }
 0x29b   :  { %v3914_v18 = vmul.f32 -1.442695, %v888_v16  ;;  %v895_v20 = vadd.f32 %v823_v19, %v5003_v40  ;;  %v4337_v40 = vpop.f32.mrf.mxu1  ;;  %v1227_v17 = vadd.s32 80, %v5111_v2  ;;  %vm5229_vm14 = vmand %vm1251_vm9, %vm1273_vm10  ;;  %vm1249_vm15 = vcmp.ge.s32.totalorder %v1228_v14, %v5198_v7 }
 0x29c   :  { %v4338_v44 = vadd.f32 %v4337_v40, %v4336_v0  ;;  %vm1271_vm2 = vcmp.lt.s32.totalorder %v1228_v14, %v5201_v8  ;;  %v1226_v19 = vadd.s32 72, %v5111_v2  ;;  %vm5240_vm3 = vmand %vm1250_vm12, %vm1272_vm13  ;;  %v6474_v31 = vmov 0 }
 0x29d   :  { %4515 = vpow2.f32 %v3914_v18  ;;  %v3915_v24 = vmul.f32 -1.442695, %v895_v20  ;;  %vm5251_vm9 = vmand %vm1249_vm15, %vm1271_vm2  ;;  %v6476_v0 = vmov 0  ;;  %v6484_v40 = vmov 0 }
 0x29e   :  { %4517 = vpow2.f32 %v3913_v21  ;;  %v1225_v21 = vadd.s32 64, %v5111_v2  ;;  %vm1247_vm10 = vcmp.ge.s32.totalorder %v1226_v19, %v5198_v7  ;;  %vm1269_vm12 = vcmp.lt.s32.totalorder %v1226_v19, %v5201_v8 }
 0x29f   :  { %4519 = vpow2.f32 %v3915_v24  ;;  %v1235_v13 = vadd.s32 144, %v5111_v2  ;;  %v1234_v14 = vadd.s32 136, %v5111_v2  ;;  %v1233_v19 = vadd.s32 128, %v5111_v2 }
 0x2a0   :  { %vm1246_vm15 = vcmp.ge.s32.totalorder %v1225_v21, %v5198_v7  ;;  %vm1268_vm2 = vcmp.lt.s32.totalorder %v1225_v21, %v5201_v8  ;;  %v6498_v21 = vmov 0 }
 0x2a6   :  { %v4514_v25 = vpop.eup %4513 }
 0x2a7   :  { %v871_v26 = vadd.f32 1.0, %v4514_v25  ;;  %v1224_v25 = vadd.s32 56, %v5111_v2 }
 0x2a9   :  { %4521 = vrcp.f32 %v871_v26  ;;  %v6470_v26 = vmov 0 }
 0x2aa   :  { %v4516_v36 = vpop.eup %4515 }
 0x2ab   :  { %v892_v30 = vadd.f32 1.0, %v4516_v36  ;;  %v4518_v33 = vpop.eup %4517  ;;  %v1223_v36 = vadd.s32 48, %v5111_v2 }
 0x2ac   :  { %v4520_v38 = vpop.eup %4519  ;;  %v878_v34 = vadd.f32 1.0, %v4518_v33  ;;  %v1221_v33 = vadd.s32 32, %v5111_v2 }
 0x2ad   :  { %4523 = vrcp.f32 %v892_v30  ;;  %v899_v41 = vadd.f32 1.0, %v4520_v38  ;;  %v1222_v30 = vadd.s32 40, %v5111_v2  ;;  %v1220_v38 = vadd.s32 24, %v5111_v2 }
 0x2ae   :  { %4525 = vrcp.f32 %v878_v34  ;;  %v6478_v34 = vmov 0 }
 0x2af   :  { %4527 = vrcp.f32 %v899_v41  ;;  %v6482_v41 = vmov 0 }
 0x2b6   :  { %v4522_v39 = vpop.eup %4521 }
 0x2b7   :  { %v881_v42 = vmul.f32 %v4522_v39, %v4335_v37  ;;  %v1219_v37 = vadd.s32 16, %v5111_v2  ;;  %v6480_v39 = vmov 0 }
 0x2b9   :  { %v882_v43 = vadd.f32 %v881_v42, %v4997_v35  ;;  %v1236_v42 = vadd.s32 152, %v5111_v2 }
 0x2ba   :  { %v4524_v46 = vpop.eup %4523 }
 0x2bb   :  { %4529 = vtanh.f32 %v882_v43  ;;  %v902_v47 = vmul.f32 %v4524_v46, %v4338_v44  ;;  %v4526_v49 = vpop.eup %4525  ;;  %v6486_v43 = vmov 0  ;;  %v6488_v44 = vmov 0 }
 0x2bc   :  { %v4528_v50 = vpop.eup %4527  ;;  %v884_v52 = vsub.f32 1.0, %v4526_v49  ;;  %v886_v56 = vmul.f32 %v4526_v49, %v5007_v22  ;;  %v6490_v46 = vmov 0 }
 0x2bd   :  { %v903_v48 = vadd.f32 %v902_v47, %v5005_v45  ;;  %v905_v57 = vsub.f32 1.0, %v4528_v50  ;;  %v907_v62 = vmul.f32 %v4528_v50, %v5009_v23  ;;  %v6492_v47 = vmov 0 }
 0x2bf   :  { %4531 = vtanh.f32 %v903_v48 }
 0x2c0   :  { %4533 = vrcp.f32 %v1362_v51 }
 0x2c8   :  { %v4530_v54 = vpop.eup %4529 }
 0x2c9   :  { %v885_v55 = vmul.f32 %v4530_v54, %v884_v52 }
 0x2cb   :  { %v887_v35 = vadd.f32 %v886_v56, %v885_v55 }
 0x2cc   :  { %v4532_v45 = vpop.eup %4531 }
 0x2cd   :  { %v941_v60 = vpack.c.bf16 %v887_v35, %v5007_v22  ;;  %v906_v61 = vmul.f32 %v4532_v45, %v905_v57  ;;  %v5171_v22 = vsel %vm1209_vm11, 1.0, %v4625_v32  ;;  %v4534_v6 = vpop.eup %4533  ;;  %vm5221_vm11 = vmand %vm1252_vm6, %vm1274_vm7  ;;  %vm1248_vm6 = vcmp.ge.s32.totalorder %v1227_v17, %v5198_v7 }
 0x2ce   :  { %vm1270_vm7 = vcmp.lt.s32.totalorder %v1227_v17, %v5201_v8  ;;  %v1340_v35 = vmul.u32 8, %v5111_v2  ;;  %v1342_v57 = vmul.u32 8, %v5153_v53  ;;  %v6496_v17 = vmov 0 }
 0x2cf   :  { %1179 = vmatmul.mubr.bf16.vlgmr.msra.gmra.mxu0 %v941_v60  ;;  %v908_v63 = vadd.f32 %v907_v62, %v906_v61  ;;  %vm5262_vm13 = vmand %vm1248_vm6, %vm1270_vm7  ;;  %vm1245_vm6 = vcmp.ge.s32.totalorder %v1224_v25, %v5198_v7  ;;  %vm1267_vm7 = vcmp.lt.s32.totalorder %v1224_v25, %v5201_v8  ;;  %v6500_v25 = vmov 0 }
 0x2d0   :  { %v6471_v26 = vsel %vm5262_vm13, 4294967295, %v6470_v26 }
 0x2d1   :  { %v942_v1 = vpack.c.bf16 %v5009_v23, %v908_v63  ;;  %v4627_v23 = vmov 1.0  }
 0x2d2   :  { %3982 = vmatpush1.msk.msra.mxu0 %vm5212_vm8, %v4627_v23 }
 0x2d3   :  { %1056 = vmatmul.mubr.bf16.vlgmr.msra.gmra.mxu1 %v942_v1  ;;  %1539 = vmatprep.subr.mxu0 %v4625_v32 }
 0x2d4   :  { %3976 = vmatpush1.msk.msra.mxu1 %vm6393_vm5, %v5171_v22  ;;  %1439 = vmatprep.mubr.f32.mxu1 %v4625_v32  ;;  %vm5284_vm5 = vmand %vm1246_vm15, %vm1268_vm2  ;;  %vm1243_vm15 = vcmp.ge.s32.totalorder %v1222_v30, %v5198_v7  ;;  %vm1265_vm2 = vcmp.lt.s32.totalorder %v1222_v30, %v5201_v8 }
 0x2d5   :  { %3977 = vmatprep.subr.msk.mxu1 %vm5173_vm0, %v4627_v23  ;;  %3983 = vmatpush1.msk.msra.mxu0 %vm5221_vm11, %v4627_v23  ;;  %v6475_v31 = vsel %vm5284_vm5, 4294967295, %v6474_v31 }
 0x2d6   :  { %3978 = vmatpush1.msk.msra.mxu1 %vm5177_vm1, %v4627_v23  ;;  %1541 = vmatprep.subr.mxu0 %v4625_v32 }
 0x2d7   :  { %3984 = vmatpush1.msk.msra.mxu0 %vm5229_vm14, %v4627_v23 }
 0x2d8   :  { %1543 = vmatprep.subr.mxu0 %v4625_v32 }
 0x2d9   :  { %3985 = vmatpush1.msk.msra.mxu0 %vm5240_vm3, %v4627_v23 }
 0x2da   :  { %1545 = vmatprep.subr.mxu0 %v4625_v32 }
 0x2db   :  { %3979 = vmatmul.mubr.msk.f32.vlgmr.msra.gmra.mxu1 %vm6392_vm4, %v4534_v6  ;;  %3986 = vmatpush1.msk.msra.mxu0 %vm5251_vm9, %v4627_v23 }
 0x2dc   :  { %1445 = vmatprep.mubr.f32.mxu1 %v4625_v32  ;;  %1547 = vmatprep.subr.mxu0 %v4625_v32 }
 0x2dd   :  { %3987 = vmatpush1.msk.msra.mxu0 %vm5262_vm13, %v4627_v23  ;;  %vm5295_vm13 = vmand %vm1245_vm6, %vm1267_vm7  ;;  %vm1242_vm6 = vcmp.ge.s32.totalorder %v1221_v33, %v5198_v7  ;;  %vm1264_vm7 = vcmp.lt.s32.totalorder %v1221_v33, %v5201_v8 }
 0x2de   :  { %1549 = vmatprep.subr.mxu0 %v4625_v32  ;;  %v6477_v0 = vsel %vm5295_vm13, 4294967295, %v6476_v0 }
 0x2df   :  { %3980 = vmatmul.mubr.msk.f32.gmra.mxu1 %vm6392_vm4, %v4534_v6  ;;  %vm5273_vm4 = vmand %vm1247_vm10, %vm1269_vm12  ;;  %vm1244_vm10 = vcmp.ge.s32.totalorder %v1223_v36, %v5198_v7  ;;  %vm1266_vm12 = vcmp.lt.s32.totalorder %v1223_v36, %v5201_v8 }
 0x2e0   :  { %1524 = vmatprep.mubr.f32.mxu1 %v4625_v32  ;;  %v6473_v27 = vsel %vm5273_vm4, 4294967295, %v6472_v27  ;;  %3988 = vmatpush1.msk.msra.mxu0 %vm5273_vm4, %v4627_v23  ;;  %vm5306_vm4 = vmand %vm1244_vm10, %vm1266_vm12  ;;  %vm1241_vm10 = vcmp.ge.s32.totalorder %v1220_v38, %v5198_v7  ;;  %vm1263_vm12 = vcmp.lt.s32.totalorder %v1220_v38, %v5201_v8 }
 0x2e1   :  { %1551 = vmatprep.subr.mxu0 %v4625_v32  ;;  %v6479_v34 = vsel %vm5306_vm4, 4294967295, %v6478_v34 }
 0x2e2   :  { %3989 = vmatpush1.msk.msra.mxu0 %vm5284_vm5, %v4627_v23  ;;  %vm5317_vm5 = vmand %vm1243_vm15, %vm1265_vm2  ;;  %vm1240_vm15 = vcmp.ge.s32.totalorder %v1219_v37, %v5198_v7  ;;  %vm1262_vm2 = vcmp.lt.s32.totalorder %v1219_v37, %v5201_v8 }
 0x2e3   :  { %1553 = vmatprep.subr.mxu0 %v4625_v32  ;;  %v6481_v39 = vsel %vm5317_vm5, 4294967295, %v6480_v39 }
 0x2e4   :  { %3990 = vmatpush1.msk.msra.mxu0 %vm5295_vm13, %v4627_v23  ;;  %vm5327_vm13 = vmand %vm1242_vm6, %vm1264_vm7  ;;  %vm1239_vm6 = vcmp.ge.s32.totalorder %v5118_v4, %v5198_v7  ;;  %vm1261_vm7 = vcmp.lt.s32.totalorder %v5118_v4, %v5201_v8 }
 0x2e5   :  { %1555 = vmatprep.subr.mxu0 %v4625_v32  ;;  %v6483_v41 = vsel %vm5327_vm13, 4294967295, %v6482_v41 }
 0x2e6   :  { %3991 = vmatpush1.msk.msra.mxu0 %vm5306_vm4, %v4627_v23  ;;  %vm5337_vm4 = vmand %vm1241_vm10, %vm1263_vm12  ;;  %vm1238_vm10 = vcmp.ge.s32.totalorder %v5111_v2, %v5198_v7  ;;  %vm1260_vm12 = vcmp.lt.s32.totalorder %v5111_v2, %v5201_v8 }
 0x2e7   :  { %1557 = vmatprep.subr.mxu0 %v4625_v32  ;;  %v6485_v40 = vsel %vm5337_vm4, 4294967295, %v6484_v40 }
 0x2e8   :  { %3992 = vmatpush1.msk.msra.mxu0 %vm5317_vm5, %v4627_v23  ;;  %vm5350_vm5 = vmand %vm1240_vm15, %vm1262_vm2  ;;  %vm1257_vm15 = vcmp.ge.s32.totalorder %v1236_v42, %v5198_v7  ;;  %vm1279_vm2 = vcmp.lt.s32.totalorder %v1236_v42, %v5201_v8 }
 0x2e9   :  { %1559 = vmatprep.subr.mxu0 %v4625_v32  ;;  %v6487_v43 = vsel %vm5350_vm5, 4294967295, %v6486_v43 }
 0x2ea   :  { %3993 = vmatpush1.msk.msra.mxu0 %vm5327_vm13, %v4627_v23  ;;  %vm5362_vm13 = vmand %vm1239_vm6, %vm1261_vm7  ;;  %vm1341_vm7 = vcmp.ge.s32.totalorder %v4689_v29, %v1340_v35 }
 0x2eb   :  { %1561 = vmatprep.subr.mxu0 %v4625_v32  ;;  %v6489_v44 = vsel %vm5362_vm13, 4294967295, %v6488_v44  ;;  %vm5380_vm6 = vmand %vm1257_vm15, %vm1279_vm2  ;;  %vm6410_vm15 = vcmask 130048   ;;  %vm6494_vm2 = vcmask 1041408  }
 0x2ec   :  { %3994 = vmatpush1.msk.msra.mxu0 %vm5337_vm4, %v4627_v23  ;;  %vm5372_vm4 = vmand %vm1238_vm10, %vm1260_vm12  ;;  %v6493_v47 = vsel %vm5380_vm6, 4294967295, %v6492_v47  ;;  %vm1343_vm10 = vcmp.lt.s32.totalorder %v4689_v29, %v1342_v57 }
 0x2ed   :  { %1563 = vmatprep.subr.mxu0 %v4625_v32  ;;  %v6491_v46 = vsel %vm5372_vm4, 4294967295, %v6490_v46  ;;  %vm1344_vm12 = vmand %vm1341_vm7, %vm1343_vm10  ;;  %vm1256_vm10 = vcmp.ge.s32.totalorder %v1235_v13, %v5198_v7 }
 0x2ee   :  { %3995 = vmatpush1.msk.msra.mxu0 %vm5350_vm5, %v4627_v23  ;;  %v5409_v12 = vsel %vm1344_vm12, 1.0, %v4625_v32  ;;  %vm6495_vm7 = vmmov %vm6494_vm2  ;;  %vm1278_vm12 = vcmp.lt.s32.totalorder %v1235_v13, %v5201_v8 }
 0x2ef   :  { %1565 = vmatprep.subr.mxu0 %v4625_v32 }
 0x2f0   :  { %3996 = vmatpush1.msk.msra.mxu0 %vm5362_vm13, %v4627_v23 }
 0x2f1   :  { %1567 = vmatprep.subr.mxu0 %v4625_v32 }
 0x2f2   :  { %3997 = vmatpush1.msk.msra.mxu0 %vm5372_vm4, %v4627_v23 }
 0x2f3   :  { %1593 = vmatprep.subr.mxu0 %v4625_v32 }
 0x2f4   :  { %3998 = vmatpush2.msk.msra.mxu0 %vm5380_vm6, %v4627_v23 }
 0x2f5   :  { %1595 = vmatprep.subr.mxu0 %v4625_v32 }
 0x38f   :  { %v1180_v48 = vpop.f32.mrf.mxu0 }
 0x391   :  { %v1182_v51 = vpop.f32.mrf.mxu0 }
 0x393   :  { %v1057_v49 = vpop.f32.mrf.mxu1  ;;  %v1184_v55 = vpop.f32.mrf.mxu0 }
 0x394   :  { %v5403_v6 = vadd.f32 %v1180_v48, %v1057_v49  ;;  %v1347_v48 = vmul.u32 8, %v4689_v29  ;;  %v1350_v49 = vmul.u32 8, %v5195_v28 }
 0x395   :  { %v1059_v50 = vpop.f32.mrf.mxu1  ;;  %v1186_v59 = vpop.f32.mrf.mxu0 }
 0x396   :  { %v5400_v63 = vadd.f32 %v1182_v51, %v1059_v50 }
 0x397   :  { %v1061_v52 = vpop.f32.mrf.mxu1 }
 0x398   :  { %v5398_v61 = vadd.f32 %v1184_v55, %v1061_v52 }
 0x399   :  { %v1063_v54 = vpop.f32.mrf.mxu1 }
 0x39a   :  { %v5396_v60 = vadd.f32 %v1186_v59, %v1063_v54 }
 0x39b   :  { %v1441_v56 = vpop.f32.mrf.mxu1 }
 0x39c   :  { %v1452_v11 = vmul.f32 %v1441_v56, %v5403_v6 }
 0x39d   :  { %v1443_v58 = vpop.f32.mrf.mxu1 }
 0x39e   :  { %v1453_v9 = vmul.f32 %v1443_v58, %v5400_v63 }
 0x39f   :  { %v1447_v45 = vpop.f32.mrf.mxu1 }
 0x3a0   :  { %v1454_v53 = vmul.f32 %v1447_v45, %v5398_v61 }
 0x3a1   :  { %v1449_v62 = vpop.f32.mrf.mxu1 }
 0x3a2   :  { %v1455_v1 = vmul.f32 %v1449_v62, %v5396_v60 }
 0x3a4   :  { %1488 = vmatprep.subr.mxu1 %v1455_v1 }
 0x3a5   :  { %1489 = vmatpush1.msra.mxu1 %v1454_v53 }
 0x3a6   :  { %1490 = vmatprep.subr.mxu1 %v1453_v9 }
 0x3a7   :  { %1491 = vmatpush1.msra.mxu1 %v1452_v11 }
 0x3a8   :  { %3981 = vmatmul.mubr.msk.f32.vlgmr.msra.gmra.mxu1 %vm6410_vm15, %v5409_v12  ;;  %4003 = vmatprep.subr.msk.mxu1 %vm6494_vm2, %v5138_v10  ;;  %vm5428_vm2 = vmand %vm1256_vm10, %vm1278_vm12  ;;  %vm1277_vm15 = vcmp.lt.s32.totalorder %v1234_v14, %v5201_v8  ;;  %vm1254_vm10 = vcmp.ge.s32.totalorder %v1233_v19, %v5198_v7  ;;  %vm1276_vm12 = vcmp.lt.s32.totalorder %v1233_v19, %v5201_v8 }
 0x3a9   :  { %4004 = vmatpush1.msk.msra.mxu1 %vm6495_vm7, %v5171_v22  ;;  %1675 = vmatprep.mubr.f32.mxu1 %v4625_v32  ;;  %v6497_v17 = vsel %vm5428_vm2, 4294967295, %v6496_v17  ;;  %vm1255_vm7 = vcmp.ge.s32.totalorder %v1234_v14, %v5198_v7 }
 0x3aa   :  { %4005 = vmatprep.subr.msk.mxu1 %vm5173_vm0, %v4627_v23  ;;  %3999 = vmatpush2.msk.msra.mxu0 %vm5428_vm2, %v4627_v23  ;;  %vm5439_vm6 = vmand %vm1255_vm7, %vm1277_vm15  ;;  %vm6502_vm15 = vcmask 1041408   ;;  %vm6415_vm7 = vcmask 261120  }
 0x3ab   :  { %4006 = vmatpush1.msk.msra.mxu1 %vm5177_vm1, %v4627_v23  ;;  %1597 = vmatprep.subr.mxu0 %v4625_v32  ;;  %v6499_v21 = vsel %vm5439_vm6, 4294967295, %v6498_v21  ;;  %vm5449_vm2 = vmand %vm1254_vm10, %vm1276_vm12  ;;  %vm6504_vm12 = vcmask 80896  }
 0x3ac   :  { %4000 = vmatpush2.msk.msra.mxu0 %vm5439_vm6, %v4627_v23  ;;  %v6501_v25 = vsel %vm5449_vm2, 4294967295, %v6500_v25  ;;  %vm6503_vm10 = vmmov %vm6502_vm15 }
 0x3ad   :  { %1599 = vmatprep.subr.mxu0 %v4625_v32 }
 0x3ae   :  { %4001 = vmatpush2.msk.msra.mxu0 %vm5449_vm2, %v4627_v23  ;;  %vm6505_vm2 = vcmask 1041408  }
 0x3af   :  { %4034 = vmatprep.subr.msk.mxu0 %vm6502_vm15, %v5138_v10  ;;  %vm1348_vm15 = vcmp.ge.s32.totalorder %v5111_v2, %v1347_v48  ;;  %vm6506_vm4 = vmmov %vm6505_vm2 }
 0x468   :  { %v1526_v36 = vpop.f32.mrf.mxu1 }
 0x469   :  { %v1531_v7 = vmul.f32 %v1526_v36, %v1526_v36 }
 0x46a   :  { %v1528_v30 = vpop.f32.mrf.mxu1 }
 0x46b   :  { %v1532_v33 = vmul.f32 %v1528_v30, %v1528_v30 }
 0x46d   :  { %4002 = vmatprep.mubr.msk.f32.mxu0 %vm6415_vm7, %v1532_v33 }
 0x46e   :  { %1602 = vmatmul.mubr.f32.vlgmr.msra.gmra.mxu0 %v1531_v7 }
 0x46f   :  { %4035 = vmatpush1.msk.msra.mxu0 %vm6503_vm10, %v5171_v22  ;;  %1951 = vmatprep.mubr.f32.mxu0 %v4625_v32  ;;  %vm1351_vm10 = vcmp.lt.s32.totalorder %v5111_v2, %v1350_v49 }
 0x470   :  { %4036 = vmatprep.subr.msk.mxu0 %vm5173_vm0, %v4627_v23  ;;  %vm1353_vm7 = vmand %vm1348_vm15, %vm1351_vm10  ;;  %vm1352_vm0 = vcmp.lt.s32.totalorder %v5118_v4, %v1350_v49  ;;  %vm6513_vm15 = vnez %v6483_v41  ;;  %vm6514_vm10 = vnez %v6485_v40 }
 0x471   :  { %4037 = vmatpush1.msk.msra.mxu0 %vm5177_vm1, %v4627_v23  ;;  %vm1349_vm1 = vcmp.ge.s32.totalorder %v5118_v4, %v1347_v48  ;;  %v5477_v55 = vsel %vm1353_vm7, 1.0, %v4625_v32  ;;  %vm6512_vm7 = vnez %v6481_v39 }
 0x472   :  { %vm1354_vm6 = vmand %vm1349_vm1, %vm1352_vm0  ;;  %vm6508_vm0 = vnez %v6473_v27  ;;  %vm6509_vm1 = vnez %v6475_v31 }
 0x473   :  { %v5486_v29 = vsel %vm1354_vm6, 1.0, %v4625_v32  ;;  %vm6510_vm6 = vnez %v6477_v0 }
 0x52e   :  { %v1603_v8 = vpop.f32.mrf.mxu0 }
 0x52f   :  { %v1604_v38 = vadd.f32 1e-07, %v1603_v8 }
 0x530   :  { %v1605_v37 = vpop.f32.mrf.mxu0 }
 0x531   :  { %4535 = vrsqrt.f32 %v1604_v38 }
 0x53e   :  { %v4536_v42 = vpop.eup %4535 }
 0x53f   :  { %4007 = vmatmul.mubr.msk.f32.vlgmr.msra.gmra.mxu1 %vm6504_vm12, %v4536_v42  ;;  %vm6426_vm12 = vcmask 15360  }
 0x540   :  { %1761 = vmatprep.mubr.f32.mxu1 %v4625_v32 }
 0x5ff   :  { %v1677_v50 = vpop.f32.mrf.mxu1 }
 0x600   :  { %v1682_v54 = vmul.f32 %v1677_v50, %v1526_v36 }
 0x601   :  { %v1679_v51 = vpop.f32.mrf.mxu1 }
 0x602   :  { %v1683_v52 = vmul.f32 %v1679_v51, %v1528_v30 }
 0x604   :  { %4008 = vmatprep.subr.msk.mxu1 %vm6505_vm2, %v1683_v52  ;;  %vm6511_vm2 = vnez %v6479_v34 }
 0x605   :  { %4009 = vmatpush1.msk.msra.mxu1 %vm6506_vm4, %v1682_v54  ;;  %vm6507_vm4 = vnez %v6471_v26 }
 0x606   :  { %4010 = vmatmul.mubr.msk.f32.vlgmr.msra.gmra.mxu1 %vm6426_vm12, %v5477_v55  ;;  %1784 = vmatprep.subr.mxu1 %v4625_v32 }
 0x607   :  { %1767 = vmatprep.mubr.f32.mxu1 %v4625_v32  ;;  %4012 = vmatpush1.msk.msra.mxu1 %vm5212_vm8, %v4627_v23 }
 0x608   :  { %1786 = vmatprep.subr.mxu1 %v4625_v32 }
 0x609   :  { %4013 = vmatpush1.msk.msra.mxu1 %vm5221_vm11, %v4627_v23 }
 0x60a   :  { %4011 = vmatmul.mubr.msk.f32.gmra.mxu1 %vm6426_vm12, %v5486_v29  ;;  %1788 = vmatprep.subr.mxu1 %v4625_v32  ;;  %vm6515_vm12 = vnez %v6491_v46 }
 0x60b   :  { %4014 = vmatpush1.msk.msra.mxu1 %vm5229_vm14, %v4627_v23 }
 0x60c   :  { %1790 = vmatprep.subr.mxu1 %v4625_v32 }
 0x60d   :  { %4015 = vmatpush1.msk.msra.mxu1 %vm5240_vm3, %v4627_v23 }
 0x60e   :  { %1792 = vmatprep.subr.mxu1 %v4625_v32 }
 0x60f   :  { %4016 = vmatpush1.msk.msra.mxu1 %vm5251_vm9, %v4627_v23 }
 0x610   :  { %1794 = vmatprep.subr.mxu1 %v4625_v32 }
 0x611   :  { %4017 = vmatpush1.msk.msra.mxu1 %vm6507_vm4, %v4627_v23 }
 0x612   :  { %1796 = vmatprep.subr.mxu1 %v4625_v32 }
 0x613   :  { %4018 = vmatpush1.msk.msra.mxu1 %vm6508_vm0, %v4627_v23 }
 0x614   :  { %1798 = vmatprep.subr.mxu1 %v4625_v32 }
 0x615   :  { %4019 = vmatpush1.msk.msra.mxu1 %vm6509_vm1, %v4627_v23 }
 0x616   :  { %1800 = vmatprep.subr.mxu1 %v4625_v32 }
 0x617   :  { %4020 = vmatpush1.msk.msra.mxu1 %vm6510_vm6, %v4627_v23 }
 0x618   :  { %1802 = vmatprep.subr.mxu1 %v4625_v32 }
 0x619   :  { %4021 = vmatpush1.msk.msra.mxu1 %vm6511_vm2, %v4627_v23 }
 0x61a   :  { %1804 = vmatprep.subr.mxu1 %v4625_v32 }
 0x61b   :  { %4022 = vmatpush1.msk.msra.mxu1 %vm6512_vm7, %v4627_v23 }
 0x61c   :  { %1806 = vmatprep.subr.mxu1 %v4625_v32 }
 0x61d   :  { %4023 = vmatpush1.msk.msra.mxu1 %vm6513_vm15, %v4627_v23 }
 0x61e   :  { %1808 = vmatprep.subr.mxu1 %v4625_v32 }
 0x61f   :  { %4024 = vmatpush1.msk.msra.mxu1 %vm6514_vm10, %v4627_v23  ;;  %vm6516_vm10 = vnez %v6493_v47 }
 0x620   :  { %1810 = vmatprep.subr.mxu1 %v4625_v32 }
 0x621   :  { %4025 = vmatpush1.msk.msra.mxu1 %vm5350_vm5, %v4627_v23  ;;  %vm6517_vm5 = vnez %v6497_v17 }
 0x622   :  { %1812 = vmatprep.subr.mxu1 %v4625_v32 }
 0x623   :  { %4026 = vmatpush1.msk.msra.mxu1 %vm5362_vm13, %v4627_v23  ;;  %vm6518_vm13 = vnez %v6499_v21 }
 0x624   :  { %1814 = vmatprep.subr.mxu1 %v4625_v32 }
 0x625   :  { %4027 = vmatpush1.msk.msra.mxu1 %vm6515_vm12, %v4627_v23  ;;  %vm6519_vm12 = vnez %v6501_v25 }
 0x626   :  { %1840 = vmatprep.subr.mxu1 %v4625_v32 }
 0x627   :  { %4028 = vmatpush2.msk.msra.mxu1 %vm6516_vm10, %v4627_v23 }
 0x628   :  { %1842 = vmatprep.subr.mxu1 %v4625_v32 }
 0x629   :  { %4029 = vmatpush2.msk.msra.mxu1 %vm6517_vm5, %v4627_v23  ;;  %vm6520_vm5 = vcmask 261120  }
 0x62a   :  { %1844 = vmatprep.subr.mxu1 %v4625_v32 }
 0x62b   :  { %4030 = vmatpush2.msk.msra.mxu1 %vm6518_vm13, %v4627_v23 }
 0x62c   :  { %1846 = vmatprep.subr.mxu1 %v4625_v32 }
 0x62d   :  { %4031 = vmatpush2.msk.msra.mxu1 %vm6519_vm12, %v4627_v23  ;;  %vm6521_vm12 = vmmov %vm6520_vm5 }
 0x62e   :  { %2044 = vmatprep.subr.mxu1 %v4625_v32 }
 0x6c6   :  { %v1763_v2 = vpop.f32.mrf.mxu1 }
 0x6c7   :  { %v1774_v56 = vmul.f32 %v1763_v2, %v5403_v6 }
 0x6c8   :  { %v1765_v4 = vpop.f32.mrf.mxu1 }
 0x6c9   :  { %v1775_v28 = vmul.f32 %v1765_v4, %v5400_v63 }
 0x6ca   :  { %v1769_v35 = vpop.f32.mrf.mxu1 }
 0x6cb   :  { %4032 = vmatprep.mubr.msk.f32.mxu1 %vm6520_vm5, %v1775_v28  ;;  %v1776_v59 = vmul.f32 %v1769_v35, %v5398_v61  ;;  %vm6522_vm5 = vnez %v6485_v40 }
 0x6cc   :  { %v1771_v57 = vpop.f32.mrf.mxu1  ;;  %1849 = vmatmul.mubr.f32.vlgmr.msra.gmra.mxu1 %v1774_v56 }
 0x6cd   :  { %v1777_v58 = vmul.f32 %v1771_v57, %v5396_v60  ;;  %4041 = vmatpush1.msk.msra.mxu1 %vm5212_vm8, %v4627_v23 }
 0x6ce   :  { %2046 = vmatprep.subr.mxu1 %v4625_v32 }
 0x6cf   :  { %4033 = vmatprep.mubr.msk.f32.mxu1 %vm6521_vm12, %v1777_v58  ;;  %4042 = vmatpush1.msk.msra.mxu1 %vm5221_vm11, %v4627_v23  ;;  %vm6523_vm12 = vnez %v6487_v43 }
 0x6d0   :  { %1854 = vmatmul.mubr.f32.gmra.mxu1 %v1776_v59  ;;  %2048 = vmatprep.subr.mxu1 %v4625_v32 }
 0x6d1   :  { %4043 = vmatpush1.msk.msra.mxu1 %vm5229_vm14, %v4627_v23 }
 0x6d2   :  { %2050 = vmatprep.subr.mxu1 %v4625_v32 }
 0x6d3   :  { %4044 = vmatpush1.msk.msra.mxu1 %vm5240_vm3, %v4627_v23 }
 0x6d4   :  { %2052 = vmatprep.subr.mxu1 %v4625_v32 }
 0x6d5   :  { %4045 = vmatpush1.msk.msra.mxu1 %vm5251_vm9, %v4627_v23 }
 0x6d6   :  { %2054 = vmatprep.subr.mxu1 %v4625_v32 }
 0x6d7   :  { %4046 = vmatpush1.msk.msra.mxu1 %vm6507_vm4, %v4627_v23 }
 0x6d8   :  { %2056 = vmatprep.subr.mxu1 %v4625_v32 }
 0x6d9   :  { %4047 = vmatpush1.msk.msra.mxu1 %vm6508_vm0, %v4627_v23 }
 0x6da   :  { %2058 = vmatprep.subr.mxu1 %v4625_v32 }
 0x6db   :  { %4048 = vmatpush1.msk.msra.mxu1 %vm6509_vm1, %v4627_v23 }
 0x6dc   :  { %2060 = vmatprep.subr.mxu1 %v4625_v32 }
 0x6dd   :  { %4049 = vmatpush1.msk.msra.mxu1 %vm6510_vm6, %v4627_v23 }
 0x6de   :  { %2062 = vmatprep.subr.mxu1 %v4625_v32 }
 0x6df   :  { %4050 = vmatpush1.msk.msra.mxu1 %vm6511_vm2, %v4627_v23 }
 0x6e0   :  { %2064 = vmatprep.subr.mxu1 %v4625_v32 }
 0x6e1   :  { %4051 = vmatpush1.msk.msra.mxu1 %vm6512_vm7, %v4627_v23  ;;  %vm6524_vm7 = vnez %v6489_v44 }
 0x6e2   :  { %2066 = vmatprep.subr.mxu1 %v4625_v32 }
 0x6e3   :  { %4052 = vmatpush1.msk.msra.mxu1 %vm6513_vm15, %v4627_v23  ;;  %vm6525_vm15 = vnez %v6491_v46 }
 0x6e4   :  { %2068 = vmatprep.subr.mxu1 %v4625_v32 }
 0x6e5   :  { %4053 = vmatpush1.msk.msra.mxu1 %vm6522_vm5, %v4627_v23 }
 0x6e6   :  { %2070 = vmatprep.subr.mxu1 %v4625_v32 }
 0x6e7   :  { %4054 = vmatpush1.msk.msra.mxu1 %vm6523_vm12, %v4627_v23  ;;  %vm6526_vm12 = vnez %v6497_v17 }
 0x6e8   :  { %2072 = vmatprep.subr.mxu1 %v4625_v32 }
 0x6e9   :  { %4055 = vmatpush1.msk.msra.mxu1 %vm6524_vm7, %v4627_v23  ;;  %vm6529_vm7 = vcmask 80896  }
 0x6ea   :  { %2074 = vmatprep.subr.mxu1 %v4625_v32 }
 0x6eb   :  { %4056 = vmatpush1.msk.msra.mxu1 %vm6525_vm15, %v4627_v23  ;;  %vm6527_vm15 = vnez %v6501_v25 }
 0x6ec   :  { %2100 = vmatprep.subr.mxu1 %v4625_v32 }
 0x6ed   :  { %4057 = vmatpush2.msk.msra.mxu1 %vm6516_vm10, %v4627_v23  ;;  %vm6528_vm10 = vcmask 1041408  }
 0x6ee   :  { %2102 = vmatprep.subr.mxu1 %v4625_v32 }
 0x6ef   :  { %4058 = vmatpush2.msk.msra.mxu1 %vm6526_vm12, %v4627_v23  ;;  %vm6530_vm12 = vmmov %vm6529_vm7 }
 0x6f0   :  { %2104 = vmatprep.subr.mxu1 %v4625_v32 }
 0x6f1   :  { %4059 = vmatpush2.msk.msra.mxu1 %vm6518_vm13, %v4627_v23  ;;  %vm6538_vm13 = vnez %v6459_v5 }
 0x6f2   :  { %2106 = vmatprep.subr.mxu1 %v4625_v32 }
 0x6f3   :  { %4060 = vmatpush2.msk.msra.mxu1 %vm6527_vm15, %v4627_v23  ;;  %vm6533_vm15 = vmmov %vm6529_vm7 }
 0x6f4   :  { %4093 = vmatprep.subr.msk.mxu1 %vm6528_vm10, %v5138_v10  ;;  %vm6531_vm10 = vmmov %vm6529_vm7 }
 0x78c   :  { %v1850_v45 = vpop.f32.mrf.mxu1 }
 0x78d   :  { %v1859_v62 = vsel %vm6529_vm7, %v1850_v45, -inf }
 0x78e   :  { %1860 = vmax.xlane.f32.xlu1 %v1859_v62  ;;  %v1852_v1 = vpop.f32.mrf.mxu1 }
 0x790   :  { %v1855_v53 = vpop.f32.mrf.mxu1 }
 0x791   :  { %v1862_v9 = vsel %vm6530_vm12, %v1855_v53, -inf  ;;  %vm6532_vm12 = vmmov %vm6529_vm7 }
 0x792   :  { %1863 = vmax.xlane.f32.xlu0 %v1862_v9  ;;  %v1857_v11 = vpop.f32.mrf.mxu1 }
 0x817   :  { %v1861_v13 = vpop.xlane.xlu1 %1860 }
 0x818   :  { %v1865_v14 = vsub.f32 %v1850_v45, %v1861_v13 }
 0x81a   :  { %v1867_v19 = vmul.f32 1.442695, %v1865_v14 }
 0x81b   :  { %v1864_v36 = vpop.xlane.xlu0 %1863 }
 0x81c   :  { %4537 = vpow2.f32 %v1867_v19  ;;  %v1866_v30 = vsub.f32 %v1855_v53, %v1864_v36 }
 0x81e   :  { %v1869_v33 = vmul.f32 1.442695, %v1866_v30 }
 0x820   :  { %4539 = vpow2.f32 %v1869_v33 }
 0x829   :  { %v4538_v7 = vpop.eup %4537 }
 0x82a   :  { %v1871_v8 = vsel %vm6531_vm10, %v4538_v7, 0.0  ;;  %vm6535_vm10 = vcmask 1041408  }
 0x82b   :  { %1872 = vadd.xlane.f32.xlu1 %v1871_v8 }
 0x82d   :  { %v4540_v38 = vpop.eup %4539 }
 0x82e   :  { %v1874_v37 = vsel %vm6529_vm7, %v4540_v38, 0.0  ;;  %vm6536_vm7 = vmmov %vm6535_vm10 }
 0x82f   :  { %1875 = vadd.xlane.f32.xlu1 %v1874_v37 }
 0x8b4   :  { %v1873_v42 = vpop.xlane.xlu1 %1872 }
 0x8b5   :  { %4541 = vrcp.f32 %v1873_v42 }
 0x8b8   :  { %v1876_v48 = vpop.xlane.xlu1 %1875 }
 0x8b9   :  { %4543 = vrcp.f32 %v1876_v48 }
 0x8c2   :  { %v4542_v49 = vpop.eup %4541 }
 0x8c3   :  { %v1878_v50 = vmul.f32 %v4542_v49, %v4538_v7 }
 0x8c5   :  { %4038 = vmatmul.mubr.msk.f32.vlgmr.msra.gmra.mxu0 %vm6532_vm12, %v1878_v50  ;;  %vm6537_vm12 = vnez %v6457_v3 }
 0x8c6   :  { %v4544_v51 = vpop.eup %4543  ;;  %1957 = vmatprep.mubr.f32.mxu0 %v4625_v32 }
 0x8c7   :  { %v1880_v52 = vmul.f32 %v4544_v51, %v4540_v38 }
 0x8c9   :  { %4039 = vmatmul.mubr.msk.f32.gmra.mxu0 %vm6533_vm15, %v1880_v52  ;;  %vm6534_vm15 = vcmask 130048  }
 0x8ca   :  { %2032 = vmatprep.mubr.f32.mxu0 %v4625_v32 }
 0x985   :  { %v1953_v54 = vpop.f32.mrf.mxu0 }
 0x986   :  { %v1964_v58 = vmul.f32 %v1953_v54, %v5403_v6 }
 0x987   :  { %v1955_v2 = vpop.f32.mrf.mxu0 }
 0x988   :  { %v1965_v57 = vmul.f32 %v1955_v2, %v5400_v63 }
 0x989   :  { %v1959_v4 = vpop.f32.mrf.mxu0 }
 0x98a   :  { %v1966_v35 = vmul.f32 %v1959_v4, %v5398_v61 }
 0x98b   :  { %v1961_v28 = vpop.f32.mrf.mxu0 }
 0x98c   :  { %v1967_v56 = vmul.f32 %v1961_v28, %v5396_v60 }
 0x98e   :  { %1996 = vmatprep.subr.mxu0 %v1967_v56 }
 0x98f   :  { %1997 = vmatpush1.msra.mxu0 %v1966_v35 }
 0x990   :  { %1998 = vmatprep.subr.mxu0 %v1965_v57 }
 0x991   :  { %1999 = vmatpush1.msra.mxu0 %v1964_v58 }
 0x992   :  { %4040 = vmatmul.mubr.msk.f32.vlgmr.msra.gmra.mxu0 %vm6534_vm15, %v5409_v12  ;;  %4062 = vmatprep.subr.msk.mxu0 %vm6535_vm10, %v5138_v10  ;;  %vm6539_vm15 = vcmask 261120   ;;  %vm6540_vm10 = vmmov %vm6536_vm7 }
 0x993   :  { %4063 = vmatpush1.msk.msra.mxu0 %vm6536_vm7, %v5171_v22  ;;  %2182 = vmatprep.mubr.f32.mxu0 %v4625_v32  ;;  %vm6541_vm7 = vcmask 80896  }
 0x994   :  { %4064 = vmatprep.subr.msk.mxu0 %vm6537_vm12, %v4627_v23 }
 0x995   :  { %4065 = vmatpush1.msk.msra.mxu0 %vm6538_vm13, %v4627_v23 }
 0xa52   :  { %v2034_v59 = vpop.f32.mrf.mxu0 }
 0xa53   :  { %v2039_v1 = vmul.f32 %v2034_v59, %v2034_v59 }
 0xa54   :  { %v2036_v45 = vpop.f32.mrf.mxu0 }
 0xa55   :  { %v2040_v62 = vmul.f32 %v2036_v45, %v2036_v45 }
 0xa57   :  { %4061 = vmatprep.mubr.msk.f32.mxu1 %vm6539_vm15, %v2040_v62  ;;  %vm6542_vm15 = vmmov %vm6540_vm10 }
 0xa58   :  { %2109 = vmatmul.mubr.f32.vlgmr.msra.gmra.mxu1 %v2039_v1 }
 0xa59   :  { %4094 = vmatpush1.msk.msra.mxu1 %vm6540_vm10, %v5171_v22  ;;  %2451 = vmatprep.mubr.f32.mxu1 %v4625_v32 }
 0xa5a   :  { %4095 = vmatprep.subr.msk.mxu1 %vm6537_vm12, %v4627_v23  ;;  %vm6543_vm12 = vcmask 15360  }
 0xa5b   :  { %4096 = vmatpush1.msk.msra.mxu1 %vm6538_vm13, %v4627_v23  ;;  %vm6549_vm13 = vnez %v6491_v46 }
 0xb18   :  { %v2110_v53 = vpop.f32.mrf.mxu1 }
 0xb19   :  { %v2111_v9 = vadd.f32 1e-07, %v2110_v53 }
 0xb1a   :  { %v2112_v11 = vpop.f32.mrf.mxu1 }
 0xb1b   :  { %4545 = vrsqrt.f32 %v2111_v9 }
 0xb28   :  { %v4546_v13 = vpop.eup %4545 }
 0xb29   :  { %4066 = vmatmul.mubr.msk.f32.vlgmr.msra.gmra.mxu0 %vm6541_vm7, %v4546_v13  ;;  %vm6544_vm7 = vmmov %vm6543_vm12 }
 0xb2a   :  { %2261 = vmatprep.mubr.f32.mxu0 %v4625_v32 }
 0xbe9   :  { %v2184_v14 = vpop.f32.mrf.mxu0 }
 0xbea   :  { %v2189_v30 = vmul.f32 %v2184_v14, %v2034_v59 }
 0xbeb   :  { %v2186_v19 = vpop.f32.mrf.mxu0 }
 0xbec   :  { %v2190_v36 = vmul.f32 %v2186_v19, %v2036_v45 }
 0xbee   :  { %4067 = vmatprep.subr.msk.mxu0 %vm6542_vm15, %v2190_v36  ;;  %vm6546_vm15 = vnez %v6483_v41 }
 0xbef   :  { %4068 = vmatpush1.msk.msra.mxu0 %vm6540_vm10, %v2189_v30  ;;  %vm6547_vm10 = vnez %v6487_v43 }
 0xbf0   :  { %4069 = vmatmul.mubr.msk.f32.vlgmr.msra.gmra.mxu0 %vm6543_vm12, %v5477_v55  ;;  %2284 = vmatprep.subr.mxu0 %v4625_v32  ;;  %vm6545_vm12 = vnez %v6481_v39 }
 0xbf1   :  { %2267 = vmatprep.mubr.f32.mxu0 %v4625_v32  ;;  %4071 = vmatpush1.msk.msra.mxu0 %vm5212_vm8, %v4627_v23 }
 0xbf2   :  { %2286 = vmatprep.subr.mxu0 %v4625_v32 }
 0xbf3   :  { %4072 = vmatpush1.msk.msra.mxu0 %vm5221_vm11, %v4627_v23 }
 0xbf4   :  { %4070 = vmatmul.mubr.msk.f32.gmra.mxu0 %vm6544_vm7, %v5486_v29  ;;  %2288 = vmatprep.subr.mxu0 %v4625_v32  ;;  %vm6548_vm7 = vnez %v6489_v44 }
 0xbf5   :  { %4073 = vmatpush1.msk.msra.mxu0 %vm5229_vm14, %v4627_v23 }
 0xbf6   :  { %2290 = vmatprep.subr.mxu0 %v4625_v32 }
 0xbf7   :  { %4074 = vmatpush1.msk.msra.mxu0 %vm5240_vm3, %v4627_v23 }
 0xbf8   :  { %2292 = vmatprep.subr.mxu0 %v4625_v32 }
 0xbf9   :  { %4075 = vmatpush1.msk.msra.mxu0 %vm5251_vm9, %v4627_v23 }
 0xbfa   :  { %2294 = vmatprep.subr.mxu0 %v4625_v32 }
 0xbfb   :  { %4076 = vmatpush1.msk.msra.mxu0 %vm6507_vm4, %v4627_v23 }
 0xbfc   :  { %2296 = vmatprep.subr.mxu0 %v4625_v32 }
 0xbfd   :  { %4077 = vmatpush1.msk.msra.mxu0 %vm6508_vm0, %v4627_v23 }
 0xbfe   :  { %2298 = vmatprep.subr.mxu0 %v4625_v32 }
 0xbff   :  { %4078 = vmatpush1.msk.msra.mxu0 %vm6509_vm1, %v4627_v23 }
 0xc00   :  { %2300 = vmatprep.subr.mxu0 %v4625_v32 }
 0xc01   :  { %4079 = vmatpush1.msk.msra.mxu0 %vm6510_vm6, %v4627_v23 }
 0xc02   :  { %2302 = vmatprep.subr.mxu0 %v4625_v32 }
 0xc03   :  { %4080 = vmatpush1.msk.msra.mxu0 %vm6511_vm2, %v4627_v23 }
 0xc04   :  { %2304 = vmatprep.subr.mxu0 %v4625_v32 }
 0xc05   :  { %4081 = vmatpush1.msk.msra.mxu0 %vm6545_vm12, %v4627_v23 }
 0xc06   :  { %2306 = vmatprep.subr.mxu0 %v4625_v32 }
 0xc07   :  { %4082 = vmatpush1.msk.msra.mxu0 %vm6546_vm15, %v4627_v23 }
 0xc08   :  { %2308 = vmatprep.subr.mxu0 %v4625_v32 }
 0xc09   :  { %4083 = vmatpush1.msk.msra.mxu0 %vm6522_vm5, %v4627_v23  ;;  %vm6550_vm5 = vnez %v6493_v47 }
 0xc0a   :  { %2310 = vmatprep.subr.mxu0 %v4625_v32 }
 0xc0b   :  { %4084 = vmatpush1.msk.msra.mxu0 %vm6547_vm10, %v4627_v23  ;;  %vm6551_vm10 = vnez %v6497_v17 }
 0xc0c   :  { %2312 = vmatprep.subr.mxu0 %v4625_v32 }
 0xc0d   :  { %4085 = vmatpush1.msk.msra.mxu0 %vm6548_vm7, %v4627_v23  ;;  %vm6552_vm7 = vnez %v6499_v21 }
 0xc0e   :  { %2314 = vmatprep.subr.mxu0 %v4625_v32 }
 0xc0f   :  { %4086 = vmatpush1.msk.msra.mxu0 %vm6549_vm13, %v4627_v23  ;;  %vm6553_vm13 = vnez %v6501_v25 }
 0xc10   :  { %2340 = vmatprep.subr.mxu0 %v4625_v32 }
 0xc11   :  { %4087 = vmatpush2.msk.msra.mxu0 %vm6550_vm5, %v4627_v23 }
 0xc12   :  { %2342 = vmatprep.subr.mxu0 %v4625_v32 }
 0xc13   :  { %4088 = vmatpush2.msk.msra.mxu0 %vm6551_vm10, %v4627_v23  ;;  %vm6554_vm10 = vcmask 261120  }
 0xc14   :  { %2344 = vmatprep.subr.mxu0 %v4625_v32 }
 0xc15   :  { %4089 = vmatpush2.msk.msra.mxu0 %vm6552_vm7, %v4627_v23 }
 0xc16   :  { %2346 = vmatprep.subr.mxu0 %v4625_v32 }
 0xc17   :  { %4090 = vmatpush2.msk.msra.mxu0 %vm6553_vm13, %v4627_v23  ;;  %vm6555_vm13 = vmmov %vm6554_vm10 }
 0xc18   :  { %2544 = vmatprep.subr.mxu0 %v4625_v32 }
 0xcb0   :  { %v2263_v33 = vpop.f32.mrf.mxu0 }
 0xcb1   :  { %v2274_v38 = vmul.f32 %v2263_v33, %v5403_v6 }
 0xcb2   :  { %v2265_v7 = vpop.f32.mrf.mxu0 }
 0xcb3   :  { %v2275_v8 = vmul.f32 %v2265_v7, %v5400_v63 }
 0xcb4   :  { %v2269_v37 = vpop.f32.mrf.mxu0 }
 0xcb5   :  { %4091 = vmatprep.mubr.msk.f32.mxu0 %vm6554_vm10, %v2275_v8  ;;  %v2276_v49 = vmul.f32 %v2269_v37, %v5398_v61  ;;  %vm6557_vm10 = vnez %v6487_v43 }
 0xcb6   :  { %v2271_v42 = vpop.f32.mrf.mxu0  ;;  %2349 = vmatmul.mubr.f32.vlgmr.msra.gmra.mxu0 %v2274_v38 }
 0xcb7   :  { %v2277_v48 = vmul.f32 %v2271_v42, %v5396_v60  ;;  %4100 = vmatpush1.msk.msra.mxu0 %vm5212_vm8, %v4627_v23 }
 0xcb8   :  { %2546 = vmatprep.subr.mxu0 %v4625_v32 }
 0xcb9   :  { %4092 = vmatprep.mubr.msk.f32.mxu0 %vm6555_vm13, %v2277_v48  ;;  %4101 = vmatpush1.msk.msra.mxu0 %vm5221_vm11, %v4627_v23  ;;  %vm6556_vm13 = vnez %v6485_v40 }
 0xcba   :  { %2354 = vmatmul.mubr.f32.gmra.mxu0 %v2276_v49  ;;  %2548 = vmatprep.subr.mxu0 %v4625_v32 }
 0xcbb   :  { %4102 = vmatpush1.msk.msra.mxu0 %vm5229_vm14, %v4627_v23 }
 0xcbc   :  { %2550 = vmatprep.subr.mxu0 %v4625_v32 }
 0xcbd   :  { %4103 = vmatpush1.msk.msra.mxu0 %vm5240_vm3, %v4627_v23 }
 0xcbe   :  { %2552 = vmatprep.subr.mxu0 %v4625_v32 }
 0xcbf   :  { %4104 = vmatpush1.msk.msra.mxu0 %vm5251_vm9, %v4627_v23 }
 0xcc0   :  { %2554 = vmatprep.subr.mxu0 %v4625_v32 }
 0xcc1   :  { %4105 = vmatpush1.msk.msra.mxu0 %vm6507_vm4, %v4627_v23 }
 0xcc2   :  { %2556 = vmatprep.subr.mxu0 %v4625_v32 }
 0xcc3   :  { %4106 = vmatpush1.msk.msra.mxu0 %vm6508_vm0, %v4627_v23 }
 0xcc4   :  { %2558 = vmatprep.subr.mxu0 %v4625_v32 }
 0xcc5   :  { %4107 = vmatpush1.msk.msra.mxu0 %vm6509_vm1, %v4627_v23 }
 0xcc6   :  { %2560 = vmatprep.subr.mxu0 %v4625_v32 }
 0xcc7   :  { %4108 = vmatpush1.msk.msra.mxu0 %vm6510_vm6, %v4627_v23 }
 0xcc8   :  { %2562 = vmatprep.subr.mxu0 %v4625_v32 }
 0xcc9   :  { %4109 = vmatpush1.msk.msra.mxu0 %vm6511_vm2, %v4627_v23 }
 0xcca   :  { %2564 = vmatprep.subr.mxu0 %v4625_v32 }
 0xccb   :  { %4110 = vmatpush1.msk.msra.mxu0 %vm6545_vm12, %v4627_v23  ;;  %vm6558_vm12 = vnez %v6489_v44 }
 0xccc   :  { %2566 = vmatprep.subr.mxu0 %v4625_v32 }
 0xccd   :  { %4111 = vmatpush1.msk.msra.mxu0 %vm6546_vm15, %v4627_v23  ;;  %vm6559_vm15 = vnez %v6491_v46 }
 0xcce   :  { %2568 = vmatprep.subr.mxu0 %v4625_v32 }
 0xccf   :  { %4112 = vmatpush1.msk.msra.mxu0 %vm6556_vm13, %v4627_v23 }
 0xcd0   :  { %2570 = vmatprep.subr.mxu0 %v4625_v32 }
 0xcd1   :  { %4113 = vmatpush1.msk.msra.mxu0 %vm6557_vm10, %v4627_v23  ;;  %vm6560_vm10 = vnez %v6497_v17 }
 0xcd2   :  { %2572 = vmatprep.subr.mxu0 %v4625_v32 }
 0xcd3   :  { %4114 = vmatpush1.msk.msra.mxu0 %vm6558_vm12, %v4627_v23  ;;  %vm6563_vm12 = vcmask 80896  }
 0xcd4   :  { %2574 = vmatprep.subr.mxu0 %v4625_v32 }
 0xcd5   :  { %4115 = vmatpush1.msk.msra.mxu0 %vm6559_vm15, %v4627_v23  ;;  %vm6561_vm15 = vnez %v6501_v25 }
 0xcd6   :  { %2600 = vmatprep.subr.mxu0 %v4625_v32 }
 0xcd7   :  { %4116 = vmatpush2.msk.msra.mxu0 %vm6550_vm5, %v4627_v23  ;;  %vm6562_vm5 = vcmask 1041408  }
 0xcd8   :  { %2602 = vmatprep.subr.mxu0 %v4625_v32 }
 0xcd9   :  { %4117 = vmatpush2.msk.msra.mxu0 %vm6560_vm10, %v4627_v23  ;;  %vm6564_vm10 = vmmov %vm6563_vm12 }
 0xcda   :  { %2604 = vmatprep.subr.mxu0 %v4625_v32 }
 0xcdb   :  { %4118 = vmatpush2.msk.msra.mxu0 %vm6552_vm7, %v4627_v23  ;;  %vm6573_vm7 = vnez %v6459_v5 }
 0xcdc   :  { %2606 = vmatprep.subr.mxu0 %v4625_v32 }
 0xcdd   :  { %4119 = vmatpush2.msk.msra.mxu0 %vm6561_vm15, %v4627_v23 }
 0xcde   :  { %4152 = vmatprep.subr.msk.mxu0 %vm6562_vm5, %v5138_v10  ;;  %vm6565_vm5 = vmmov %vm6564_vm10 }
 0xcdf   :  { %vm6568_vm15 = vmmov %vm6565_vm5 }
 0xd76   :  { %v2350_v50 = vpop.f32.mrf.mxu0 }
 0xd77   :  { %v2359_v51 = vsel %vm6563_vm12, %v2350_v50, -inf  ;;  %vm6566_vm12 = vmmov %vm6565_vm5 }
 0xd78   :  { %2360 = vmax.xlane.f32.xlu1 %v2359_v51  ;;  %v2352_v52 = vpop.f32.mrf.mxu0 }
 0xd7a   :  { %v2355_v54 = vpop.f32.mrf.mxu0 }
 0xd7b   :  { %v2362_v2 = vsel %vm6564_vm10, %v2355_v54, -inf  ;;  %vm6567_vm10 = vmmov %vm6565_vm5 }
 0xd7c   :  { %2363 = vmax.xlane.f32.xlu1 %v2362_v2  ;;  %v2357_v4 = vpop.f32.mrf.mxu0 }
 0xe01   :  { %v2361_v28 = vpop.xlane.xlu1 %2360 }
 0xe02   :  { %v2365_v56 = vsub.f32 %v2350_v50, %v2361_v28 }
 0xe04   :  { %v2367_v35 = vmul.f32 1.442695, %v2365_v56 }
 0xe05   :  { %v2364_v57 = vpop.xlane.xlu1 %2363 }
 0xe06   :  { %4547 = vpow2.f32 %v2367_v35  ;;  %v2366_v58 = vsub.f32 %v2355_v54, %v2364_v57 }
 0xe08   :  { %v2369_v59 = vmul.f32 1.442695, %v2366_v58 }
 0xe0a   :  { %4549 = vpow2.f32 %v2369_v59 }
 0xe13   :  { %v4548_v45 = vpop.eup %4547 }
 0xe14   :  { %v2371_v62 = vsel %vm6565_vm5, %v4548_v45, 0.0  ;;  %vm6570_vm5 = vcmask 1041408  }
 0xe15   :  { %2372 = vadd.xlane.f32.xlu1 %v2371_v62 }
 0xe17   :  { %v4550_v1 = vpop.eup %4549 }
 0xe18   :  { %v2374_v53 = vsel %vm6566_vm12, %v4550_v1, 0.0  ;;  %vm6571_vm12 = vmmov %vm6570_vm5 }
 0xe19   :  { %2375 = vadd.xlane.f32.xlu1 %v2374_v53 }
 0xe9e   :  { %v2373_v9 = vpop.xlane.xlu1 %2372 }
 0xe9f   :  { %4551 = vrcp.f32 %v2373_v9 }
 0xea2   :  { %v2376_v11 = vpop.xlane.xlu1 %2375 }
 0xea3   :  { %4553 = vrcp.f32 %v2376_v11 }
 0xeac   :  { %v4552_v13 = vpop.eup %4551 }
 0xead   :  { %v2378_v14 = vmul.f32 %v4552_v13, %v4548_v45 }
 0xeaf   :  { %4097 = vmatmul.mubr.msk.f32.vlgmr.msra.gmra.mxu1 %vm6567_vm10, %v2378_v14  ;;  %vm6572_vm10 = vnez %v6457_v3 }
 0xeb0   :  { %v4554_v19 = vpop.eup %4553  ;;  %2457 = vmatprep.mubr.f32.mxu1 %v4625_v32 }
 0xeb1   :  { %v2380_v36 = vmul.f32 %v4554_v19, %v4550_v1 }
 0xeb3   :  { %4098 = vmatmul.mubr.msk.f32.gmra.mxu1 %vm6568_vm15, %v2380_v36  ;;  %vm6569_vm15 = vcmask 130048  }
 0xeb4   :  { %2532 = vmatprep.mubr.f32.mxu1 %v4625_v32 }
 0xf6f   :  { %v2453_v30 = vpop.f32.mrf.mxu1 }
 0xf70   :  { %v2464_v48 = vmul.f32 %v2453_v30, %v5403_v6 }
 0xf71   :  { %v2455_v33 = vpop.f32.mrf.mxu1 }
 0xf72   :  { %v2465_v42 = vmul.f32 %v2455_v33, %v5400_v63 }
 0xf73   :  { %v2459_v7 = vpop.f32.mrf.mxu1 }
 0xf74   :  { %v2466_v37 = vmul.f32 %v2459_v7, %v5398_v61 }
 0xf75   :  { %v2461_v8 = vpop.f32.mrf.mxu1 }
 0xf76   :  { %v2467_v38 = vmul.f32 %v2461_v8, %v5396_v60 }
 0xf78   :  { %2496 = vmatprep.subr.mxu1 %v2467_v38 }
 0xf79   :  { %2497 = vmatpush1.msra.mxu1 %v2466_v37 }
 0xf7a   :  { %2498 = vmatprep.subr.mxu1 %v2465_v42 }
 0xf7b   :  { %2499 = vmatpush1.msra.mxu1 %v2464_v48 }
 0xf7c   :  { %4099 = vmatmul.mubr.msk.f32.vlgmr.msra.gmra.mxu1 %vm6569_vm15, %v5409_v12  ;;  %4121 = vmatprep.subr.msk.mxu1 %vm6570_vm5, %v5138_v10  ;;  %vm6574_vm15 = vcmask 261120  }
 0xf7d   :  { %4122 = vmatpush1.msk.msra.mxu1 %vm6571_vm12, %v5171_v22  ;;  %2682 = vmatprep.mubr.f32.mxu1 %v4625_v32  ;;  %vm6575_vm12 = vcmask 80896  }
 0xf7e   :  { %4123 = vmatprep.subr.msk.mxu1 %vm6572_vm10, %v4627_v23 }
 0xf7f   :  { %4124 = vmatpush1.msk.msra.mxu1 %vm6573_vm7, %v4627_v23 }
0x103c   :  { %v2534_v49 = vpop.f32.mrf.mxu1 }
0x103d   :  { %v2539_v52 = vmul.f32 %v2534_v49, %v2534_v49 }
0x103e   :  { %v2536_v50 = vpop.f32.mrf.mxu1 }
0x103f   :  { %v2540_v51 = vmul.f32 %v2536_v50, %v2536_v50 }
0x1041   :  { %4120 = vmatprep.mubr.msk.f32.mxu0 %vm6574_vm15, %v2540_v51  ;;  %vm6576_vm15 = vmmov %vm6570_vm5 }
0x1042   :  { %2609 = vmatmul.mubr.f32.vlgmr.msra.gmra.mxu0 %v2539_v52 }
0x1043   :  { %4153 = vmatpush1.msk.msra.mxu0 %vm6570_vm5, %v5171_v22  ;;  %2951 = vmatprep.mubr.f32.mxu0 %v4625_v32 }
0x1044   :  { %4154 = vmatprep.subr.msk.mxu0 %vm6572_vm10, %v4627_v23  ;;  %vm6577_vm10 = vcmask 15360  }
0x1045   :  { %4155 = vmatpush1.msk.msra.mxu0 %vm6573_vm7, %v4627_v23  ;;  %vm6583_vm7 = vnez %v6491_v46 }
0x1102   :  { %v2610_v54 = vpop.f32.mrf.mxu0 }
0x1103   :  { %v2611_v2 = vadd.f32 1e-07, %v2610_v54 }
0x1104   :  { %v2612_v4 = vpop.f32.mrf.mxu0 }
0x1105   :  { %4555 = vrsqrt.f32 %v2611_v2 }
0x1112   :  { %v4556_v28 = vpop.eup %4555 }
0x1113   :  { %4125 = vmatmul.mubr.msk.f32.vlgmr.msra.gmra.mxu1 %vm6575_vm12, %v4556_v28  ;;  %vm6578_vm12 = vmmov %vm6577_vm10 }
0x1114   :  { %2761 = vmatprep.mubr.f32.mxu1 %v4625_v32 }
0x11d3   :  { %v2684_v56 = vpop.f32.mrf.mxu1 }
0x11d4   :  { %v2689_v58 = vmul.f32 %v2684_v56, %v2534_v49 }
0x11d5   :  { %v2686_v35 = vpop.f32.mrf.mxu1 }
0x11d6   :  { %v2690_v57 = vmul.f32 %v2686_v35, %v2536_v50 }
0x11d8   :  { %4126 = vmatprep.subr.msk.mxu1 %vm6576_vm15, %v2690_v57  ;;  %vm6580_vm15 = vnez %v6483_v41 }
0x11d9   :  { %4127 = vmatpush1.msk.msra.mxu1 %vm6570_vm5, %v2689_v58  ;;  %vm6581_vm5 = vnez %v6487_v43 }
0x11da   :  { %4128 = vmatmul.mubr.msk.f32.vlgmr.msra.gmra.mxu1 %vm6577_vm10, %v5477_v55  ;;  %2784 = vmatprep.subr.mxu1 %v4625_v32  ;;  %vm6579_vm10 = vnez %v6481_v39 }
0x11db   :  { %2767 = vmatprep.mubr.f32.mxu1 %v4625_v32  ;;  %4130 = vmatpush1.msk.msra.mxu1 %vm5212_vm8, %v4627_v23 }
0x11dc   :  { %2786 = vmatprep.subr.mxu1 %v4625_v32 }
0x11dd   :  { %4131 = vmatpush1.msk.msra.mxu1 %vm5221_vm11, %v4627_v23 }
0x11de   :  { %4129 = vmatmul.mubr.msk.f32.gmra.mxu1 %vm6578_vm12, %v5486_v29  ;;  %2788 = vmatprep.subr.mxu1 %v4625_v32  ;;  %vm6582_vm12 = vnez %v6489_v44 }
0x11df   :  { %4132 = vmatpush1.msk.msra.mxu1 %vm5229_vm14, %v4627_v23 }
0x11e0   :  { %2790 = vmatprep.subr.mxu1 %v4625_v32 }
0x11e1   :  { %4133 = vmatpush1.msk.msra.mxu1 %vm5240_vm3, %v4627_v23 }
0x11e2   :  { %2792 = vmatprep.subr.mxu1 %v4625_v32 }
0x11e3   :  { %4134 = vmatpush1.msk.msra.mxu1 %vm5251_vm9, %v4627_v23 }
0x11e4   :  { %2794 = vmatprep.subr.mxu1 %v4625_v32 }
0x11e5   :  { %4135 = vmatpush1.msk.msra.mxu1 %vm6507_vm4, %v4627_v23 }
0x11e6   :  { %2796 = vmatprep.subr.mxu1 %v4625_v32 }
0x11e7   :  { %4136 = vmatpush1.msk.msra.mxu1 %vm6508_vm0, %v4627_v23 }
0x11e8   :  { %2798 = vmatprep.subr.mxu1 %v4625_v32 }
0x11e9   :  { %4137 = vmatpush1.msk.msra.mxu1 %vm6509_vm1, %v4627_v23 }
0x11ea   :  { %2800 = vmatprep.subr.mxu1 %v4625_v32 }
0x11eb   :  { %4138 = vmatpush1.msk.msra.mxu1 %vm6510_vm6, %v4627_v23 }
0x11ec   :  { %2802 = vmatprep.subr.mxu1 %v4625_v32 }
0x11ed   :  { %4139 = vmatpush1.msk.msra.mxu1 %vm6511_vm2, %v4627_v23 }
0x11ee   :  { %2804 = vmatprep.subr.mxu1 %v4625_v32 }
0x11ef   :  { %4140 = vmatpush1.msk.msra.mxu1 %vm6579_vm10, %v4627_v23 }
0x11f0   :  { %2806 = vmatprep.subr.mxu1 %v4625_v32 }
0x11f1   :  { %4141 = vmatpush1.msk.msra.mxu1 %vm6580_vm15, %v4627_v23 }
0x11f2   :  { %2808 = vmatprep.subr.mxu1 %v4625_v32 }
0x11f3   :  { %4142 = vmatpush1.msk.msra.mxu1 %vm6556_vm13, %v4627_v23  ;;  %vm6584_vm13 = vnez %v6493_v47 }
0x11f4   :  { %2810 = vmatprep.subr.mxu1 %v4625_v32 }
0x11f5   :  { %4143 = vmatpush1.msk.msra.mxu1 %vm6581_vm5, %v4627_v23  ;;  %vm6585_vm5 = vnez %v6497_v17 }
0x11f6   :  { %2812 = vmatprep.subr.mxu1 %v4625_v32 }
0x11f7   :  { %4144 = vmatpush1.msk.msra.mxu1 %vm6582_vm12, %v4627_v23  ;;  %vm6586_vm12 = vnez %v6499_v21 }
0x11f8   :  { %2814 = vmatprep.subr.mxu1 %v4625_v32 }
0x11f9   :  { %4145 = vmatpush1.msk.msra.mxu1 %vm6583_vm7, %v4627_v23  ;;  %vm6587_vm7 = vnez %v6501_v25 }
0x11fa   :  { %2840 = vmatprep.subr.mxu1 %v4625_v32 }
0x11fb   :  { %4146 = vmatpush2.msk.msra.mxu1 %vm6584_vm13, %v4627_v23 }
0x11fc   :  { %2842 = vmatprep.subr.mxu1 %v4625_v32 }
0x11fd   :  { %4147 = vmatpush2.msk.msra.mxu1 %vm6585_vm5, %v4627_v23  ;;  %vm6588_vm5 = vcmask 261120  }
0x11fe   :  { %2844 = vmatprep.subr.mxu1 %v4625_v32 }
0x11ff   :  { %4148 = vmatpush2.msk.msra.mxu1 %vm6586_vm12, %v4627_v23 }
0x1200   :  { %2846 = vmatprep.subr.mxu1 %v4625_v32 }
0x1201   :  { %4149 = vmatpush2.msk.msra.mxu1 %vm6587_vm7, %v4627_v23  ;;  %vm6589_vm7 = vmmov %vm6588_vm5 }
0x1202   :  { %3044 = vmatprep.subr.mxu1 %v4625_v32 }
0x129a   :  { %v2763_v59 = vpop.f32.mrf.mxu1 }
0x129b   :  { %v2774_v1 = vmul.f32 %v2763_v59, %v5403_v6 }
0x129c   :  { %v2765_v45 = vpop.f32.mrf.mxu1 }
0x129d   :  { %v2775_v62 = vmul.f32 %v2765_v45, %v5400_v63 }
0x129e   :  { %v2769_v53 = vpop.f32.mrf.mxu1 }
0x129f   :  { %4150 = vmatprep.mubr.msk.f32.mxu1 %vm6588_vm5, %v2775_v62  ;;  %v2776_v13 = vmul.f32 %v2769_v53, %v5398_v61  ;;  %vm6591_vm5 = vnez %v6487_v43 }
0x12a0   :  { %v2771_v9 = vpop.f32.mrf.mxu1  ;;  %2849 = vmatmul.mubr.f32.vlgmr.msra.gmra.mxu1 %v2774_v1 }
0x12a1   :  { %v2777_v11 = vmul.f32 %v2771_v9, %v5396_v60  ;;  %4159 = vmatpush1.msk.msra.mxu1 %vm5212_vm8, %v4627_v23 }
0x12a2   :  { %3046 = vmatprep.subr.mxu1 %v4625_v32 }
0x12a3   :  { %4151 = vmatprep.mubr.msk.f32.mxu1 %vm6589_vm7, %v2777_v11  ;;  %4160 = vmatpush1.msk.msra.mxu1 %vm5221_vm11, %v4627_v23  ;;  %vm6590_vm7 = vnez %v6485_v40 }
0x12a4   :  { %2854 = vmatmul.mubr.f32.gmra.mxu1 %v2776_v13  ;;  %3048 = vmatprep.subr.mxu1 %v4625_v32 }
0x12a5   :  { %4161 = vmatpush1.msk.msra.mxu1 %vm5229_vm14, %v4627_v23 }
0x12a6   :  { %3050 = vmatprep.subr.mxu1 %v4625_v32 }
0x12a7   :  { %4162 = vmatpush1.msk.msra.mxu1 %vm5240_vm3, %v4627_v23 }
0x12a8   :  { %3052 = vmatprep.subr.mxu1 %v4625_v32 }
0x12a9   :  { %4163 = vmatpush1.msk.msra.mxu1 %vm5251_vm9, %v4627_v23 }
0x12aa   :  { %3054 = vmatprep.subr.mxu1 %v4625_v32 }
0x12ab   :  { %4164 = vmatpush1.msk.msra.mxu1 %vm6507_vm4, %v4627_v23 }
0x12ac   :  { %3056 = vmatprep.subr.mxu1 %v4625_v32 }
0x12ad   :  { %4165 = vmatpush1.msk.msra.mxu1 %vm6508_vm0, %v4627_v23 }
0x12ae   :  { %3058 = vmatprep.subr.mxu1 %v4625_v32 }
0x12af   :  { %4166 = vmatpush1.msk.msra.mxu1 %vm6509_vm1, %v4627_v23 }
0x12b0   :  { %3060 = vmatprep.subr.mxu1 %v4625_v32 }
0x12b1   :  { %4167 = vmatpush1.msk.msra.mxu1 %vm6510_vm6, %v4627_v23 }
0x12b2   :  { %3062 = vmatprep.subr.mxu1 %v4625_v32 }
0x12b3   :  { %4168 = vmatpush1.msk.msra.mxu1 %vm6511_vm2, %v4627_v23 }
0x12b4   :  { %3064 = vmatprep.subr.mxu1 %v4625_v32 }
0x12b5   :  { %4169 = vmatpush1.msk.msra.mxu1 %vm6579_vm10, %v4627_v23  ;;  %vm6592_vm10 = vnez %v6489_v44 }
0x12b6   :  { %3066 = vmatprep.subr.mxu1 %v4625_v32 }
0x12b7   :  { %4170 = vmatpush1.msk.msra.mxu1 %vm6580_vm15, %v4627_v23  ;;  %vm6593_vm15 = vnez %v6491_v46 }
0x12b8   :  { %3068 = vmatprep.subr.mxu1 %v4625_v32 }
0x12b9   :  { %4171 = vmatpush1.msk.msra.mxu1 %vm6590_vm7, %v4627_v23 }
0x12ba   :  { %3070 = vmatprep.subr.mxu1 %v4625_v32 }
0x12bb   :  { %4172 = vmatpush1.msk.msra.mxu1 %vm6591_vm5, %v4627_v23  ;;  %vm6594_vm5 = vnez %v6497_v17 }
0x12bc   :  { %3072 = vmatprep.subr.mxu1 %v4625_v32 }
0x12bd   :  { %4173 = vmatpush1.msk.msra.mxu1 %vm6592_vm10, %v4627_v23  ;;  %vm6597_vm10 = vcmask 80896  }
0x12be   :  { %3074 = vmatprep.subr.mxu1 %v4625_v32 }
0x12bf   :  { %4174 = vmatpush1.msk.msra.mxu1 %vm6593_vm15, %v4627_v23  ;;  %vm6595_vm15 = vnez %v6501_v25 }
0x12c0   :  { %3100 = vmatprep.subr.mxu1 %v4625_v32 }
0x12c1   :  { %4175 = vmatpush2.msk.msra.mxu1 %vm6584_vm13, %v4627_v23  ;;  %vm6596_vm13 = vcmask 1041408  }
0x12c2   :  { %3102 = vmatprep.subr.mxu1 %v4625_v32 }
0x12c3   :  { %4176 = vmatpush2.msk.msra.mxu1 %vm6594_vm5, %v4627_v23  ;;  %vm6598_vm5 = vmmov %vm6597_vm10 }
0x12c4   :  { %3104 = vmatprep.subr.mxu1 %v4625_v32 }
0x12c5   :  { %4177 = vmatpush2.msk.msra.mxu1 %vm6586_vm12, %v4627_v23  ;;  %vm6606_vm12 = vnez %v6459_v5 }
0x12c6   :  { %3106 = vmatprep.subr.mxu1 %v4625_v32 }
0x12c7   :  { %4178 = vmatpush2.msk.msra.mxu1 %vm6595_vm15, %v4627_v23  ;;  %vm6601_vm15 = vmmov %vm6598_vm5 }
0x12c8   :  { %4211 = vmatprep.subr.msk.mxu1 %vm6596_vm13, %v5138_v10  ;;  %vm6599_vm13 = vmmov %vm6598_vm5 }
0x1360   :  { %v2850_v14 = vpop.f32.mrf.mxu1 }
0x1361   :  { %v2859_v19 = vsel %vm6597_vm10, %v2850_v14, -inf  ;;  %vm6600_vm10 = vmmov %vm6598_vm5 }
0x1362   :  { %2860 = vmax.xlane.f32.xlu1 %v2859_v19  ;;  %v2852_v36 = vpop.f32.mrf.mxu1 }
0x1364   :  { %v2855_v30 = vpop.f32.mrf.mxu1 }
0x1365   :  { %v2862_v33 = vsel %vm6598_vm5, %v2855_v30, -inf }
0x1366   :  { %2863 = vmax.xlane.f32.xlu1 %v2862_v33  ;;  %v2857_v7 = vpop.f32.mrf.mxu1 }
0x13eb   :  { %v2861_v8 = vpop.xlane.xlu1 %2860 }
0x13ec   :  { %v2865_v38 = vsub.f32 %v2850_v14, %v2861_v8 }
0x13ee   :  { %v2867_v37 = vmul.f32 1.442695, %v2865_v38 }
0x13ef   :  { %v2864_v42 = vpop.xlane.xlu1 %2863 }
0x13f0   :  { %4557 = vpow2.f32 %v2867_v37  ;;  %v2866_v48 = vsub.f32 %v2855_v30, %v2864_v42 }
0x13f2   :  { %v2869_v49 = vmul.f32 1.442695, %v2866_v48 }
0x13f4   :  { %4559 = vpow2.f32 %v2869_v49 }
0x13fd   :  { %v4558_v50 = vpop.eup %4557 }
0x13fe   :  { %v2871_v51 = vsel %vm6599_vm13, %v4558_v50, 0.0  ;;  %vm6603_vm13 = vcmask 1041408  }
0x13ff   :  { %2872 = vadd.xlane.f32.xlu0 %v2871_v51 }
0x1401   :  { %v4560_v52 = vpop.eup %4559 }
0x1402   :  { %v2874_v54 = vsel %vm6600_vm10, %v4560_v52, 0.0  ;;  %vm6604_vm10 = vmmov %vm6603_vm13 }
0x1403   :  { %2875 = vadd.xlane.f32.xlu1 %v2874_v54 }
0x1488   :  { %v2873_v2 = vpop.xlane.xlu0 %2872 }
0x1489   :  { %4561 = vrcp.f32 %v2873_v2 }
0x148c   :  { %v2876_v4 = vpop.xlane.xlu1 %2875 }
0x148d   :  { %4563 = vrcp.f32 %v2876_v4 }
0x1496   :  { %v4562_v28 = vpop.eup %4561 }
0x1497   :  { %v2878_v56 = vmul.f32 %v4562_v28, %v4558_v50 }
0x1499   :  { %4156 = vmatmul.mubr.msk.f32.vlgmr.msra.gmra.mxu0 %vm6598_vm5, %v2878_v56  ;;  %vm6605_vm5 = vnez %v6457_v3 }
0x149a   :  { %v4564_v35 = vpop.eup %4563  ;;  %2957 = vmatprep.mubr.f32.mxu0 %v4625_v32 }
0x149b   :  { %v2880_v57 = vmul.f32 %v4564_v35, %v4560_v52 }
0x149d   :  { %4157 = vmatmul.mubr.msk.f32.gmra.mxu0 %vm6601_vm15, %v2880_v57  ;;  %vm6602_vm15 = vcmask 130048  }
0x149e   :  { %3032 = vmatprep.mubr.f32.mxu0 %v4625_v32 }
0x1559   :  { %v2953_v58 = vpop.f32.mrf.mxu0 }
0x155a   :  { %v2964_v11 = vmul.f32 %v2953_v58, %v5403_v6 }
0x155b   :  { %v2955_v59 = vpop.f32.mrf.mxu0 }
0x155c   :  { %v2965_v9 = vmul.f32 %v2955_v59, %v5400_v63 }
0x155d   :  { %v2959_v45 = vpop.f32.mrf.mxu0 }
0x155e   :  { %v2966_v53 = vmul.f32 %v2959_v45, %v5398_v61 }
0x155f   :  { %v2961_v62 = vpop.f32.mrf.mxu0 }
0x1560   :  { %v2967_v1 = vmul.f32 %v2961_v62, %v5396_v60 }
0x1562   :  { %2996 = vmatprep.subr.mxu0 %v2967_v1 }
0x1563   :  { %2997 = vmatpush1.msra.mxu0 %v2966_v53 }
0x1564   :  { %2998 = vmatprep.subr.mxu0 %v2965_v9 }
0x1565   :  { %2999 = vmatpush1.msra.mxu0 %v2964_v11 }
0x1566   :  { %4158 = vmatmul.mubr.msk.f32.vlgmr.msra.gmra.mxu0 %vm6602_vm15, %v5409_v12  ;;  %4180 = vmatprep.subr.msk.mxu0 %vm6603_vm13, %v5138_v10  ;;  %vm6607_vm15 = vcmask 261120   ;;  %vm6608_vm13 = vmmov %vm6604_vm10 }
0x1567   :  { %4181 = vmatpush1.msk.msra.mxu0 %vm6604_vm10, %v5171_v22  ;;  %3182 = vmatprep.mubr.f32.mxu0 %v4625_v32  ;;  %vm6609_vm10 = vcmask 80896  }
0x1568   :  { %4182 = vmatprep.subr.msk.mxu0 %vm6605_vm5, %v4627_v23 }
0x1569   :  { %4183 = vmatpush1.msk.msra.mxu0 %vm6606_vm12, %v4627_v23 }
0x1626   :  { %v3034_v13 = vpop.f32.mrf.mxu0 }
0x1627   :  { %v3039_v36 = vmul.f32 %v3034_v13, %v3034_v13 }
0x1628   :  { %v3036_v14 = vpop.f32.mrf.mxu0 }
0x1629   :  { %v3040_v19 = vmul.f32 %v3036_v14, %v3036_v14 }
0x162b   :  { %4179 = vmatprep.mubr.msk.f32.mxu1 %vm6607_vm15, %v3040_v19  ;;  %vm6610_vm15 = vmmov %vm6608_vm13 }
0x162c   :  { %3109 = vmatmul.mubr.f32.vlgmr.msra.gmra.mxu1 %v3039_v36  ;;  %v4289_v36 = vld [vmem:[%s6389_s4 + $0x20] sm:$0xff]  }
0x162d   :  { %4212 = vmatpush1.msk.msra.mxu1 %vm6608_vm13, %v5171_v22  ;;  %3451 = vmatprep.mubr.f32.mxu1 %v4625_v32 }
0x162e   :  { %4213 = vmatprep.subr.msk.mxu1 %vm6605_vm5, %v4627_v23  ;;  %vm6611_vm5 = vcmask 15360  }
0x162f   :  { %4214 = vmatpush1.msk.msra.mxu1 %vm6606_vm12, %v4627_v23  ;;  %vm6617_vm12 = vnez %v6491_v46 }
0x16ec   :  { %v3110_v30 = vpop.f32.mrf.mxu1 }
0x16ed   :  { %v3111_v33 = vadd.f32 1e-07, %v3110_v30 }
0x16ee   :  { %v3112_v7 = vpop.f32.mrf.mxu1 }
0x16ef   :  { %4565 = vrsqrt.f32 %v3111_v33  ;;  %v4265_v33 = vunpack.c.h.bf16 %v4289_v36  ;;  %v4288_v7 = vld [vmem:[%s6389_s4 + $0x18] sm:$0xff]  }
0x16fc   :  { %v4566_v8 = vpop.eup %4565 }
0x16fd   :  { %4184 = vmatmul.mubr.msk.f32.vlgmr.msra.gmra.mxu0 %vm6609_vm10, %v4566_v8  ;;  %vm6612_vm10 = vmmov %vm6611_vm5  ;;  %v4264_v8 = vunpack.c.l.bf16 %v4289_v36 }
0x16fe   :  { %3261 = vmatprep.mubr.f32.mxu0 %v4625_v32 }
0x17bd   :  { %v3184_v38 = vpop.f32.mrf.mxu0 }
0x17be   :  { %v3189_v48 = vmul.f32 %v3184_v38, %v3034_v13  ;;  %v4290_v13 = vld [vmem:[%s6389_s4 + $0x28] sm:$0xff]   ;;  %v4261_v38 = vunpack.c.h.bf16 %v4288_v7 }
0x17bf   :  { %v3186_v37 = vpop.f32.mrf.mxu0  ;;  %v4269_v19 = vunpack.c.h.bf16 %v4290_v13  ;;  %v4268_v30 = vunpack.c.l.bf16 %v4290_v13 }
0x17c0   :  { %v3190_v42 = vmul.f32 %v3186_v37, %v3036_v14  ;;  %v4287_v37 = vld [vmem:[%s6389_s4 + $0x10] sm:$0xff]  }
0x17c2   :  { %4185 = vmatprep.subr.msk.mxu0 %vm6610_vm15, %v3190_v42  ;;  %vm6614_vm15 = vnez %v6483_v41  ;;  %v4260_v42 = vunpack.c.l.bf16 %v4288_v7 }
0x17c3   :  { %4186 = vmatpush1.msk.msra.mxu0 %vm6608_vm13, %v3189_v48  ;;  %vm6615_vm13 = vnez %v6487_v43  ;;  %v4257_v48 = vunpack.c.h.bf16 %v4287_v37 }
0x17c4   :  { %4187 = vmatmul.mubr.msk.f32.vlgmr.msra.gmra.mxu0 %vm6611_vm5, %v5477_v55  ;;  %3284 = vmatprep.subr.mxu0 %v4625_v32  ;;  %vm6613_vm5 = vnez %v6481_v39 }
0x17c5   :  { %3267 = vmatprep.mubr.f32.mxu0 %v4625_v32  ;;  %4189 = vmatpush1.msk.msra.mxu0 %vm5212_vm8, %v4627_v23 }
0x17c6   :  { %3286 = vmatprep.subr.mxu0 %v4625_v32 }
0x17c7   :  { %4190 = vmatpush1.msk.msra.mxu0 %vm5221_vm11, %v4627_v23 }
0x17c8   :  { %4188 = vmatmul.mubr.msk.f32.gmra.mxu0 %vm6612_vm10, %v5486_v29  ;;  %3288 = vmatprep.subr.mxu0 %v4625_v32  ;;  %vm6616_vm10 = vnez %v6489_v44 }
0x17c9   :  { %4191 = vmatpush1.msk.msra.mxu0 %vm5229_vm14, %v4627_v23 }
0x17ca   :  { %3290 = vmatprep.subr.mxu0 %v4625_v32 }
0x17cb   :  { %4192 = vmatpush1.msk.msra.mxu0 %vm5240_vm3, %v4627_v23 }
0x17cc   :  { %3292 = vmatprep.subr.mxu0 %v4625_v32 }
0x17cd   :  { %4193 = vmatpush1.msk.msra.mxu0 %vm5251_vm9, %v4627_v23 }
0x17ce   :  { %3294 = vmatprep.subr.mxu0 %v4625_v32 }
0x17cf   :  { %4194 = vmatpush1.msk.msra.mxu0 %vm6507_vm4, %v4627_v23 }
0x17d0   :  { %3296 = vmatprep.subr.mxu0 %v4625_v32 }
0x17d1   :  { %4195 = vmatpush1.msk.msra.mxu0 %vm6508_vm0, %v4627_v23 }
0x17d2   :  { %3298 = vmatprep.subr.mxu0 %v4625_v32 }
0x17d3   :  { %4196 = vmatpush1.msk.msra.mxu0 %vm6509_vm1, %v4627_v23 }
0x17d4   :  { %3300 = vmatprep.subr.mxu0 %v4625_v32 }
0x17d5   :  { %4197 = vmatpush1.msk.msra.mxu0 %vm6510_vm6, %v4627_v23 }
0x17d6   :  { %3302 = vmatprep.subr.mxu0 %v4625_v32 }
0x17d7   :  { %4198 = vmatpush1.msk.msra.mxu0 %vm6511_vm2, %v4627_v23 }
0x17d8   :  { %3304 = vmatprep.subr.mxu0 %v4625_v32 }
0x17d9   :  { %4199 = vmatpush1.msk.msra.mxu0 %vm6613_vm5, %v4627_v23 }
0x17da   :  { %3306 = vmatprep.subr.mxu0 %v4625_v32 }
0x17db   :  { %4200 = vmatpush1.msk.msra.mxu0 %vm6614_vm15, %v4627_v23 }
0x17dc   :  { %3308 = vmatprep.subr.mxu0 %v4625_v32 }
0x17dd   :  { %4201 = vmatpush1.msk.msra.mxu0 %vm6590_vm7, %v4627_v23  ;;  %vm6618_vm7 = vnez %v6493_v47 }
0x17de   :  { %3310 = vmatprep.subr.mxu0 %v4625_v32 }
0x17df   :  { %4202 = vmatpush1.msk.msra.mxu0 %vm6615_vm13, %v4627_v23  ;;  %vm6619_vm13 = vnez %v6497_v17 }
0x17e0   :  { %3312 = vmatprep.subr.mxu0 %v4625_v32 }
0x17e1   :  { %4203 = vmatpush1.msk.msra.mxu0 %vm6616_vm10, %v4627_v23  ;;  %vm6620_vm10 = vnez %v6499_v21 }
0x17e2   :  { %3314 = vmatprep.subr.mxu0 %v4625_v32 }
0x17e3   :  { %4204 = vmatpush1.msk.msra.mxu0 %vm6617_vm12, %v4627_v23  ;;  %vm6621_vm12 = vnez %v6501_v25 }
0x17e4   :  { %3340 = vmatprep.subr.mxu0 %v4625_v32 }
0x17e5   :  { %4205 = vmatpush2.msk.msra.mxu0 %vm6618_vm7, %v4627_v23 }
0x17e6   :  { %3342 = vmatprep.subr.mxu0 %v4625_v32 }
0x17e7   :  { %4206 = vmatpush2.msk.msra.mxu0 %vm6619_vm13, %v4627_v23  ;;  %vm6622_vm13 = vcmask 261120  }
0x17e8   :  { %3344 = vmatprep.subr.mxu0 %v4625_v32 }
0x17e9   :  { %4207 = vmatpush2.msk.msra.mxu0 %vm6620_vm10, %v4627_v23 }
0x17ea   :  { %3346 = vmatprep.subr.mxu0 %v4625_v32 }
0x17eb   :  { %4208 = vmatpush2.msk.msra.mxu0 %vm6621_vm12, %v4627_v23  ;;  %vm6623_vm12 = vmmov %vm6622_vm13 }
0x17ec   :  { %3544 = vmatprep.subr.mxu0 %v4625_v32 }
0x1884   :  { %v3263_v55 = vpop.f32.mrf.mxu0 }
0x1885   :  { %v3274_v50 = vmul.f32 %v3263_v55, %v5403_v6  ;;  %v4286_v55 = vld [vmem:[%s6389_s4 + $0x8] sm:$0xff]  }
0x1886   :  { %v3265_v29 = vpop.f32.mrf.mxu0 }
0x1887   :  { %v3275_v49 = vmul.f32 %v3265_v29, %v5400_v63  ;;  %v4256_v29 = vunpack.c.l.bf16 %v4287_v37 }
0x1888   :  { %v3269_v51 = vpop.f32.mrf.mxu0 }
0x1889   :  { %4209 = vmatprep.mubr.msk.f32.mxu0 %vm6622_vm13, %v3275_v49  ;;  %v3276_v2 = vmul.f32 %v3269_v51, %v5398_v61  ;;  %v4253_v49 = vunpack.c.h.bf16 %v4286_v55  ;;  %v4252_v51 = vunpack.c.l.bf16 %v4286_v55 }
0x188a   :  { %v3271_v52 = vpop.f32.mrf.mxu0  ;;  %3349 = vmatmul.mubr.f32.vlgmr.msra.gmra.mxu0 %v3274_v50  ;;  %v4247_v50 = vld [vmem:[%s6389_s4] sm:$0xff]  }
0x188b   :  { %v3277_v54 = vmul.f32 %v3271_v52, %v5396_v60  ;;  %4218 = vmatpush1.msk.msra.mxu0 %vm5212_vm8, %v4627_v23  ;;  %vm6624_vm8 = vnez %v6485_v40  ;;  %v4249_v52 = vunpack.c.h.bf16 %v4247_v50 }
0x188c   :  { %3546 = vmatprep.subr.mxu0 %v4625_v32 }
0x188d   :  { %4210 = vmatprep.mubr.msk.f32.mxu0 %vm6623_vm12, %v3277_v54  ;;  %4219 = vmatpush1.msk.msra.mxu0 %vm5221_vm11, %v4627_v23  ;;  %vm6625_vm11 = vnez %v6487_v43  ;;  %v4294_v54 = vld [vmem:[%s6389_s4 + $0x48] sm:$0xff]  }
0x188e   :  { %3354 = vmatmul.mubr.f32.gmra.mxu0 %v3276_v2  ;;  %3548 = vmatprep.subr.mxu0 %v4625_v32  ;;  %v4248_v2 = vunpack.c.l.bf16 %v4247_v50 }
0x188f   :  { %4220 = vmatpush1.msk.msra.mxu0 %vm5229_vm14, %v4627_v23  ;;  %vm6626_vm14 = vnez %v6489_v44 }
0x1890   :  { %3550 = vmatprep.subr.mxu0 %v4625_v32 }
0x1891   :  { %4221 = vmatpush1.msk.msra.mxu0 %vm5240_vm3, %v4627_v23  ;;  %vm6627_vm3 = vnez %v6491_v46 }
0x1892   :  { %3552 = vmatprep.subr.mxu0 %v4625_v32 }
0x1893   :  { %4222 = vmatpush1.msk.msra.mxu0 %vm5251_vm9, %v4627_v23  ;;  %vm6628_vm9 = vnez %v6497_v17 }
0x1894   :  { %3554 = vmatprep.subr.mxu0 %v4625_v32 }
0x1895   :  { %4223 = vmatpush1.msk.msra.mxu0 %vm6507_vm4, %v4627_v23  ;;  %vm6629_vm4 = vnez %v6501_v25 }
0x1896   :  { %3556 = vmatprep.subr.mxu0 %v4625_v32 }
0x1897   :  { %4224 = vmatpush1.msk.msra.mxu0 %vm6508_vm0, %v4627_v23  ;;  %vm6630_vm0 = vcmask 80896  }
0x1898   :  { %3558 = vmatprep.subr.mxu0 %v4625_v32  ;;  %vm6634_vm12 = vmmov %vm6630_vm0 }
0x1899   :  { %4225 = vmatpush1.msk.msra.mxu0 %vm6509_vm1, %v4627_v23  ;;  %vm6631_vm1 = vmmov %vm6630_vm0 }
0x189a   :  { %3560 = vmatprep.subr.mxu0 %v4625_v32 }
0x189b   :  { %4226 = vmatpush1.msk.msra.mxu0 %vm6510_vm6, %v4627_v23  ;;  %vm6632_vm6 = vmmov %vm6630_vm0 }
0x189c   :  { %3562 = vmatprep.subr.mxu0 %v4625_v32 }
0x189d   :  { %4227 = vmatpush1.msk.msra.mxu0 %vm6511_vm2, %v4627_v23  ;;  %vm6633_vm2 = vmmov %vm6630_vm0 }
0x189e   :  { %3564 = vmatprep.subr.mxu0 %v4625_v32 }
0x189f   :  { %4228 = vmatpush1.msk.msra.mxu0 %vm6613_vm5, %v4627_v23  ;;  %vm6636_vm5 = vcmask 130048  }
0x18a0   :  { %3566 = vmatprep.subr.mxu0 %v4625_v32 }
0x18a1   :  { %4229 = vmatpush1.msk.msra.mxu0 %vm6614_vm15, %v4627_v23  ;;  %vm6637_vm15 = vcmask 1041408  }
0x18a2   :  { %3568 = vmatprep.subr.mxu0 %v4625_v32  ;;  %vm6638_vm13 = vmmov %vm6637_vm15 }
0x18a3   :  { %4230 = vmatpush1.msk.msra.mxu0 %vm6624_vm8, %v4627_v23  ;;  %vm6640_vm8 = vnez %v6459_v5  ;;  %v4292_v5 = vld [vmem:[%s6389_s4 + $0x38] sm:$0xff]  }
0x18a4   :  { %3570 = vmatprep.subr.mxu0 %v4625_v32  ;;  %v4276_v9 = vunpack.c.l.bf16 %v4292_v5 }
0x18a5   :  { %4231 = vmatpush1.msk.msra.mxu0 %vm6625_vm11, %v4627_v23  ;;  %vm6641_vm11 = vcmask 261120  }
0x18a6   :  { %3572 = vmatprep.subr.mxu0 %v4625_v32 }
0x18a7   :  { %4232 = vmatpush1.msk.msra.mxu0 %vm6626_vm14, %v4627_v23  ;;  %vm6642_vm14 = vmmov %vm6630_vm0 }
0x18a8   :  { %3574 = vmatprep.subr.mxu0 %v4625_v32 }
0x18a9   :  { %4233 = vmatpush1.msk.msra.mxu0 %vm6627_vm3, %v4627_v23  ;;  %vm6643_vm3 = vmmov %vm6641_vm11 }
0x18aa   :  { %3600 = vmatprep.subr.mxu0 %v4625_v32 }
0x18ab   :  { %4234 = vmatpush2.msk.msra.mxu0 %vm6618_vm7, %v4627_v23  ;;  %vm6635_vm7 = vmmov %vm6630_vm0 }
0x18ac   :  { %3602 = vmatprep.subr.mxu0 %v4625_v32 }
0x18ad   :  { %4235 = vmatpush2.msk.msra.mxu0 %vm6628_vm9, %v4627_v23  ;;  %vm3811_vm9 = vcmask 25600  }
0x18ae   :  { %3604 = vmatprep.subr.mxu0 %v4625_v32 }
0x18af   :  { %4236 = vmatpush2.msk.msra.mxu0 %vm6620_vm10, %v4627_v23  ;;  %vm6639_vm10 = vnez %v6457_v3 }
0x18b0   :  { %3606 = vmatprep.subr.mxu0 %v4625_v32 }
0x18b1   :  { %4237 = vmatpush2.msk.msra.mxu0 %vm6629_vm4, %v4627_v23 }
0x194a   :  { %v3350_v15 = vpop.f32.mrf.mxu0 }
0x194b   :  { %v3359_v16 = vsel %vm6630_vm0, %v3350_v15, -inf }
0x194c   :  { %3360 = vmax.xlane.f32.xlu0 %v3359_v16  ;;  %v3352_v18 = vpop.f32.mrf.mxu0  ;;  %v4284_v16 = vunpack.c.l.bf16 %v4294_v54 }
0x194d   :  { %v4293_v18 = vld [vmem:[%s6389_s4 + $0x40] sm:$0xff]  }
0x194e   :  { %v3355_v20 = vpop.f32.mrf.mxu0 }
0x194f   :  { %v3362_v24 = vsel %vm6631_vm1, %v3355_v20, -inf }
0x1950   :  { %3363 = vmax.xlane.f32.xlu1 %v3362_v24  ;;  %v3357_v26 = vpop.f32.mrf.mxu0  ;;  %v4280_v24 = vunpack.c.l.bf16 %v4293_v18 }
0x19d5   :  { %v3361_v27 = vpop.xlane.xlu0 %3360 }
0x19d6   :  { %v3365_v31 = vsub.f32 %v3350_v15, %v3361_v27  ;;  %v4285_v15 = vunpack.c.h.bf16 %v4294_v54 }
0x19d8   :  { %v3367_v0 = vmul.f32 1.442695, %v3365_v31 }
0x19d9   :  { %v3364_v34 = vpop.xlane.xlu1 %3363 }
0x19da   :  { %4567 = vpow2.f32 %v3367_v0  ;;  %v3366_v39 = vsub.f32 %v3355_v20, %v3364_v34  ;;  %v4281_v20 = vunpack.c.h.bf16 %v4293_v18  ;;  %v4244_v34 = vld [vmem:[%s6390_s5] ss:$0 sm:$0xff] }
0x19dc   :  { %v3369_v41 = vmul.f32 1.442695, %v3366_v39 }
0x19de   :  { %4569 = vpow2.f32 %v3369_v41 }
0x19e7   :  { %v4568_v40 = vpop.eup %4567 }
0x19e8   :  { %v3371_v43 = vsel %vm6632_vm6, %v4568_v40, 0.0 }
0x19e9   :  { %3372 = vadd.xlane.f32.xlu0 %v3371_v43 }
0x19eb   :  { %v4570_v44 = vpop.eup %4569 }
0x19ec   :  { %v3374_v46 = vsel %vm6633_vm2, %v4570_v44, 0.0 }
0x19ed   :  { %3375 = vadd.xlane.f32.xlu1 %v3374_v46 }
0x1a72   :  { %v3373_v47 = vpop.xlane.xlu0 %3372 }
0x1a73   :  { %4571 = vrcp.f32 %v3373_v47 }
0x1a76   :  { %v3376_v17 = vpop.xlane.xlu1 %3375 }
0x1a77   :  { %4573 = vrcp.f32 %v3376_v17 }
0x1a80   :  { %v4572_v21 = vpop.eup %4571 }
0x1a81   :  { %v3378_v25 = vmul.f32 %v4572_v21, %v4568_v40 }
0x1a83   :  { %4215 = vmatmul.mubr.msk.f32.vlgmr.msra.gmra.mxu1 %vm6634_vm12, %v3378_v25 }
0x1a84   :  { %v4574_v4 = vpop.eup %4573  ;;  %3457 = vmatprep.mubr.f32.mxu1 %v4625_v32 }
0x1a85   :  { %v3380_v28 = vmul.f32 %v4574_v4, %v4570_v44 }
0x1a87   :  { %4216 = vmatmul.mubr.msk.f32.gmra.mxu1 %vm6635_vm7, %v3380_v28 }
0x1a88   :  { %3532 = vmatprep.mubr.f32.mxu1 %v4625_v32 }
0x1b43   :  { %v3453_v56 = vpop.f32.mrf.mxu1 }
0x1b44   :  { %v3464_v1 = vmul.f32 %v3453_v56, %v5403_v6 }
0x1b45   :  { %v3455_v35 = vpop.f32.mrf.mxu1 }
0x1b46   :  { %v3465_v62 = vmul.f32 %v3455_v35, %v5400_v63 }
0x1b47   :  { %v3459_v57 = vpop.f32.mrf.mxu1 }
0x1b48   :  { %v3466_v45 = vmul.f32 %v3459_v57, %v5398_v61 }
0x1b49   :  { %v3461_v58 = vpop.f32.mrf.mxu1 }
0x1b4a   :  { %v3467_v59 = vmul.f32 %v3461_v58, %v5396_v60 }
0x1b4c   :  { %3496 = vmatprep.subr.mxu1 %v3467_v59 }
0x1b4d   :  { %3497 = vmatpush1.msra.mxu1 %v3466_v45 }
0x1b4e   :  { %3498 = vmatprep.subr.mxu1 %v3465_v62 }
0x1b4f   :  { %3499 = vmatpush1.msra.mxu1 %v3464_v1 }
0x1b50   :  { %4217 = vmatmul.mubr.msk.f32.vlgmr.msra.gmra.mxu1 %vm6636_vm5, %v5409_v12  ;;  %4239 = vmatprep.subr.msk.mxu1 %vm6637_vm15, %v5138_v10  ;;  %v4291_v12 = vld [vmem:[%s6389_s4 + $0x30] sm:$0xff]  }
0x1b51   :  { %4240 = vmatpush1.msk.msra.mxu1 %vm6638_vm13, %v5171_v22  ;;  %3682 = vmatprep.mubr.f32.mxu1 %v4625_v32  ;;  %v4273_v11 = vunpack.c.h.bf16 %v4291_v12  ;;  %v4272_v14 = vunpack.c.l.bf16 %v4291_v12 }
0x1b52   :  { %4241 = vmatprep.subr.msk.mxu1 %vm6639_vm10, %v4627_v23 }
0x1b53   :  { %4242 = vmatpush1.msk.msra.mxu1 %vm6640_vm8, %v4627_v23  ;;  %v4277_v23 = vunpack.c.h.bf16 %v4292_v5 }
0x1b54   :  { %3741 = vmatprep.subr.mxu1 %v4625_v32 }
0x1c10   :  { %v6317_v60 = vpop.f32.mrf.mxu1 }
0x1c11   :  { %v3539_v22 = vmul.f32 %v6317_v60, %v6317_v60 }
0x1c12   :  { %v6319_v61 = vpop.f32.mrf.mxu1 }
0x1c13   :  { %v3540_v10 = vmul.f32 %v6319_v61, %v6319_v61 }
0x1c15   :  { %4238 = vmatprep.mubr.msk.f32.mxu0 %vm6641_vm11, %v3540_v10 }
0x1c16   :  { %3609 = vmatmul.mubr.f32.vlgmr.msra.gmra.mxu0 %v3539_v22 }
0x1cd6   :  { %v3610_v3 = vpop.f32.mrf.mxu0 }
0x1cd7   :  { %v3611_v63 = vadd.f32 1e-07, %v3610_v3 }
0x1cd8   :  { %v3612_v6 = vpop.f32.mrf.mxu0 }
0x1cd9   :  { %4575 = vrsqrt.f32 %v3611_v63 }
0x1ce6   :  { %v4576_v53 = vpop.eup %4575 }
0x1ce7   :  { %4243 = vmatmul.mubr.msk.f32.vlgmr.msra.gmra.mxu1 %vm6642_vm14, %v4576_v53 }
0x1ce8   :  { %3742 = vmatpush1.msra.mxu1 %v4277_v23 }
0x1ce9   :  { %3743 = vmatprep.subr.mxu1 %v4625_v32 }
0x1cea   :  { %3744 = vmatpush1.msra.mxu1 %v4276_v9 }
0x1ceb   :  { %3745 = vmatprep.subr.mxu1 %v4625_v32 }
0x1cec   :  { %3746 = vmatpush1.msra.mxu1 %v4273_v11 }
0x1ced   :  { %3747 = vmatprep.subr.mxu1 %v4625_v32 }
0x1cee   :  { %3748 = vmatpush1.msra.mxu1 %v4272_v14 }
0x1cef   :  { %3749 = vmatprep.subr.mxu1 %v4625_v32 }
0x1cf0   :  { %3750 = vmatpush1.msra.mxu1 %v4269_v19 }
0x1cf1   :  { %3751 = vmatprep.subr.mxu1 %v4625_v32 }
0x1cf2   :  { %3752 = vmatpush1.msra.mxu1 %v4268_v30 }
0x1cf3   :  { %3753 = vmatprep.subr.mxu1 %v4625_v32 }
0x1cf4   :  { %3754 = vmatpush1.msra.mxu1 %v4265_v33 }
0x1cf5   :  { %3755 = vmatprep.subr.mxu1 %v4625_v32 }
0x1cf6   :  { %3756 = vmatpush1.msra.mxu1 %v4264_v8 }
0x1cf7   :  { %3757 = vmatprep.subr.mxu1 %v4625_v32 }
0x1cf8   :  { %3758 = vmatpush1.msra.mxu1 %v4261_v38 }
0x1cf9   :  { %3759 = vmatprep.subr.mxu1 %v4625_v32 }
0x1cfa   :  { %3760 = vmatpush1.msra.mxu1 %v4260_v42 }
0x1cfb   :  { %3761 = vmatprep.subr.mxu1 %v4625_v32 }
0x1cfc   :  { %3762 = vmatpush1.msra.mxu1 %v4257_v48 }
0x1cfd   :  { %3763 = vmatprep.subr.mxu1 %v4625_v32 }
0x1cfe   :  { %3764 = vmatpush1.msra.mxu1 %v4256_v29 }
0x1cff   :  { %3765 = vmatprep.subr.mxu1 %v4625_v32 }
0x1d00   :  { %3766 = vmatpush1.msra.mxu1 %v4253_v49 }
0x1d01   :  { %3767 = vmatprep.subr.mxu1 %v4625_v32 }
0x1d02   :  { %3768 = vmatpush1.msra.mxu1 %v4252_v51 }
0x1d03   :  { %3769 = vmatprep.subr.mxu1 %v4625_v32 }
0x1d04   :  { %3770 = vmatpush1.msra.mxu1 %v4249_v52 }
0x1d05   :  { %3771 = vmatprep.subr.mxu1 %v4625_v32 }
0x1d06   :  { %3772 = vmatpush1.msra.mxu1 %v4248_v2 }
0x1d07   :  { %3797 = vmatprep.subr.mxu1 %v4625_v32 }
0x1d08   :  { %3798 = vmatpush2.msra.mxu1 %v4285_v15 }
0x1d09   :  { %3799 = vmatprep.subr.mxu1 %v4625_v32 }
0x1d0a   :  { %3800 = vmatpush2.msra.mxu1 %v4284_v16 }
0x1d0b   :  { %3801 = vmatprep.subr.mxu1 %v4625_v32 }
0x1d0c   :  { %3802 = vmatpush2.msra.mxu1 %v4281_v20 }
0x1d0d   :  { %3803 = vmatprep.subr.mxu1 %v4625_v32 }
0x1d0e   :  { %3804 = vmatpush2.msra.mxu1 %v4280_v24 }
0x1da7   :  { %v3684_v26 = vpop.f32.mrf.mxu1 }
0x1da8   :  { %v3689_v0 = vmul.f32 %v3684_v26, %v6317_v60 }
0x1da9   :  { %v3686_v27 = vpop.f32.mrf.mxu1 }
0x1daa   :  { %v3690_v31 = vmul.f32 %v3686_v27, %v6319_v61 }
0x1dac   :  { %4245 = vmatprep.mubr.msk.f32.mxu1 %vm6643_vm3, %v3690_v31 }
0x1dad   :  { %3806 = vmatmul.mubr.f32.vlgmr.msra.gmra.mxu1 %v3689_v0 }
0x1e6d   :  { %v3807_v39 = vpop.f32.mrf.mxu1 }
0x1e6e   :  { %v3808_v41 = vadd.f32 %v4244_v34, %v3807_v39 }
0x1e6f   :  { %v3809_v32 = vpop.f32.mrf.mxu1 }
0x1e70   :  { %3812 = vst.msk [vmem:[#allocation5] sm:$0x3] %vm3811_vm9, %v3808_v41 }
0x1e71   :  { %4608 = shalt.err (!%p4605_p9)
}
0x1e72   :  { %3822 = dma.vmem_to_hbm [thread:$0]  %s3820_s27, 32, %s6391_s6, [#allocation4]  }
0x1e73   :  { %4619 = dma.done.wait [#allocation4], 32  }
0x1e74   :  { %4620 = vsyncadd [#allocation4], 4294967264 }
0x1e75   :  { %3826 = vsyncpa [#allocation3], 1 }
0x1e76   :  { %3827 = vsyncpa [#allocation4], 1 }

</bundles_post_ra>
